<compile_context>
chip_gen: v6e
topology: v6e:2x2x1
jax: 0.10.0
libtpu: 0.0.40
codegen_flags: <defaults>
</compile_context>

<pallas_src>
import functools

import jax
import jax.numpy as jnp
from jax.experimental import pallas as pl
from jax.experimental.pallas import tpu as pltpu


def _softplus(v):
    # Numerically-stable softplus: log1p(exp(-|v|)) + max(v, 0)  (exp/log1p -> EUP slot)
    return jnp.log1p(jnp.exp(-jnp.abs(v))) + jnp.maximum(v, 0.0)


def _vae_fwd_kernel(
    z_dim,
    x_ref, eps_ref,
    we0_ref, be0_ref,
    wmv_ref, bmv_ref,
    wd0_ref, bd0_ref,
    wl_ref, bl_ref,
    zpack_ref, xout_ref,
):
    f32 = jnp.float32
    wdt = we0_ref.dtype  # weight compute dtype (f32 or bf16)

    # In-kernel cast of x (no wrapper-side HBM round trip); no-op when wdt == f32.
    x = x_ref[...].astype(wdt)

    # ---- encoder -------------------------------------------------------------
    h = jnp.dot(x, we0_ref[...], preferred_element_type=f32) + be0_ref[...]
    h = jnp.maximum(h, 0.0)  # F.relu

    # Fused mean/var head: one (B_tile, 2h) @ (2h, 2*z_dim) matmul.
    mv = jnp.dot(h.astype(wdt), wmv_ref[...], preferred_element_type=f32) + bmv_ref[...]
    z_mean = mv[:, :z_dim]
    z_var = _softplus(mv[:, z_dim:2 * z_dim])

    # ---- reparameterize: Normal(z_mean, z_var).rsample() ----------------------
    z = z_mean + z_var * eps_ref[...]

    # ---- decoder ---------------------------------------------------------------
    h2 = jnp.dot(z.astype(wdt), wd0_ref[...], preferred_element_type=f32) + bd0_ref[...]
    h2 = jnp.maximum(h2, 0.0)
    x_logits = jnp.dot(h2.astype(wdt), wl_ref[...], preferred_element_type=f32) + bl_ref[...]

    # ---- lane-dense packed latent output (z_mean | z_var | z | zero pad) -------
    pad = zpack_ref.shape[-1] - 3 * z_dim
    parts = [z_mean, z_var, z]
    if pad > 0:
        parts.append(jnp.zeros((z_mean.shape[0], pad), f32))
    zpack_ref[...] = jnp.concatenate(parts, axis=-1)

    xout_ref[...] = x_logits.astype(xout_ref.dtype)


def prepare_params(params, compute_dtype=jnp.float32):
    """One-time weight preparation (hoisted out of the per-call wrapper).

    - fuses the mean/var heads into a single (2h, 2*z_dim) weight/bias,
    - casts weights to compute_dtype (biases stay f32 for accuracy; they're tiny).
    Call once and reuse the result across forward calls.
    """
    cd = compute_dtype
    f32 = jnp.float32
    return dict(
        W_e0=params["W_e0"].astype(cd),
        b_e0=params["b_e0"].astype(f32),
        W_mv=jnp.concatenate([params["W_mean"], params["W_var"]], axis=1).astype(cd),
        b_mv=jnp.concatenate([params["b_mean"], params["b_var"]], axis=1).astype(f32),
        W_d0=params["W_d0"].astype(cd),
        b_d0=params["b_d0"].astype(f32),
        W_logits=params["W_logits"].astype(cd),
        b_logits=params["b_logits"].astype(f32),
    )


def _pick_batch_tile(B, requested, min_grid_steps=2):
    """Large tiles amortize the ~0.35us/step grid overhead (mem-bound kernel), but keep
    at least `min_grid_steps` steps when possible so v7x can shard the parallel batch
    axis across both TensorCores."""
    bt = max(8, min(int(requested), -(-B // min_grid_steps)))
    bt = -(-bt // 8) * 8  # sublane multiple
    return bt


def model_vae_forward(x, prepped, eps, *, batch_tile=512, logits_dtype=jnp.float32):
    """x: (B, 784) float32, eps: (B, z_dim) float32, prepped: output of prepare_params.

    Returns (z_mean, z_var, z, x_logits); latents are float32, logits are logits_dtype.
    """
    B, in_dim = x.shape
    z_dim = eps.shape[1]
    h2dim = prepped["W_e0"].shape[1]          # h_dim * 2
    out_dim = prepped["W_logits"].shape[1]    # 784 (unpadded; full-dim block is legal)

    # Batch tiling (pad batch to a multiple of the tile only if needed).
    bt = _pick_batch_tile(B, batch_tile)
    B_pad = -(-B // bt) * bt
    if B_pad != B:
        x_p = jnp.pad(x, ((0, B_pad - B), (0, 0)))
        eps_p = jnp.pad(eps, ((0, B_pad - B), (0, 0)))
    else:
        x_p, eps_p = x, eps
    grid = (B_pad // bt,)

    # Packed latent output lane width (>= 3*z_dim, multiple of 128).
    zpack_dim = max(128, -(-(3 * z_dim) // 128) * 128)

    lbytes = jnp.dtype(logits_dtype).itemsize
    wbytes = sum(int(v.size) * v.dtype.itemsize for v in prepped.values())

    # Raise scoped VMEM only when very large tiles would exceed v5e's 16 MiB default.
    per_step_bytes = bt * (in_dim * 4 + z_dim * 4 + zpack_dim * 4 + out_dim * lbytes)
    vmem_est = 2 * (per_step_bytes + wbytes)  # everything double-buffered by default
    vmem_limit = None
    if vmem_est > 14 * (1 << 20):
        vmem_limit = min(int(vmem_est * 5 // 4) + (2 << 20), 64 << 20)

    # Advisory cost estimate so XLA can schedule surrounding ops around this call.
    flops = 2 * B_pad * (in_dim * h2dim + h2dim * 2 * z_dim + z_dim * h2dim + h2dim * out_dim)
    bytes_accessed = B_pad * (in_dim * 4 + z_dim * 4 + zpack_dim * 4 + out_dim * lbytes) + wbytes
    cost = pl.CostEstimate(
        flops=int(flops),
        transcendentals=int(2 * B_pad * z_dim),  # exp + log1p in softplus
        bytes_accessed=int(bytes_accessed),
    )

    in_specs = [
        pl.BlockSpec((bt, in_dim), lambda i: (i, 0)),        # x      (batch-tiled, f32)
        pl.BlockSpec((bt, z_dim), lambda i: (i, 0)),         # eps    (batch-tiled)
        pl.BlockSpec((in_dim, h2dim), lambda i: (0, 0)),     # W_e0   (VMEM-resident)
        pl.BlockSpec((1, h2dim), lambda i: (0, 0)),          # b_e0
        pl.BlockSpec((h2dim, 2 * z_dim), lambda i: (0, 0)),  # W_mv   (fused head)
        pl.BlockSpec((1, 2 * z_dim), lambda i: (0, 0)),      # b_mv
        pl.BlockSpec((z_dim, h2dim), lambda i: (0, 0)),      # W_d0
        pl.BlockSpec((1, h2dim), lambda i: (0, 0)),          # b_d0
        pl.BlockSpec((h2dim, out_dim), lambda i: (0, 0)),    # W_logits
        pl.BlockSpec((1, out_dim), lambda i: (0, 0)),        # b_logits
    ]
    out_shapes = (
        jax.ShapeDtypeStruct((B_pad, zpack_dim), jnp.float32),  # packed (z_mean|z_var|z|pad)
        jax.ShapeDtypeStruct((B_pad, out_dim), logits_dtype),   # logits
    )
    out_specs = [
        pl.BlockSpec((bt, zpack_dim), lambda i: (i, 0)),
        pl.BlockSpec((bt, out_dim), lambda i: (i, 0)),
    ]

    fn = pl.pallas_call(
        functools.partial(_vae_fwd_kernel, z_dim),
        out_shape=out_shapes,
        grid_spec=pltpu.PrefetchScalarGridSpec(
            num_scalar_prefetch=0,
            grid=grid,
            in_specs=in_specs,
            out_specs=out_specs,
        ),
        compiler_params=pltpu.CompilerParams(
            # Batch axis is independent -> shard grid steps across both TCs on v7x.
            dimension_semantics=("parallel",),
            vmem_limit_bytes=vmem_limit,
        ),
        cost_estimate=cost,
    )

    zpack, xout = fn(
        x_p, eps_p,
        prepped["W_e0"], prepped["b_e0"],
        prepped["W_mv"], prepped["b_mv"],
        prepped["W_d0"], prepped["b_d0"],
        prepped["W_logits"], prepped["b_logits"],
    )

    z_mean = zpack[:B, 0:z_dim]
    z_var = zpack[:B, z_dim:2 * z_dim]
    z = zpack[:B, 2 * z_dim:3 * z_dim]
    x_logits = xout[:B, :out_dim]
    return z_mean, z_var, z, x_logits


def init_params(key, h_dim, z_dim):
    """Deterministic init mirroring nn.Linear shapes (weights stored transposed)."""
    def linear(key, fan_in, fan_out):
        kw, kb = jax.random.split(key)
        bound = 1.0 / jnp.sqrt(fan_in)
        W = jax.random.uniform(kw, (fan_in, fan_out), jnp.float32, -bound, bound)
        b = jax.random.uniform(kb, (1, fan_out), jnp.float32, -bound, bound)
        return W, b

    keys = jax.random.split(key, 5)
    h2 = h_dim * 2
    W_e0, b_e0 = linear(keys[0], 784, h2)
    W_mean, b_mean = linear(keys[1], h2, z_dim)
    W_var, b_var = linear(keys[2], h2, z_dim)
    W_d0, b_d0 = linear(keys[3], z_dim, h2)
    W_logits, b_logits = linear(keys[4], h2, 784)
    return dict(
        W_e0=W_e0, b_e0=b_e0,
        W_mean=W_mean, b_mean=b_mean,
        W_var=W_var, b_var=b_var,
        W_d0=W_d0, b_d0=b_d0,
        W_logits=W_logits, b_logits=b_logits,
    )


def _reference(x, params, eps):
    h = jnp.maximum(x @ params["W_e0"] + params["b_e0"], 0.0)
    zm = h @ params["W_mean"] + params["b_mean"]
    zv = jax.nn.softplus(h @ params["W_var"] + params["b_var"])
    z = zm + zv * eps
    h2 = jnp.maximum(z @ params["W_d0"] + params["b_d0"], 0.0)
    xr = h2 @ params["W_logits"] + params["b_logits"]
    return zm, zv, z, xr


if __name__ == "__main__":
    h_dim = 64     # hidden -> h_dim*2 = 128
    z_dim = 16
    B = 256        # batch; adaptive tiler picks bt=128 -> 2 grid steps (keeps 2 TCs busy)

    key = jax.random.PRNGKey(0)
    kx, keps, kp = jax.random.split(key, 3)

    x = jax.random.uniform(kx, (B, 784), jnp.float32)        # MNIST-like input in [0,1)
    eps = jax.random.normal(keps, (B, z_dim), jnp.float32)   # rsample noise
    params = init_params(kp, h_dim, z_dim)

    # One-time (hoisted) weight preparation.
    prepped_f32 = prepare_params(params, compute_dtype=jnp.float32)
    prepped_bf16 = prepare_params(params, compute_dtype=jnp.bfloat16)
    jax.block_until_ready((prepped_f32, prepped_bf16))

    # ---- f32 path (exact) ----------------------------------------------------
    z_mean, z_var, z_s, x_recon = model_vae_forward(
        x, prepped_f32, eps, batch_tile=512, logits_dtype=jnp.float32)
    jax.block_until_ready((z_mean, z_var, z_s, x_recon))

    zm_ref, zv_ref, z_ref, xr_ref = _reference(x, params, eps)
    assert jnp.allclose(z_mean, zm_ref, atol=1e-4, rtol=1e-4)
    assert jnp.allclose(z_var, zv_ref, atol=1e-4, rtol=1e-4)
    assert jnp.allclose(z_s, z_ref, atol=1e-4, rtol=1e-4)
    assert jnp.allclose(x_recon, xr_ref, atol=1e-3, rtol=1e-3)

    # ---- bf16-weight path (bf16 weights + bf16 logits writeback), loose tolerance
    z_mean16, z_var16, z16, x_recon16 = model_vae_forward(
        x, prepped_bf16, eps, batch_tile=512, logits_dtype=jnp.bfloat16)
    jax.block_until_ready((z_mean16, z_var16, z16, x_recon16))
    assert jnp.allclose(z_mean16, zm_ref, atol=5e-2, rtol=5e-2)
    assert jnp.allclose(z_var16, zv_ref, atol=5e-2, rtol=5e-2)
    assert jnp.allclose(z16, z_ref, atol=5e-2, rtol=5e-2)
    assert jnp.allclose(x_recon16.astype(jnp.float32), xr_ref, atol=7.5e-2, rtol=7.5e-2)

    print("KERNEL_OK")
</pallas_src>

<mosaic_0001>
module attributes {stable_mosaic.version = 11 : i64} {
  func.func @_vae_fwd_kernel(%arg0: i32, %arg1: memref<128x784xf32, #tpu.memory_space<vmem>>, %arg2: memref<128x16xf32, #tpu.memory_space<vmem>>, %arg3: memref<784x128xf32, #tpu.memory_space<vmem>>, %arg4: memref<1x128xf32, #tpu.memory_space<vmem>>, %arg5: memref<128x32xf32, #tpu.memory_space<vmem>>, %arg6: memref<1x32xf32, #tpu.memory_space<vmem>>, %arg7: memref<16x128xf32, #tpu.memory_space<vmem>>, %arg8: memref<1x128xf32, #tpu.memory_space<vmem>>, %arg9: memref<128x784xf32, #tpu.memory_space<vmem>>, %arg10: memref<1x784xf32, #tpu.memory_space<vmem>>, %arg11: memref<128x128xf32, #tpu.memory_space<vmem>>, %arg12: memref<128x784xf32, #tpu.memory_space<vmem>>) attributes {dimension_semantics = [#tpu.dimension_semantics<parallel>], iteration_bounds = array<i64: 2>, scalar_prefetch = 0 : i64, scratch_operands = 0 : i64, tpu.core_type = #tpu.core_type<tc>, window_params = [{transform_indices = @transform_0, window_bounds = array<i64: 128, 784>}, {transform_indices = @transform_1, window_bounds = array<i64: 128, 16>}, {pipeline_mode = #tpu.pipeline_mode<synchronous>, transform_indices = @transform_2, window_bounds = array<i64: 784, 128>}, {pipeline_mode = #tpu.pipeline_mode<synchronous>, transform_indices = @transform_3, window_bounds = array<i64: 1, 128>}, {pipeline_mode = #tpu.pipeline_mode<synchronous>, transform_indices = @transform_4, window_bounds = array<i64: 128, 32>}, {pipeline_mode = #tpu.pipeline_mode<synchronous>, transform_indices = @transform_5, window_bounds = array<i64: 1, 32>}, {pipeline_mode = #tpu.pipeline_mode<synchronous>, transform_indices = @transform_6, window_bounds = array<i64: 16, 128>}, {pipeline_mode = #tpu.pipeline_mode<synchronous>, transform_indices = @transform_7, window_bounds = array<i64: 1, 128>}, {pipeline_mode = #tpu.pipeline_mode<synchronous>, transform_indices = @transform_8, window_bounds = array<i64: 128, 784>}, {pipeline_mode = #tpu.pipeline_mode<synchronous>, transform_indices = @transform_9, window_bounds = array<i64: 1, 784>}, {transform_indices = @transform_10, window_bounds = array<i64: 128, 128>}, {transform_indices = @transform_11, window_bounds = array<i64: 128, 784>}]} {
    %c0 = arith.constant 0 : index
    %c0_0 = arith.constant 0 : index
    %0 = vector.load %arg1[%c0, %c0_0] : memref<128x784xf32, #tpu.memory_space<vmem>>, vector<128x784xf32>
    %c0_1 = arith.constant 0 : index
    %c0_2 = arith.constant 0 : index
    %1 = vector.load %arg3[%c0_1, %c0_2] : memref<784x128xf32, #tpu.memory_space<vmem>>, vector<784x128xf32>
    %cst = arith.constant dense<0.000000e+00> : vector<128x128xf32>
    %2 = tpu.matmul %0, %1, %cst {dimension_numbers = #tpu.dot_dimension_numbers<[1], [0], [0], [1], [0, 0, 1, 1], [], []>} : vector<128x784xf32>, vector<784x128xf32>, vector<128x128xf32> -> vector<128x128xf32>
    %c0_3 = arith.constant 0 : index
    %c0_4 = arith.constant 0 : index
    %3 = vector.load %arg4[%c0_3, %c0_4] : memref<1x128xf32, #tpu.memory_space<vmem>>, vector<1x128xf32>
    %4 = vector.broadcast %3 : vector<1x128xf32> to vector<128x128xf32>
    %5 = arith.addf %2, %4 : vector<128x128xf32>
    %cst_5 = arith.constant 0.000000e+00 : f32
    %6 = vector.broadcast %cst_5 : f32 to vector<128x128xf32>
    %7 = arith.maximumf %5, %6 : vector<128x128xf32>
    %c0_6 = arith.constant 0 : index
    %c0_7 = arith.constant 0 : index
    %8 = vector.load %arg5[%c0_6, %c0_7] : memref<128x32xf32, #tpu.memory_space<vmem>>, vector<128x32xf32>
    %cst_8 = arith.constant dense<0.000000e+00> : vector<128x32xf32>
    %9 = tpu.matmul %7, %8, %cst_8 {dimension_numbers = #tpu.dot_dimension_numbers<[1], [0], [0], [1], [0, 0, 1, 1], [], []>} : vector<128x128xf32>, vector<128x32xf32>, vector<128x32xf32> -> vector<128x32xf32>
    %c0_9 = arith.constant 0 : index
    %c0_10 = arith.constant 0 : index
    %10 = vector.load %arg6[%c0_9, %c0_10] : memref<1x32xf32, #tpu.memory_space<vmem>>, vector<1x32xf32>
    %11 = vector.broadcast %10 : vector<1x32xf32> to vector<128x32xf32>
    %12 = arith.addf %9, %11 : vector<128x32xf32>
    %13 = vector.extract_strided_slice %12 {offsets = [0, 0], sizes = [128, 16], strides = [1, 1]} : vector<128x32xf32> to vector<128x16xf32>
    %14 = vector.extract_strided_slice %12 {offsets = [0, 16], sizes = [128, 16], strides = [1, 1]} : vector<128x32xf32> to vector<128x16xf32>
    %15 = math.absf %14 : vector<128x16xf32>
    %cst_11 = arith.constant 0.000000e+00 : f32
    %16 = vector.broadcast %cst_11 : f32 to vector<128x16xf32>
    %17 = arith.subf %16, %15 : vector<128x16xf32>
    %18 = math.exp %17 : vector<128x16xf32>
    %19 = math.log1p %18 : vector<128x16xf32>
    %cst_12 = arith.constant 0.000000e+00 : f32
    %20 = vector.broadcast %cst_12 : f32 to vector<128x16xf32>
    %21 = arith.maximumf %14, %20 : vector<128x16xf32>
    %22 = arith.addf %19, %21 : vector<128x16xf32>
    %c0_13 = arith.constant 0 : index
    %c0_14 = arith.constant 0 : index
    %23 = vector.load %arg2[%c0_13, %c0_14] : memref<128x16xf32, #tpu.memory_space<vmem>>, vector<128x16xf32>
    %24 = arith.mulf %22, %23 : vector<128x16xf32>
    %25 = arith.addf %13, %24 : vector<128x16xf32>
    %c0_15 = arith.constant 0 : index
    %c0_16 = arith.constant 0 : index
    %26 = vector.load %arg7[%c0_15, %c0_16] : memref<16x128xf32, #tpu.memory_space<vmem>>, vector<16x128xf32>
    %cst_17 = arith.constant dense<0.000000e+00> : vector<128x128xf32>
    %27 = tpu.matmul %25, %26, %cst_17 {dimension_numbers = #tpu.dot_dimension_numbers<[1], [0], [0], [1], [0, 0, 1, 1], [], []>} : vector<128x16xf32>, vector<16x128xf32>, vector<128x128xf32> -> vector<128x128xf32>
    %c0_18 = arith.constant 0 : index
    %c0_19 = arith.constant 0 : index
    %28 = vector.load %arg8[%c0_18, %c0_19] : memref<1x128xf32, #tpu.memory_space<vmem>>, vector<1x128xf32>
    %29 = vector.broadcast %28 : vector<1x128xf32> to vector<128x128xf32>
    %30 = arith.addf %27, %29 : vector<128x128xf32>
    %cst_20 = arith.constant 0.000000e+00 : f32
    %31 = vector.broadcast %cst_20 : f32 to vector<128x128xf32>
    %32 = arith.maximumf %30, %31 : vector<128x128xf32>
    %c0_21 = arith.constant 0 : index
    %c0_22 = arith.constant 0 : index
    %33 = vector.load %arg9[%c0_21, %c0_22] : memref<128x784xf32, #tpu.memory_space<vmem>>, vector<128x784xf32>
    %cst_23 = arith.constant dense<0.000000e+00> : vector<128x784xf32>
    %34 = tpu.matmul %32, %33, %cst_23 {dimension_numbers = #tpu.dot_dimension_numbers<[1], [0], [0], [1], [0, 0, 1, 1], [], []>} : vector<128x128xf32>, vector<128x784xf32>, vector<128x784xf32> -> vector<128x784xf32>
    %c0_24 = arith.constant 0 : index
    %c0_25 = arith.constant 0 : index
    %35 = vector.load %arg10[%c0_24, %c0_25] : memref<1x784xf32, #tpu.memory_space<vmem>>, vector<1x784xf32>
    %36 = vector.broadcast %35 : vector<1x784xf32> to vector<128x784xf32>
    %37 = arith.addf %34, %36 : vector<128x784xf32>
    %cst_26 = arith.constant 0.000000e+00 : f32
    %38 = vector.broadcast %cst_26 : f32 to vector<128x80xf32>
    %39 = tpu.concatenate %13, %22, %25, %38 in 1 : vector<128x16xf32>, vector<128x16xf32>, vector<128x16xf32>, vector<128x80xf32> -> vector<128x128xf32>
    %c0_27 = arith.constant 0 : index
    %c0_28 = arith.constant 0 : index
    %40 = vector.load %arg11[%c0_27, %c0_28] : memref<128x128xf32, #tpu.memory_space<vmem>>, vector<128x128xf32>
    tpu.vector_store %arg11[%c0_27, %c0_28], %39 {strides = array<i32>} : memref<128x128xf32, #tpu.memory_space<vmem>>, vector<128x128xf32>,
    %c0_29 = arith.constant 0 : index
    %c0_30 = arith.constant 0 : index
    %41 = vector.load %arg12[%c0_29, %c0_30] : memref<128x784xf32, #tpu.memory_space<vmem>>, vector<128x784xf32>
    tpu.vector_store %arg12[%c0_29, %c0_30], %37 {strides = array<i32>} : memref<128x784xf32, #tpu.memory_space<vmem>>, vector<128x784xf32>,
    return
  }
  func.func @transform_0(%arg0: i32) -> (i32, i32) {
    %c0_i32 = arith.constant 0 : i32
    %c0_i32_0 = arith.constant 0 : i32
    return %arg0, %c0_i32 : i32, i32
  }
  func.func @transform_1(%arg0: i32) -> (i32, i32) {
    %c0_i32 = arith.constant 0 : i32
    %c0_i32_0 = arith.constant 0 : i32
    return %arg0, %c0_i32 : i32, i32
  }
  func.func @transform_2(%arg0: i32) -> (i32, i32) {
    %c0_i32 = arith.constant 0 : i32
    %c0_i32_0 = arith.constant 0 : i32
    %c0_i32_1 = arith.constant 0 : i32
    return %c0_i32, %c0_i32_0 : i32, i32
  }
  func.func @transform_3(%arg0: i32) -> (i32, i32) {
    %c0_i32 = arith.constant 0 : i32
    %c0_i32_0 = arith.constant 0 : i32
    %c0_i32_1 = arith.constant 0 : i32
    return %c0_i32, %c0_i32_0 : i32, i32
  }
  func.func @transform_4(%arg0: i32) -> (i32, i32) {
    %c0_i32 = arith.constant 0 : i32
    %c0_i32_0 = arith.constant 0 : i32
    %c0_i32_1 = arith.constant 0 : i32
    return %c0_i32, %c0_i32_0 : i32, i32
  }
  func.func @transform_5(%arg0: i32) -> (i32, i32) {
    %c0_i32 = arith.constant 0 : i32
    %c0_i32_0 = arith.constant 0 : i32
    %c0_i32_1 = arith.constant 0 : i32
    return %c0_i32, %c0_i32_0 : i32, i32
  }
  func.func @transform_6(%arg0: i32) -> (i32, i32) {
    %c0_i32 = arith.constant 0 : i32
    %c0_i32_0 = arith.constant 0 : i32
    %c0_i32_1 = arith.constant 0 : i32
    return %c0_i32, %c0_i32_0 : i32, i32
  }
  func.func @transform_7(%arg0: i32) -> (i32, i32) {
    %c0_i32 = arith.constant 0 : i32
    %c0_i32_0 = arith.constant 0 : i32
    %c0_i32_1 = arith.constant 0 : i32
    return %c0_i32, %c0_i32_0 : i32, i32
  }
  func.func @transform_8(%arg0: i32) -> (i32, i32) {
    %c0_i32 = arith.constant 0 : i32
    %c0_i32_0 = arith.constant 0 : i32
    %c0_i32_1 = arith.constant 0 : i32
    return %c0_i32, %c0_i32_0 : i32, i32
  }
  func.func @transform_9(%arg0: i32) -> (i32, i32) {
    %c0_i32 = arith.constant 0 : i32
    %c0_i32_0 = arith.constant 0 : i32
    %c0_i32_1 = arith.constant 0 : i32
    return %c0_i32, %c0_i32_0 : i32, i32
  }
  func.func @transform_10(%arg0: i32) -> (i32, i32) {
    %c0_i32 = arith.constant 0 : i32
    %c0_i32_0 = arith.constant 0 : i32
    return %arg0, %c0_i32 : i32, i32
  }
  func.func @transform_11(%arg0: i32) -> (i32, i32) {
    %c0_i32 = arith.constant 0 : i32
    %c0_i32_0 = arith.constant 0 : i32
    return %arg0, %c0_i32 : i32, i32
  }
}

</mosaic_0001>

<bundles_post_ra>
// kernel: tpu_custom_call.1
= control target key start
LH: loop header
LB: loop body
LE: loop exit
PB: predicated region body
PF: predicated region fallthrough
CT: control target
= control target key end

     0   :  { %17 = vsyncpa [#allocation3], 0  ;;  %s6059_s0 = inlined_call_operand.vmem [shape: f32[256,784], index: 0, kind: input, shape index: {}]   ;;  %s6060_s1 = inlined_call_operand.vmem [shape: f32[256,16], index: 1, kind: input, shape index: {}]   ;;  %s6061_s2 = inlined_call_operand.vmem [shape: f32[784,128], index: 2, kind: input, shape index: {}]   ;;  %s6062_s3 = inlined_call_operand.vmem [shape: f32[1,128], index: 3, kind: input, shape index: {}]   ;;  %s6063_s4 = inlined_call_operand.vmem [shape: f32[128,32], index: 4, kind: input, shape index: {}]   ;;  %s6064_s5 = inlined_call_operand.vmem [shape: f32[1,32], index: 5, kind: input, shape index: {}]   ;;  %s6065_s6 = inlined_call_operand.vmem [shape: f32[16,128], index: 6, kind: input, shape index: {}]   ;;  %s6066_s7 = inlined_call_operand.vmem [shape: f32[1,128], index: 7, kind: input, shape index: {}]   ;;  %s6067_s8 = inlined_call_operand.vmem [shape: f32[128,784], index: 8, kind: input, shape index: {}]   ;;  %s6068_s9 = inlined_call_operand.vmem [shape: f32[1,784], index: 9, kind: input, shape index: {}]   ;;  %s6069_s10 = inlined_call_operand.hbm [shape: f32[256,128], index: 10, kind: output, shape index: {0}]   ;;  %s6070_s11 = inlined_call_operand.vmem [shape: f32[256,784], index: 11, kind: output, shape index: {1}]  }
   0x1   :  { %19 = vsyncpa [#allocation3 + $0x1], 0  ;;  %s4019_s17 = smov 0   ;;  %s4021_s18 = smov 0  }
   0x2   :  { %s4023_s19 = smov 0   ;;  %s4025_s20 = smov 0  }
   0x3 LB: > { %6073 = sst [smem:[#allocation5_spill]] %s3946_s19  ;;  %s4040_s21 = sadd.s32 4294967295, %s3950_s20   ;;  %s3950_s20 = sphi %s4025_s20, %s6121_s20   ;;  %s3946_s19 = sphi %s4023_s19, %s6118_s19   ;;  %s3942_s18 = sphi %s4021_s18, %s6120_s18   ;;  %s3938_s17 = sphi %s4019_s17, %s6119_s17  }
   0x4   : > { %s3220_s22 = sadd.s32 4294967294, %s3950_s20   ;;  %s4044_s23 = sadd.s32 1, %s3950_s20  }
   0x5   : > { %s252_s24 = sadd.s32 1, %s3946_s19  ;;  %s249_s25 = ssub.s32 %s3950_s20, %s4044_s23 }
   0x6   : > { %p262_p0 = scmp.ne.s32.totalorder %s3946_s19, %s3942_s18  ;;  %p250_p1 = scmp.eq.s32.totalorder %s249_s25, 0 }
   0x7   : > { %p263_p2 = scmp.eq.s32.totalorder %s4040_s21, 1  ;;  %p268_p3 = scmp.ne.s32.totalorder %s3942_s18, %s3938_s17 }
   0x8   : > { %p269_p4 = scmp.eq.s32.totalorder %s3220_s22, 1  ;;  %p3223_p7 = scmp.ge.s32.totalorder %s3950_s20, 1 }
   0x9   : > { %s4055_s26 = scalar_select %p250_p1, %s3946_s19, %s252_s24  }
   0xa   : > { %p4057_p5 = por %p263_p2, %p262_p0  ;;  %p4061_p6 = por %p269_p4, %p268_p3 }
   0xb   : > { %6074 = sst [smem:[#allocation6_spill]] %s4055_s26  ;;  %p356_p8 = scmp.lt.s32.totalorder %s3950_s20, 3 }
   0xd   : > { %p357_p9 = pnand %p3223_p7, %p356_p8 }
   0xf   : > { %360 = sbr.rel (%p357_p9) target bundleno = 1215 (0x4bf), region = 60 }
  0x14   : > { %v572_v0 = vld [vmem:[%s6061_s2 + $0xf8] sm:$0xff]  ;;  %v571_v2 = vld [vmem:[%s6061_s2 + $0xf0] sm:$0xff]  ;;  %v570_v6 = vld [vmem:[%s6061_s2 + $0xe8] sm:$0xff]  ;;  %s6071_s16 = sshll.u32 %s4040_s21, 4  ;;  %s6078_s15 = sshll.u32 %s4040_s21, 4  ;;  %vm646_vm0 = vcmask 130048  }
  0x15   : > { %v556_v1 = vld [vmem:[%s6061_s2 + $0x78] sm:$0xff]  ;;  %3272 = vmatprep.subr.mxu0 %v572_v0  ;;  %v555_v4 = vld [vmem:[%s6061_s2 + $0x70] sm:$0xff]  ;;  %v554_v8 = vld [vmem:[%s6061_s2 + $0x68] sm:$0xff]  ;;  %p4163_p10 = scmp.lt.s32.totalorder %s6071_s16, 31  ;;  %s3952_s30 = smov 16  }
  0x16   : > { %v604_v3 = vld [vmem:[%s6061_s2 + $0x1f8] sm:$0xff]  ;;  %3273 = vmatpush3.msra.mxu0 %v556_v1  ;;  %v603_v7 = vld [vmem:[%s6061_s2 + $0x1f0] sm:$0xff]  ;;  %v602_v10 = vld [vmem:[%s6061_s2 + $0x1e8] sm:$0xff]  ;;  %s397_s13 = sand.u32 1, %s3942_s18  }
  0x17   : > { %v588_v5 = vld [vmem:[%s6061_s2 + $0x178] sm:$0xff]  ;;  %3352 = vmatprep.subr.mxu1 %v604_v3  ;;  %3274 = vmatprep.subr.mxu0 %v571_v2  ;;  %v587_v9 = vld [vmem:[%s6061_s2 + $0x170] sm:$0xff]  ;;  %v569_v11 = vld [vmem:[%s6061_s2 + $0xe0] sm:$0xff]  ;;  %s6123_s15 = smov (!%p4163_p10, %s6078_s15), 31  ;;  %s3224_s22 = sshll.u32 %s397_s13, 7 }
  0x18   : > { %3353 = vmatpush3.msra.mxu1 %v588_v5  ;;  %3275 = vmatpush3.msra.mxu0 %v555_v4  ;;  %v586_v12 = vld [vmem:[%s6061_s2 + $0x168] sm:$0xff]  ;;  %v553_v13 = vld [vmem:[%s6061_s2 + $0x60] sm:$0xff]  ;;  %v568_v15 = vld [vmem:[%s6061_s2 + $0xd8] sm:$0xff]  ;;  %s6079_s25 = smul.u32 56, %s6123_s15  ;;  %s3228_s19 = sshll.u32 %s6123_s15, 3 }
  0x19   : > { %3354 = vmatprep.subr.mxu1 %v603_v7  ;;  %3276 = vmatprep.subr.mxu0 %v570_v6  ;;  %v601_v14 = vld [vmem:[%s6061_s2 + $0x1e0] sm:$0xff]  ;;  %v552_v17 = vld [vmem:[%s6061_s2 + $0x58] sm:$0xff]  ;;  %v567_v19 = vld [vmem:[%s6061_s2 + $0xd0] sm:$0xff]  ;;  %s4578_s29 = scalar_lea.vmem %s6060_s1, %s3228_s19  ;;  %s5340_s19 = scalar_lea.vmem [#allocation2], %s3224_s22 }
  0x1a   : > { %3355 = vmatpush3.msra.mxu1 %v587_v9  ;;  %3277 = vmatpush3.msra.mxu0 %v554_v8  ;;  %v585_v16 = vld [vmem:[%s6061_s2 + $0x160] sm:$0xff]  ;;  %v600_v18 = vld [vmem:[%s6061_s2 + $0x1d8] sm:$0xff]  ;;  %v551_v21 = vld [vmem:[%s6061_s2 + $0x50] sm:$0xff]  ;;  %s4251_s26 = scalar_lea.vmem %s6059_s0, %s6079_s25  ;;  %s3953_s25 = smov 112  }
  0x1b   : > { %3356 = vmatprep.subr.mxu1 %v602_v10  ;;  %3278 = vmatprep.subr.mxu0 %v569_v11  ;;  %v584_v20 = vld [vmem:[%s6061_s2 + $0x158] sm:$0xff]  ;;  %v599_v22 = vld [vmem:[%s6061_s2 + $0x1d0] sm:$0xff]  ;;  %v566_v23 = vld [vmem:[%s6061_s2 + $0xc8] sm:$0xff]  ;;  %s6116_s14 = smul.u32 56, %s6123_s15  ;;  %s3271_s15 = sshll.u32 %s4040_s21, 11 }
  0x1c   : > { %3357 = vmatpush3.msra.mxu1 %v586_v12  ;;  %3279 = vmatpush3.msra.mxu0 %v553_v13  ;;  %v583_v24 = vld [vmem:[%s6061_s2 + $0x150] sm:$0xff]  ;;  %v550_v25 = vld [vmem:[%s6061_s2 + $0x48] sm:$0xff]  ;;  %v565_v27 = vld [vmem:[%s6061_s2 + $0xc0] sm:$0xff]  ;;  %s3116_s24 = sshll.u32 %s5340_s19, 4  ;;  %s5767_s12 = scalar_lea.hbm %s6069_s10, %s3271_s15  ;;  %s5769_s24 = int_to_ptr.vmem [resolvable:$true] %s3116_s24 }
  0x1d   : > { %3358 = vmatprep.subr.mxu1 %v601_v14  ;;  %3280 = vmatprep.subr.mxu0 %v568_v15  ;;  %v598_v26 = vld [vmem:[%s6061_s2 + $0x1c8] sm:$0xff]  ;;  %v549_v29 = vld [vmem:[%s6061_s2 + $0x40] sm:$0xff]  ;;  %v564_v31 = vld [vmem:[%s6061_s2 + $0xb8] sm:$0xff]  ;;  %s5777_s21 = scalar_lea.sflag [#allocation3], %s397_s13 }
  0x1e   : > { %3359 = vmatpush3.msra.mxu1 %v585_v16  ;;  %3281 = vmatpush3.msra.mxu0 %v552_v17  ;;  %v582_v28 = vld [vmem:[%s6061_s2 + $0x148] sm:$0xff]  ;;  %v597_v30 = vld [vmem:[%s6061_s2 + $0x1c0] sm:$0xff]  ;;  %v548_v33 = vld [vmem:[%s6061_s2 + $0x38] sm:$0xff] }
  0x1f   : > { %3360 = vmatprep.subr.mxu1 %v600_v18  ;;  %3282 = vmatprep.subr.mxu0 %v567_v19  ;;  %v581_v32 = vld [vmem:[%s6061_s2 + $0x140] sm:$0xff]  ;;  %v596_v34 = vld [vmem:[%s6061_s2 + $0x1b8] sm:$0xff]  ;;  %v563_v35 = vld [vmem:[%s6061_s2 + $0xb0] sm:$0xff] }
  0x20   : > { %3361 = vmatpush3.msra.mxu1 %v584_v20  ;;  %3283 = vmatpush3.msra.mxu0 %v551_v21  ;;  %v580_v36 = vld [vmem:[%s6061_s2 + $0x138] sm:$0xff]  ;;  %v547_v37 = vld [vmem:[%s6061_s2 + $0x30] sm:$0xff]  ;;  %v562_v39 = vld [vmem:[%s6061_s2 + $0xa8] sm:$0xff] }
  0x21   : > { %3362 = vmatprep.subr.mxu1 %v599_v22  ;;  %3284 = vmatprep.subr.mxu0 %v566_v23  ;;  %v595_v38 = vld [vmem:[%s6061_s2 + $0x1b0] sm:$0xff]  ;;  %v546_v41 = vld [vmem:[%s6061_s2 + $0x28] sm:$0xff]  ;;  %v561_v43 = vld [vmem:[%s6061_s2 + $0xa0] sm:$0xff] }
  0x22   : > { %3363 = vmatpush3.msra.mxu1 %v583_v24  ;;  %3285 = vmatpush3.msra.mxu0 %v550_v25  ;;  %v579_v40 = vld [vmem:[%s6061_s2 + $0x130] sm:$0xff]  ;;  %v594_v42 = vld [vmem:[%s6061_s2 + $0x1a8] sm:$0xff]  ;;  %v545_v45 = vld [vmem:[%s6061_s2 + $0x20] sm:$0xff] }
  0x23   : > { %3364 = vmatprep.subr.mxu1 %v598_v26  ;;  %3286 = vmatprep.subr.mxu0 %v565_v27  ;;  %v578_v44 = vld [vmem:[%s6061_s2 + $0x128] sm:$0xff]  ;;  %v593_v46 = vld [vmem:[%s6061_s2 + $0x1a0] sm:$0xff]  ;;  %v560_v47 = vld [vmem:[%s6061_s2 + $0x98] sm:$0xff] }
  0x24   : > { %3365 = vmatpush3.msra.mxu1 %v582_v28  ;;  %3287 = vmatpush3.msra.mxu0 %v549_v29  ;;  %v577_v48 = vld [vmem:[%s6061_s2 + $0x120] sm:$0xff]  ;;  %v544_v49 = vld [vmem:[%s6061_s2 + $0x18] sm:$0xff]  ;;  %v559_v51 = vld [vmem:[%s6061_s2 + $0x90] sm:$0xff] }
  0x25   : > { %3366 = vmatprep.subr.mxu1 %v597_v30  ;;  %3288 = vmatprep.subr.mxu0 %v564_v31  ;;  %v592_v50 = vld [vmem:[%s6061_s2 + $0x198] sm:$0xff]  ;;  %v543_v53 = vld [vmem:[%s6061_s2 + $0x10] sm:$0xff]  ;;  %v558_v55 = vld [vmem:[%s6061_s2 + $0x88] sm:$0xff] }
  0x26   : > { %3367 = vmatpush3.msra.mxu1 %v581_v32  ;;  %3289 = vmatpush3.msra.mxu0 %v548_v33  ;;  %v576_v52 = vld [vmem:[%s6061_s2 + $0x118] sm:$0xff]  ;;  %v591_v54 = vld [vmem:[%s6061_s2 + $0x190] sm:$0xff]  ;;  %v542_v57 = vld [vmem:[%s6061_s2 + $0x8] sm:$0xff] }
  0x27   : > { %3368 = vmatprep.subr.mxu1 %v596_v34  ;;  %3290 = vmatprep.subr.mxu0 %v563_v35  ;;  %v575_v56 = vld [vmem:[%s6061_s2 + $0x110] sm:$0xff]  ;;  %v590_v58 = vld [vmem:[%s6061_s2 + $0x188] sm:$0xff]  ;;  %v557_v59 = vld [vmem:[%s6061_s2 + $0x80] sm:$0xff] }
  0x28   : > { %3369 = vmatpush3.msra.mxu1 %v580_v36  ;;  %3291 = vmatpush3.msra.mxu0 %v547_v37  ;;  %v430_v60 = vld [vmem:[%s4251_s26 + $0x8] sm:$0xff]  ;;  %v541_v61 = vld [vmem:[%s6061_s2] sm:$0xff]  ;;  %v636_v1 = vld [vmem:[%s6061_s2 + $0x2f8] sm:$0xff] }
  0x29   : > { %3370 = vmatprep.subr.mxu1 %v595_v38  ;;  %3292 = vmatprep.subr.mxu0 %v562_v39  ;;  %v574_v62 = vld [vmem:[%s6061_s2 + $0x108] sm:$0xff]  ;;  %v429_v63 = vld [vmem:[%s4251_s26] sm:$0xff]  ;;  %v432_v3 = vld [vmem:[%s4251_s26 + $0x18] sm:$0xff] }
  0x2a   : > { %3371 = vmatpush3.msra.mxu1 %v579_v40  ;;  %3293 = vmatpush3.msra.mxu0 %v546_v41  ;;  %v589_v0 = vld [vmem:[%s6061_s2 + $0x180] sm:$0xff]  ;;  %v620_v4 = vld [vmem:[%s6061_s2 + $0x278] sm:$0xff]  ;;  %v431_v5 = vld [vmem:[%s4251_s26 + $0x10] sm:$0xff] }
  0x2b   : > { %3372 = vmatprep.subr.mxu1 %v594_v42  ;;  %3294 = vmatprep.subr.mxu0 %v561_v43  ;;  %v573_v2 = vld [vmem:[%s6061_s2 + $0x100] sm:$0xff]  ;;  %v436_v7 = vld [vmem:[%s4251_s26 + $0x38] sm:$0xff]  ;;  %v635_v8 = vld [vmem:[%s6061_s2 + $0x2f0] sm:$0xff] }
  0x2c   : > { %3373 = vmatpush3.msra.mxu1 %v578_v44  ;;  %3295 = vmatpush3.msra.mxu0 %v545_v45  ;;  %v437_v6 = vld [vmem:[%s4251_s26 + $0x40] sm:$0xff]  ;;  %v439_v9 = vld [vmem:[%s4251_s26 + $0x50] sm:$0xff]  ;;  %v444_v11 = vld [vmem:[%s4251_s26 + $0x78] sm:$0xff] }
  0x2d   : > { %3374 = vmatprep.subr.mxu1 %v593_v46  ;;  %3296 = vmatprep.subr.mxu0 %v560_v47  ;;  %v619_v10 = vld [vmem:[%s6061_s2 + $0x270] sm:$0xff]  ;;  %v638_v12 = vld [vmem:[%s6061_s2 + $0x308] sm:$0xff]  ;;  %v633_v19 = vld [vmem:[%s6061_s2 + $0x2e0] sm:$0xff] }
  0x2e   : > { %3375 = vmatpush3.msra.mxu1 %v577_v48  ;;  %3297 = vmatpush3.msra.mxu0 %v544_v49  ;;  %v438_v13 = vld [vmem:[%s4251_s26 + $0x48] sm:$0xff]  ;;  %v443_v15 = vld [vmem:[%s4251_s26 + $0x70] sm:$0xff]  ;;  %v445_v20 = vld [vmem:[%s4251_s26 + $0x80] sm:$0xff] }
  0x2f   : > { %3376 = vmatprep.subr.mxu1 %v592_v50  ;;  %3298 = vmatprep.subr.mxu0 %v559_v51  ;;  %v634_v14 = vld [vmem:[%s6061_s2 + $0x2e8] sm:$0xff]  ;;  %v451_v18 = vld [vmem:[%s4251_s26 + $0xb0] sm:$0xff]  ;;  %v617_v21 = vld [vmem:[%s6061_s2 + $0x260] sm:$0xff] }
  0x30   : > { %3377 = vmatpush3.msra.mxu1 %v576_v52  ;;  %3299 = vmatpush3.msra.mxu0 %v543_v53  ;;  %v446_v16 = vld [vmem:[%s4251_s26 + $0x88] sm:$0xff]  ;;  %v453_v23 = vld [vmem:[%s4251_s26 + $0xc0] sm:$0xff]  ;;  %v632_v25 = vld [vmem:[%s6061_s2 + $0x2d8] sm:$0xff] }
  0x31   : > { %3378 = vmatprep.subr.mxu1 %v591_v54  ;;  %3300 = vmatprep.subr.mxu0 %v558_v55  ;;  %v618_v17 = vld [vmem:[%s6061_s2 + $0x268] sm:$0xff]  ;;  %v616_v26 = vld [vmem:[%s6061_s2 + $0x258] sm:$0xff]  ;;  %v637_v27 = vld [vmem:[%s6061_s2 + $0x300] sm:$0xff] }
  0x32   : > { %3379 = vmatpush3.msra.mxu1 %v575_v56  ;;  %3301 = vmatpush3.msra.mxu0 %v542_v57  ;;  %v450_v22 = vld [vmem:[%s4251_s26 + $0xa8] sm:$0xff]  ;;  %v452_v28 = vld [vmem:[%s4251_s26 + $0xb8] sm:$0xff]  ;;  %v631_v29 = vld [vmem:[%s6061_s2 + $0x2d0] sm:$0xff] }
  0x33   : > { %3380 = vmatprep.subr.mxu1 %v590_v58  ;;  %3302 = vmatprep.subr.mxu0 %v557_v59  ;;  %v458_v24 = vld [vmem:[%s4251_s26 + $0xe8] sm:$0xff]  ;;  %v457_v30 = vld [vmem:[%s4251_s26 + $0xe0] sm:$0xff]  ;;  %v460_v31 = vld [vmem:[%s4251_s26 + $0xf8] sm:$0xff] }
  0x34   : > { %759 = vmatprep.mubr.f32.mxu0 %v430_v60  ;;  %3303 = vmatpush3.msra.mxu0 %v541_v61  ;;  %v465_v32 = vld [vmem:[%s4251_s26 + $0x120] sm:$0xff]  ;;  %v615_v33 = vld [vmem:[%s6061_s2 + $0x250] sm:$0xff]  ;;  %v630_v34 = vld [vmem:[%s6061_s2 + $0x2c8] sm:$0xff] }
  0x35   : > { %3381 = vmatpush3.msra.mxu1 %v574_v62  ;;  %760 = vmatmul.mubr.f32.vlgmr.msra.gmra.mxu0 %v429_v63  ;;  %v459_v35 = vld [vmem:[%s4251_s26 + $0xf0] sm:$0xff]  ;;  %v614_v36 = vld [vmem:[%s6061_s2 + $0x248] sm:$0xff]  ;;  %v464_v37 = vld [vmem:[%s4251_s26 + $0x118] sm:$0xff] }
  0x36   : > { %3382 = vmatprep.subr.mxu1 %v589_v0  ;;  %3432 = vmatprep.subr.mxu0 %v636_v1  ;;  %v467_v38 = vld [vmem:[%s4251_s26 + $0x130] sm:$0xff]  ;;  %v472_v39 = vld [vmem:[%s4251_s26 + $0x158] sm:$0xff]  ;;  %v629_v40 = vld [vmem:[%s6061_s2 + $0x2c0] sm:$0xff] }
  0x37   : > { %3383 = vmatpush3.msra.mxu1 %v573_v2  ;;  %904 = vmatprep.mubr.f32.mxu1 %v432_v3  ;;  %v613_v41 = vld [vmem:[%s6061_s2 + $0x240] sm:$0xff]  ;;  %v466_v42 = vld [vmem:[%s4251_s26 + $0x128] sm:$0xff]  ;;  %v628_v43 = vld [vmem:[%s6061_s2 + $0x2b8] sm:$0xff] }
  0x38   : > { %3433 = vmatpush3.msra.mxu0 %v620_v4  ;;  %905 = vmatmul.mubr.f32.vlgmr.msra.gmra.mxu1 %v431_v5  ;;  %v471_v44 = vld [vmem:[%s4251_s26 + $0x150] sm:$0xff]  ;;  %v474_v45 = vld [vmem:[%s4251_s26 + $0x168] sm:$0xff]  ;;  %v612_v47 = vld [vmem:[%s6061_s2 + $0x238] sm:$0xff] }
  0x39   : > { %764 = vmatprep.mubr.f32.mxu0 %v437_v6  ;;  %3434 = vmatprep.subr.mxu0 %v635_v8  ;;  %v479_v46 = vld [vmem:[%s4251_s26 + $0x190] sm:$0xff]  ;;  %v473_v49 = vld [vmem:[%s4251_s26 + $0x160] sm:$0xff]  ;;  %v478_v51 = vld [vmem:[%s4251_s26 + $0x188] sm:$0xff] }
  0x3a   : > { %765 = vmatmul.mubr.f32.gmra.mxu0 %v436_v7  ;;  %909 = vmatprep.mubr.f32.mxu1 %v439_v9  ;;  %v627_v48 = vld [vmem:[%s6061_s2 + $0x2b0] sm:$0xff]  ;;  %v481_v52 = vld [vmem:[%s4251_s26 + $0x1a0] sm:$0xff]  ;;  %v486_v53 = vld [vmem:[%s4251_s26 + $0x1c8] sm:$0xff] }
  0x3b   : > { %3435 = vmatpush3.msra.mxu0 %v619_v10  ;;  %769 = vmatprep.mubr.f32.mxu0 %v444_v11  ;;  %v611_v50 = vld [vmem:[%s6061_s2 + $0x230] sm:$0xff]  ;;  %v626_v54 = vld [vmem:[%s6061_s2 + $0x2a8] sm:$0xff]  ;;  %v480_v56 = vld [vmem:[%s4251_s26 + $0x198] sm:$0xff] }
  0x3c   : > { %3612 = vmatprep.subr.mxu1 %v638_v12  ;;  %910 = vmatmul.mubr.f32.gmra.mxu1 %v438_v13  ;;  %v610_v55 = vld [vmem:[%s6061_s2 + $0x228] sm:$0xff]  ;;  %v625_v57 = vld [vmem:[%s6061_s2 + $0x2a0] sm:$0xff]  ;;  %v488_v59 = vld [vmem:[%s4251_s26 + $0x1d8] sm:$0xff] }
  0x3d   : > { %3436 = vmatprep.subr.mxu0 %v634_v14  ;;  %3613 = vmatpush3.msra.mxu1 %v638_v12  ;;  %v485_v58 = vld [vmem:[%s4251_s26 + $0x1c0] sm:$0xff]  ;;  %v624_v62 = vld [vmem:[%s6061_s2 + $0x298] sm:$0xff]  ;;  %v487_v63 = vld [vmem:[%s4251_s26 + $0x1d0] sm:$0xff] }
  0x3e   : > { %770 = vmatmul.mubr.f32.gmra.mxu0 %v443_v15  ;;  %914 = vmatprep.mubr.f32.mxu1 %v446_v16  ;;  %v493_v60 = vld [vmem:[%s4251_s26 + $0x200] sm:$0xff]  ;;  %v608_v0 = vld [vmem:[%s6061_s2 + $0x218] sm:$0xff]  ;;  %v495_v2 = vld [vmem:[%s4251_s26 + $0x210] sm:$0xff] }
  0x3f   : > { %3437 = vmatpush3.msra.mxu0 %v618_v17  ;;  %774 = vmatprep.mubr.f32.mxu0 %v451_v18  ;;  %v609_v61 = vld [vmem:[%s6061_s2 + $0x220] sm:$0xff]  ;;  %v492_v1 = vld [vmem:[%s4251_s26 + $0x1f8] sm:$0xff]  ;;  %v623_v4 = vld [vmem:[%s6061_s2 + $0x290] sm:$0xff] }
  0x40   : > { %3438 = vmatprep.subr.mxu0 %v633_v19  ;;  %915 = vmatmul.mubr.f32.gmra.mxu1 %v445_v20  ;;  %v500_v3 = vld [vmem:[%s4251_s26 + $0x238] sm:$0xff]  ;;  %v607_v5 = vld [vmem:[%s6061_s2 + $0x210] sm:$0xff]  ;;  %v494_v6 = vld [vmem:[%s4251_s26 + $0x208] sm:$0xff] }
  0x41   : > { %3439 = vmatpush3.msra.mxu0 %v617_v21  ;;  %919 = vmatprep.mubr.f32.mxu1 %v453_v23  ;;  %v622_v7 = vld [vmem:[%s6061_s2 + $0x288] sm:$0xff]  ;;  %v499_v8 = vld [vmem:[%s4251_s26 + $0x230] sm:$0xff]  ;;  %v621_v12 = vld [vmem:[%s6061_s2 + $0x280] sm:$0xff] }
  0x42   : > { %775 = vmatmul.mubr.f32.gmra.mxu0 %v450_v22  ;;  %3440 = vmatprep.subr.mxu0 %v632_v25  ;;  %v502_v9 = vld [vmem:[%s4251_s26 + $0x248] sm:$0xff]  ;;  %v507_v10 = vld [vmem:[%s4251_s26 + $0x270] sm:$0xff]  ;;  %v501_v13 = vld [vmem:[%s4251_s26 + $0x240] sm:$0xff] }
  0x43   : > { %779 = vmatprep.mubr.f32.mxu0 %v458_v24  ;;  %3441 = vmatpush3.msra.mxu0 %v616_v26  ;;  %v606_v11 = vld [vmem:[%s6061_s2 + $0x208] sm:$0xff]  ;;  %v605_v14 = vld [vmem:[%s6061_s2 + $0x200] sm:$0xff]  ;;  %v508_v18 = vld [vmem:[%s4251_s26 + $0x278] sm:$0xff] }
  0x44   : > { %3614 = vmatprep.subr.mxu1 %v637_v27  ;;  %920 = vmatmul.mubr.f32.gmra.mxu1 %v452_v28  ;;  %v506_v15 = vld [vmem:[%s4251_s26 + $0x268] sm:$0xff]  ;;  %v509_v16 = vld [vmem:[%s4251_s26 + $0x280] sm:$0xff]  ;;  %v516_v20 = vld [vmem:[%s4251_s26 + $0x2b8] sm:$0xff] }
  0x45   : > { %3442 = vmatprep.subr.mxu0 %v631_v29  ;;  %924 = vmatprep.mubr.f32.mxu1 %v460_v31  ;;  %v514_v17 = vld [vmem:[%s4251_s26 + $0x2a8] sm:$0xff]  ;;  %v513_v19 = vld [vmem:[%s4251_s26 + $0x2a0] sm:$0xff]  ;;  %v515_v22 = vld [vmem:[%s4251_s26 + $0x2b0] sm:$0xff] }
  0x46   : > { %780 = vmatmul.mubr.f32.gmra.mxu0 %v457_v30  ;;  %3615 = vmatpush3.msra.mxu1 %v637_v27  ;;  %v521_v21 = vld [vmem:[%s4251_s26 + $0x2e0] sm:$0xff]  ;;  %v520_v23 = vld [vmem:[%s4251_s26 + $0x2d8] sm:$0xff]  ;;  %v523_v24 = vld [vmem:[%s4251_s26 + $0x2f0] sm:$0xff] }
  0x47   : > { %784 = vmatprep.mubr.f32.mxu0 %v465_v32  ;;  %3443 = vmatpush3.msra.mxu0 %v615_v33  ;;  %v528_v25 = vld [vmem:[%s4251_s26 + $0x318] sm:$0xff]  ;;  %v522_v26 = vld [vmem:[%s4251_s26 + $0x2e8] sm:$0xff]  ;;  %v527_v27 = vld [vmem:[%s4251_s26 + $0x310] sm:$0xff] }
  0x48   : > { %3444 = vmatprep.subr.mxu0 %v630_v34  ;;  %925 = vmatmul.mubr.f32.gmra.mxu1 %v459_v35  ;;  %v530_v28 = vld [vmem:[%s4251_s26 + $0x328] sm:$0xff]  ;;  %v535_v29 = vld [vmem:[%s4251_s26 + $0x350] sm:$0xff]  ;;  %v529_v30 = vld [vmem:[%s4251_s26 + $0x320] sm:$0xff] }
  0x49   : > { %3445 = vmatpush3.msra.mxu0 %v614_v36  ;;  %929 = vmatprep.mubr.f32.mxu1 %v467_v38  ;;  %v534_v31 = vld [vmem:[%s4251_s26 + $0x348] sm:$0xff]  ;;  %v537_v32 = vld [vmem:[%s4251_s26 + $0x360] sm:$0xff]  ;;  %v536_v34 = vld [vmem:[%s4251_s26 + $0x358] sm:$0xff] }
  0x4a   : > { %785 = vmatmul.mubr.f32.gmra.mxu0 %v464_v37  ;;  %3446 = vmatprep.subr.mxu0 %v629_v40  ;;  %v434_v33 = vld [vmem:[%s4251_s26 + $0x28] sm:$0xff]  ;;  %v433_v35 = vld [vmem:[%s4251_s26 + $0x20] sm:$0xff]  ;;  %v435_v36 = vld [vmem:[%s4251_s26 + $0x30] sm:$0xff] }
  0x4b   : > { %789 = vmatprep.mubr.f32.mxu0 %v472_v39  ;;  %3447 = vmatpush3.msra.mxu0 %v613_v41  ;;  %v441_v37 = vld [vmem:[%s4251_s26 + $0x60] sm:$0xff]  ;;  %v442_v38 = vld [vmem:[%s4251_s26 + $0x68] sm:$0xff]  ;;  %v440_v39 = vld [vmem:[%s4251_s26 + $0x58] sm:$0xff] }
  0x4c   : > { %930 = vmatmul.mubr.f32.gmra.mxu1 %v466_v42  ;;  %3448 = vmatprep.subr.mxu0 %v628_v43  ;;  %v449_v40 = vld [vmem:[%s4251_s26 + $0xa0] sm:$0xff]  ;;  %v448_v41 = vld [vmem:[%s4251_s26 + $0x98] sm:$0xff]  ;;  %v447_v43 = vld [vmem:[%s4251_s26 + $0x90] sm:$0xff] }
  0x4d   : > { %934 = vmatprep.mubr.f32.mxu1 %v474_v45  ;;  %3449 = vmatpush3.msra.mxu0 %v612_v47  ;;  %v456_v42 = vld [vmem:[%s4251_s26 + $0xd8] sm:$0xff]  ;;  %v455_v45 = vld [vmem:[%s4251_s26 + $0xd0] sm:$0xff]  ;;  %v454_v47 = vld [vmem:[%s4251_s26 + $0xc8] sm:$0xff] }
  0x4e   : > { %790 = vmatmul.mubr.f32.gmra.mxu0 %v471_v44  ;;  %3450 = vmatprep.subr.mxu0 %v627_v48  ;;  %v463_v44 = vld [vmem:[%s4251_s26 + $0x110] sm:$0xff]  ;;  %v477_v48 = vld [vmem:[%s4251_s26 + $0x180] sm:$0xff] }
  0x4f   : > { %794 = vmatprep.mubr.f32.mxu0 %v479_v46  ;;  %3451 = vmatpush3.msra.mxu0 %v611_v50  ;;  %v470_v46 = vld [vmem:[%s4251_s26 + $0x148] sm:$0xff]  ;;  %v484_v50 = vld [vmem:[%s4251_s26 + $0x1b8] sm:$0xff] }
  0x50   : > { %935 = vmatmul.mubr.f32.gmra.mxu1 %v473_v49  ;;  %3452 = vmatprep.subr.mxu0 %v626_v54  ;;  %v462_v49 = vld [vmem:[%s4251_s26 + $0x108] sm:$0xff] }
  0x51   : > { %939 = vmatprep.mubr.f32.mxu1 %v481_v52  ;;  %3453 = vmatpush3.msra.mxu0 %v610_v55  ;;  %v491_v52 = vld [vmem:[%s4251_s26 + $0x1f0] sm:$0xff]  ;;  %v498_v54 = vld [vmem:[%s4251_s26 + $0x228] sm:$0xff]  ;;  %v468_v55 = vld [vmem:[%s4251_s26 + $0x138] sm:$0xff] }
  0x52   : > { %795 = vmatmul.mubr.f32.gmra.mxu0 %v478_v51  ;;  %3454 = vmatprep.subr.mxu0 %v625_v57  ;;  %v461_v51 = vld [vmem:[%s4251_s26 + $0x100] sm:$0xff]  ;;  %v476_v57 = vld [vmem:[%s4251_s26 + $0x178] sm:$0xff] }
  0x53   : > { %799 = vmatprep.mubr.f32.mxu0 %v486_v53  ;;  %3455 = vmatpush3.msra.mxu0 %v609_v61  ;;  %v469_v53 = vld [vmem:[%s4251_s26 + $0x140] sm:$0xff]  ;;  %v483_v61 = vld [vmem:[%s4251_s26 + $0x1b0] sm:$0xff] }
  0x54   : > { %940 = vmatmul.mubr.f32.gmra.mxu1 %v480_v56  ;;  %3456 = vmatprep.subr.mxu0 %v624_v62  ;;  %v505_v56 = vld [vmem:[%s4251_s26 + $0x260] sm:$0xff]  ;;  %v526_v62 = vld [vmem:[%s4251_s26 + $0x308] sm:$0xff] }
  0x55   : > { %944 = vmatprep.mubr.f32.mxu1 %v488_v59  ;;  %3457 = vmatpush3.msra.mxu0 %v608_v0  ;;  %v475_v59 = vld [vmem:[%s4251_s26 + $0x170] sm:$0xff]  ;;  %v533_v0 = vld [vmem:[%s4251_s26 + $0x340] sm:$0xff] }
  0x56   : > { %800 = vmatmul.mubr.f32.gmra.mxu0 %v485_v58  ;;  %3458 = vmatprep.subr.mxu0 %v623_v4  ;;  %v512_v58 = vld [vmem:[%s4251_s26 + $0x298] sm:$0xff]  ;;  %v497_v4 = vld [vmem:[%s4251_s26 + $0x220] sm:$0xff] }
  0x57   : > { %804 = vmatprep.mubr.f32.mxu0 %v493_v60  ;;  %3459 = vmatpush3.msra.mxu0 %v607_v5  ;;  %v519_v60 = vld [vmem:[%s4251_s26 + $0x2d0] sm:$0xff]  ;;  %v496_v5 = vld [vmem:[%s4251_s26 + $0x218] sm:$0xff] }
  0x58   : > { %945 = vmatmul.mubr.f32.gmra.mxu1 %v487_v63  ;;  %3460 = vmatprep.subr.mxu0 %v622_v7  ;;  %v482_v63 = vld [vmem:[%s4251_s26 + $0x1a8] sm:$0xff]  ;;  %v503_v7 = vld [vmem:[%s4251_s26 + $0x250] sm:$0xff] }
  0x59   : > { %949 = vmatprep.mubr.f32.mxu1 %v495_v2  ;;  %3461 = vmatpush3.msra.mxu0 %v606_v11  ;;  %v540_v2 = vld [vmem:[%s4251_s26 + $0x378] sm:$0xff]  ;;  %v517_v11 = vld [vmem:[%s4251_s26 + $0x2c0] sm:$0xff] }
  0x5a   : > { %805 = vmatmul.mubr.f32.gmra.mxu0 %v492_v1  ;;  %3462 = vmatprep.subr.mxu0 %v621_v12  ;;  %v490_v1 = vld [vmem:[%s4251_s26 + $0x1e8] sm:$0xff]  ;;  %v525_v12 = vld [vmem:[%s4251_s26 + $0x300] sm:$0xff] }
  0x5b   : > { %809 = vmatprep.mubr.f32.mxu0 %v500_v3  ;;  %3463 = vmatpush3.msra.mxu0 %v605_v14  ;;  %v489_v3 = vld [vmem:[%s4251_s26 + $0x1e0] sm:$0xff]  ;;  %v524_v14 = vld [vmem:[%s4251_s26 + $0x2f8] sm:$0xff] }
  0x5c   : > { %950 = vmatmul.mubr.f32.gmra.mxu1 %v494_v6  ;;  %v504_v6 = vld [vmem:[%s4251_s26 + $0x258] sm:$0xff] }
  0x5d   : > { %954 = vmatprep.mubr.f32.mxu1 %v502_v9  ;;  %v510_v9 = vld [vmem:[%s4251_s26 + $0x288] sm:$0xff] }
  0x5e   : > { %810 = vmatmul.mubr.f32.gmra.mxu0 %v499_v8  ;;  %v511_v8 = vld [vmem:[%s4251_s26 + $0x290] sm:$0xff] }
  0x5f   : > { %814 = vmatprep.mubr.f32.mxu0 %v507_v10  ;;  %v518_v10 = vld [vmem:[%s4251_s26 + $0x2c8] sm:$0xff] }
  0x60   : > { %955 = vmatmul.mubr.f32.gmra.mxu1 %v501_v13  ;;  %v1306_v13 = vld [vmem:[%s6063_s4 + $0x78] sm:$0xff] }
  0x61   : > { %959 = vmatprep.mubr.f32.mxu1 %v509_v16  ;;  %3640 = vmatprep.subr.mxu1 %v1306_v13  ;;  %v532_v16 = vld [vmem:[%s4251_s26 + $0x338] sm:$0xff] }
  0x62   : > { %815 = vmatmul.mubr.f32.gmra.mxu0 %v506_v15  ;;  %v1305_v15 = vld [vmem:[%s6063_s4 + $0x70] sm:$0xff] }
  0x63   : > { %819 = vmatprep.mubr.f32.mxu0 %v514_v17  ;;  %v1304_v17 = vld [vmem:[%s6063_s4 + $0x68] sm:$0xff] }
  0x64   : > { %960 = vmatmul.mubr.f32.gmra.mxu1 %v508_v18  ;;  %v531_v18 = vld [vmem:[%s4251_s26 + $0x330] sm:$0xff] }
  0x65   : > { %964 = vmatprep.mubr.f32.mxu1 %v516_v20  ;;  %v539_v20 = vld [vmem:[%s4251_s26 + $0x370] sm:$0xff] }
  0x66   : > { %820 = vmatmul.mubr.f32.gmra.mxu0 %v513_v19  ;;  %v1303_v19 = vld [vmem:[%s6063_s4 + $0x60] sm:$0xff] }
  0x67   : > { %824 = vmatprep.mubr.f32.mxu0 %v521_v21  ;;  %v1302_v21 = vld [vmem:[%s6063_s4 + $0x58] sm:$0xff] }
  0x68   : > { %965 = vmatmul.mubr.f32.gmra.mxu1 %v515_v22  ;;  %v538_v22 = vld [vmem:[%s4251_s26 + $0x368] sm:$0xff]  ;;  %s3956_s26 = smov [#allocation2]  }
  0x69   : > { %969 = vmatprep.mubr.f32.mxu1 %v523_v24  ;;  %v1300_v24 = vld [vmem:[%s6063_s4 + $0x48] sm:$0xff] }
  0x6a   : > { %825 = vmatmul.mubr.f32.gmra.mxu0 %v520_v23  ;;  %v1301_v23 = vld [vmem:[%s6063_s4 + $0x50] sm:$0xff] }
  0x6b   : > { %829 = vmatprep.mubr.f32.mxu0 %v528_v25  ;;  %v1299_v25 = vld [vmem:[%s6063_s4 + $0x40] sm:$0xff] }
  0x6c   : > { %970 = vmatmul.mubr.f32.gmra.mxu1 %v522_v26  ;;  %v1298_v26 = vld [vmem:[%s6063_s4 + $0x38] sm:$0xff] }
  0x6d   : > { %974 = vmatprep.mubr.f32.mxu1 %v530_v28  ;;  %v1296_v28 = vld [vmem:[%s6063_s4 + $0x28] sm:$0xff] }
  0x6e   : > { %830 = vmatmul.mubr.f32.gmra.mxu0 %v527_v27  ;;  %v1297_v27 = vld [vmem:[%s6063_s4 + $0x30] sm:$0xff] }
  0x6f   : > { %834 = vmatprep.mubr.f32.mxu0 %v535_v29  ;;  %v1295_v29 = vld [vmem:[%s6063_s4 + $0x20] sm:$0xff] }
  0x70   : > { %975 = vmatmul.mubr.f32.gmra.mxu1 %v529_v30  ;;  %v1294_v30 = vld [vmem:[%s6063_s4 + $0x18] sm:$0xff] }
  0x71   : > { %979 = vmatprep.mubr.f32.mxu1 %v537_v32  ;;  %v1292_v32 = vld [vmem:[%s6063_s4 + $0x8] sm:$0xff] }
  0x72   : > { %835 = vmatmul.mubr.f32.gmra.mxu0 %v534_v31  ;;  %v1293_v31 = vld [vmem:[%s6063_s4 + $0x10] sm:$0xff] }
  0x73   : > { %1049 = vmatprep.mubr.f32.mxu0 %v434_v33  ;;  %v1291_v33 = vld [vmem:[%s6063_s4] sm:$0xff] }
  0x74   : > { %980 = vmatmul.mubr.f32.gmra.mxu1 %v536_v34 }
  0x75   : > { %3616 = vmatprep.mubr.msk.f32.mxu1 %vm646_vm0, %v435_v36 }
  0x76   : > { %1050 = vmatmul.mubr.f32.vlgmr.msra.gmra.mxu0 %v433_v35 }
  0x77   : > { %1054 = vmatprep.mubr.f32.mxu0 %v441_v37 }
  0x78   : > { %3617 = vmatmul.mubr.msk.f32.vlgmr.msra.gmra.mxu1 %vm646_vm0, %v442_v38 }
  0x79   : > { %3619 = vmatprep.mubr.msk.f32.mxu1 %vm646_vm0, %v449_v40  ;;  %3641 = vmatpush3.msra.mxu1 %v1306_v13  ;;  %v1712_v13 = vld [vmem:[%s4578_s29 + $0x68] sm:$0xff] }
  0x7a   : > { %1055 = vmatmul.mubr.f32.gmra.mxu0 %v440_v39  ;;  %3642 = vmatprep.subr.mxu1 %v1305_v15 }
  0x7b   : > { %1059 = vmatprep.mubr.f32.mxu0 %v448_v41  ;;  %3643 = vmatpush3.msra.mxu1 %v1305_v15 }
  0x7c   : > { %3620 = vmatmul.mubr.msk.f32.gmra.mxu1 %vm646_vm0, %v456_v42  ;;  %3644 = vmatprep.subr.mxu1 %v1304_v17 }
  0x7d   : > { %3622 = vmatprep.mubr.msk.f32.mxu1 %vm646_vm0, %v463_v44  ;;  %3645 = vmatpush3.msra.mxu1 %v1304_v17  ;;  %v1701_v44 = vld [vmem:[%s4578_s29 + $0x10] sm:$0xff] }
  0x7e   : > { %1060 = vmatmul.mubr.f32.gmra.mxu0 %v447_v43  ;;  %3646 = vmatprep.subr.mxu1 %v1303_v19  ;;  %v1699_v43 = vld [vmem:[%s4578_s29] sm:$0xff] }
  0x7f   : > { %1064 = vmatprep.mubr.f32.mxu0 %v455_v45  ;;  %3647 = vmatpush3.msra.mxu1 %v1303_v19  ;;  %v1714_v19 = vld [vmem:[%s4578_s29 + $0x78] sm:$0xff] }
  0x80   : > { %3623 = vmatmul.mubr.msk.f32.gmra.mxu1 %vm646_vm0, %v470_v46  ;;  %3648 = vmatprep.subr.mxu1 %v1302_v21 }
  0x81   : > { %3625 = vmatprep.mubr.msk.f32.mxu1 %vm646_vm0, %v477_v48  ;;  %3649 = vmatpush3.msra.mxu1 %v1302_v21  ;;  %v1702_v48 = vld [vmem:[%s4578_s29 + $0x18] sm:$0xff] }
  0x82   : > { %1065 = vmatmul.mubr.f32.gmra.mxu0 %v454_v47  ;;  %3650 = vmatprep.subr.mxu1 %v1301_v23  ;;  %v1700_v47 = vld [vmem:[%s4578_s29 + $0x8] sm:$0xff] }
  0x83   : > { %1069 = vmatprep.mubr.f32.mxu0 %v462_v49  ;;  %3651 = vmatpush3.msra.mxu1 %v1301_v23 }
  0x84   : > { %3626 = vmatmul.mubr.msk.f32.gmra.mxu1 %vm646_vm0, %v484_v50  ;;  %3652 = vmatprep.subr.mxu1 %v1300_v24 }
  0x85   : > { %3628 = vmatprep.mubr.msk.f32.mxu1 %vm646_vm0, %v491_v52  ;;  %3653 = vmatpush3.msra.mxu1 %v1300_v24 }
  0x86   : > { %1070 = vmatmul.mubr.f32.gmra.mxu0 %v461_v51  ;;  %3654 = vmatprep.subr.mxu1 %v1299_v25 }
  0x87   : > { %1074 = vmatprep.mubr.f32.mxu0 %v469_v53  ;;  %3655 = vmatpush3.msra.mxu1 %v1299_v25  ;;  %v1704_v53 = vld [vmem:[%s4578_s29 + $0x28] sm:$0xff] }
  0x88   : > { %3629 = vmatmul.mubr.msk.f32.gmra.mxu1 %vm646_vm0, %v498_v54  ;;  %3656 = vmatprep.subr.mxu1 %v1298_v26  ;;  %v1703_v54 = vld [vmem:[%s4578_s29 + $0x20] sm:$0xff] }
  0x89   : > { %3631 = vmatprep.mubr.msk.f32.mxu1 %vm646_vm0, %v505_v56  ;;  %3657 = vmatpush3.msra.mxu1 %v1298_v26 }
  0x8a   : > { %1075 = vmatmul.mubr.f32.gmra.mxu0 %v468_v55  ;;  %3658 = vmatprep.subr.mxu1 %v1297_v27 }
  0x8b   : > { %1079 = vmatprep.mubr.f32.mxu0 %v476_v57  ;;  %3659 = vmatpush3.msra.mxu1 %v1297_v27 }
  0x8c   : > { %3632 = vmatmul.mubr.msk.f32.gmra.mxu1 %vm646_vm0, %v512_v58  ;;  %3660 = vmatprep.subr.mxu1 %v1296_v28 }
  0x8d   : > { %3634 = vmatprep.mubr.msk.f32.mxu1 %vm646_vm0, %v519_v60  ;;  %3661 = vmatpush3.msra.mxu1 %v1296_v28  ;;  %v1705_v60 = vld [vmem:[%s4578_s29 + $0x30] sm:$0xff] }
  0x8e   : > { %1080 = vmatmul.mubr.f32.gmra.mxu0 %v475_v59  ;;  %3662 = vmatprep.subr.mxu1 %v1295_v29  ;;  %v1706_v59 = vld [vmem:[%s4578_s29 + $0x38] sm:$0xff] }
  0x8f   : > { %1084 = vmatprep.mubr.f32.mxu0 %v483_v61  ;;  %3663 = vmatpush3.msra.mxu1 %v1295_v29 }
  0x90   : > { %3635 = vmatmul.mubr.msk.f32.gmra.mxu1 %vm646_vm0, %v526_v62  ;;  %3664 = vmatprep.subr.mxu1 %v1294_v30 }
  0x91   : > { %3637 = vmatprep.mubr.msk.f32.mxu1 %vm646_vm0, %v533_v0  ;;  %3665 = vmatpush3.msra.mxu1 %v1294_v30 }
  0x92   : > { %1085 = vmatmul.mubr.f32.gmra.mxu0 %v482_v63  ;;  %3666 = vmatprep.subr.mxu1 %v1293_v31 }
  0x93   : > { %1089 = vmatprep.mubr.f32.mxu0 %v490_v1  ;;  %3667 = vmatpush3.msra.mxu1 %v1293_v31  ;;  %v1708_v1 = vld [vmem:[%s4578_s29 + $0x48] sm:$0xff] }
  0x94   : > { %3638 = vmatmul.mubr.msk.f32.gmra.mxu1 %vm646_vm0, %v540_v2  ;;  %3668 = vmatprep.subr.mxu1 %v1292_v32  ;;  %v1707_v2 = vld [vmem:[%s4578_s29 + $0x40] sm:$0xff] }
  0x95   : > { %3669 = vmatpush3.msra.mxu1 %v1292_v32  ;;  %1731 = vrot.lane.b32.xlu0 %v1699_v43, %s3952_s30 }
  0x96   : > { %1090 = vmatmul.mubr.f32.gmra.mxu0 %v489_v3  ;;  %3670 = vmatprep.subr.mxu1 %v1291_v33 }
  0x97   : > { %1094 = vmatprep.mubr.f32.mxu0 %v497_v4  ;;  %3671 = vmatpush3.msra.mxu1 %v1291_v33 }
  0x98   : > { %1735 = vrot.lane.b32.xlu1 %v1701_v44, %s3952_s30 }
  0x99   : > { %1733 = vrot.lane.b32.xlu0 %v1700_v47, %s3952_s30 }
  0x9a   : > { %1095 = vmatmul.mubr.f32.gmra.mxu0 %v496_v5 }
  0x9b   : > { %1099 = vmatprep.mubr.f32.mxu0 %v504_v6 }
  0x9c   : > { %1737 = vrot.lane.b32.xlu1 %v1702_v48, %s3952_s30 }
  0x9d   : > { %1739 = vrot.lane.b32.xlu0 %v1703_v54, %s3952_s30 }
  0x9e   : > { %1100 = vmatmul.mubr.f32.gmra.mxu0 %v503_v7  ;;  %v1710_v7 = vld [vmem:[%s4578_s29 + $0x58] sm:$0xff] }
  0x9f   : > { %1104 = vmatprep.mubr.f32.mxu0 %v511_v8  ;;  %v1709_v8 = vld [vmem:[%s4578_s29 + $0x50] sm:$0xff] }
  0xa0   : > { %1741 = vrot.lane.b32.xlu1 %v1704_v53, %s3952_s30 }
  0xa1   : > { %1743 = vrot.lane.b32.xlu0 %v1705_v60, %s3952_s30 }
  0xa2   : > { %1105 = vmatmul.mubr.f32.gmra.mxu0 %v510_v9 }
  0xa3   : > { %1109 = vmatprep.mubr.f32.mxu0 %v518_v10 }
  0xa4   : > { %1745 = vrot.lane.b32.xlu1 %v1706_v59, %s3952_s30 }
  0xa5   : > { %1747 = vrot.lane.b32.xlu0 %v1707_v2, %s3952_s30 }
  0xa6   : > { %1110 = vmatmul.mubr.f32.gmra.mxu0 %v517_v11 }
  0xa7   : > { %1114 = vmatprep.mubr.f32.mxu0 %v525_v12 }
  0xa8   : > { %1749 = vrot.lane.b32.xlu1 %v1708_v1, %s3952_s30 }
  0xa9   : > { %1751 = vrot.lane.b32.xlu0 %v1709_v8, %s3952_s30 }
  0xaa   : > { %1115 = vmatmul.mubr.f32.gmra.mxu0 %v524_v14  ;;  %v1711_v14 = vld [vmem:[%s4578_s29 + $0x60] sm:$0xff] }
  0xab   : > { %1119 = vmatprep.mubr.f32.mxu0 %v532_v16 }
  0xac   : > { %1753 = vrot.lane.b32.xlu1 %v1710_v7, %s3952_s30 }
  0xad   : > { %1755 = vrot.lane.b32.xlu0 %v1711_v14, %s3952_s30 }
  0xae   : > { %1120 = vmatmul.mubr.f32.gmra.mxu0 %v531_v18 }
  0xaf   : > { %1124 = vmatprep.mubr.f32.mxu0 %v539_v20  ;;  %v1713_v20 = vld [vmem:[%s4578_s29 + $0x70] sm:$0xff]  ;;  %s3954_s29 = smov 32  }
  0xb0   : > { %1757 = vrot.lane.b32.xlu1 %v1712_v13, %s3952_s30  ;;  %v4719_v13 = vld [vmem:[%s6062_s3] ss:$0 sm:$0xff] }
  0xb1   : > { %1759 = vrot.lane.b32.xlu0 %v1713_v20, %s3952_s30 }
  0xb2   : > { %1125 = vmatmul.mubr.f32.gmra.mxu0 %v538_v22 }
  0xb4   : > { %1761 = vrot.lane.b32.xlu1 %v1714_v19, %s3952_s30 }
  0xf5   : > { %v4558_v34 = vpop.f32.mrf.mxu0 }
  0xf7   : > { %v4560_v35 = vpop.f32.mrf.mxu0 }
  0xf8   : > { %v4562_v36 = vpop.f32.mrf.mxu1  ;;  %v3306_v7 = vadd.f32 %v4560_v35, %v4558_v34 }
  0xfa   : > { %v4564_v37 = vpop.f32.mrf.mxu0  ;;  %v4566_v38 = vpop.f32.mrf.mxu1 }
  0xfc   : > { %v4568_v39 = vpop.f32.mrf.mxu0  ;;  %v4570_v40 = vpop.f32.mrf.mxu1 }
  0xfd   : > { %v3309_v34 = vadd.f32 %v4568_v39, %v4564_v37 }
  0xfe   : > { %v4573_v41 = vpop.f32.mrf.mxu0  ;;  %v4580_v42 = vpop.f32.mrf.mxu1 }
 0x100   : > { %v4584_v45 = vpop.f32.mrf.mxu0  ;;  %v4588_v46 = vpop.f32.mrf.mxu1 }
 0x102   : > { %v4592_v49 = vpop.f32.mrf.mxu0  ;;  %v4594_v50 = vpop.f32.mrf.mxu1 }
 0x104   : > { %v4596_v51 = vpop.f32.mrf.mxu0  ;;  %v4600_v52 = vpop.f32.mrf.mxu1 }
 0x106   : > { %v4604_v55 = vpop.f32.mrf.mxu0  ;;  %v4606_v56 = vpop.f32.mrf.mxu1 }
 0x108   : > { %v4608_v57 = vpop.f32.mrf.mxu0  ;;  %v4612_v58 = vpop.f32.mrf.mxu1 }
 0x10a   : > { %v4616_v61 = vpop.f32.mrf.mxu0  ;;  %v4618_v62 = vpop.f32.mrf.mxu1 }
 0x10c   : > { %v4620_v63 = vpop.f32.mrf.mxu0  ;;  %v4624_v0 = vpop.f32.mrf.mxu1 }
 0x10e   : > { %v4628_v3 = vpop.f32.mrf.mxu0  ;;  %v4630_v4 = vpop.f32.mrf.mxu1 }
 0x110   : > { %v4632_v5 = vpop.f32.mrf.mxu0  ;;  %v4636_v6 = vpop.f32.mrf.mxu1 }
 0x112   : > { %v4640_v9 = vpop.f32.mrf.mxu0  ;;  %v4642_v10 = vpop.f32.mrf.mxu1 }
 0x114   : > { %v4644_v11 = vpop.f32.mrf.mxu0  ;;  %v4648_v12 = vpop.f32.mrf.mxu1 }
 0x116   : > { %v4652_v15 = vpop.f32.mrf.mxu0  ;;  %v4654_v16 = vpop.f32.mrf.mxu1 }
 0x118   : > { %v4656_v17 = vpop.f32.mrf.mxu0  ;;  %v4660_v18 = vpop.f32.mrf.mxu1 }
 0x11a   : > { %v4664_v21 = vpop.f32.mrf.mxu0  ;;  %v4666_v22 = vpop.f32.mrf.mxu1 }
 0x11c   : > { %v4668_v23 = vpop.f32.mrf.mxu0  ;;  %v4672_v24 = vpop.f32.mrf.mxu1 }
 0x11e   : > { %v4674_v25 = vpop.f32.mrf.mxu0  ;;  %v4676_v26 = vpop.f32.mrf.mxu1 }
 0x120   : > { %v4678_v27 = vpop.f32.mrf.mxu0  ;;  %v4680_v28 = vpop.f32.mrf.mxu1 }
 0x122   : > { %v4682_v29 = vpop.f32.mrf.mxu0  ;;  %v4684_v30 = vpop.f32.mrf.mxu1 }
 0x124   : > { %v4686_v31 = vpop.f32.mrf.mxu0  ;;  %v4688_v32 = vpop.f32.mrf.mxu1 }
 0x126   : > { %v4690_v33 = vpop.f32.mrf.mxu0  ;;  %v4692_v43 = vpop.f32.mrf.mxu1 }
 0x128   : > { %v4694_v44 = vpop.f32.mrf.mxu0  ;;  %v4696_v47 = vpop.f32.mrf.mxu1 }
 0x12a   : > { %v4698_v48 = vpop.f32.mrf.mxu0  ;;  %v4700_v53 = vpop.f32.mrf.mxu1 }
 0x12b   : > { %6080 = vst [vmem:[#allocation7_spill] sm:$0xff] %v4698_v48  ;;  %6081 = vst [vmem:[#allocation8_spill] sm:$0xff] %v4700_v53 }
 0x12c   : > { %v4702_v54 = vpop.f32.mrf.mxu0  ;;  %v4704_v59 = vpop.f32.mrf.mxu1 }
 0x12d   : > { %6082 = vst [vmem:[#allocation9_spill] sm:$0xff] %v4702_v54  ;;  %6083 = vst [vmem:[#allocation10_spill] sm:$0xff] %v4704_v59  ;;  %v3386_v59 = vadd.f32 %v4566_v38, %v4562_v36 }
 0x12e   : > { %v4706_v60 = vpop.f32.mrf.mxu0  ;;  %v4708_v1 = vpop.f32.mrf.mxu1 }
 0x12f   : > { %6084 = vst [vmem:[#allocation11_spill] sm:$0xff] %v4706_v60  ;;  %6085 = vst [vmem:[#allocation12_spill] sm:$0xff] %v4708_v1  ;;  %v762_v1 = vadd.f32 %v3306_v7, %v4719_v13  ;;  %v3389_v7 = vadd.f32 %v4580_v42, %v4570_v40 }
 0x130   : > { %v4710_v2 = vpop.f32.mrf.mxu0  ;;  %v4714_v8 = vpop.f32.mrf.mxu1 }
 0x131   : > { %6086 = vst [vmem:[#allocation13_spill] sm:$0xff] %v4710_v2  ;;  %6087 = vst [vmem:[#allocation14_spill] sm:$0xff] %v4714_v8 }
 0x132   : > { %v4721_v14 = vpop.f32.mrf.mxu0  ;;  %v4723_v19 = vpop.f32.mrf.mxu1 }
 0x133   : > { %6088 = vst [vmem:[#allocation15_spill] sm:$0xff] %v4721_v14  ;;  %6089 = vst [vmem:[#allocation16_spill] sm:$0xff] %v4723_v19  ;;  %v3312_v14 = vadd.f32 %v4584_v45, %v4573_v41  ;;  %v907_v19 = vadd.f32 %v3386_v59, %v762_v1  ;;  %v3315_v41 = vadd.f32 %v4596_v51, %v4592_v49 }
 0x134   : > { %v4725_v20 = vpop.f32.mrf.mxu0  ;;  %v4732_v35 = vpop.f32.mrf.mxu1 }
 0x135   : > { %6090 = vst [vmem:[#allocation17_spill] sm:$0xff] %v4725_v20  ;;  %6091 = vst [vmem:[#allocation18_spill] sm:$0xff] %v4732_v35  ;;  %v767_v20 = vadd.f32 %v3309_v34, %v4719_v13  ;;  %v772_v39 = vadd.f32 %v3312_v14, %v4719_v13  ;;  %v777_v14 = vadd.f32 %v3315_v41, %v4719_v13 }
 0x136   : > { %v3464_v8 = vpop.f32.mrf.mxu0  ;;  %v4734_v2 = vpop.f32.mrf.mxu1  ;;  %v3324_v41 = vadd.f32 %v4632_v5, %v4628_v3  ;;  %v3327_v5 = vadd.f32 %v4644_v11, %v4640_v9 }
 0x137   : > { %6092 = vst [vmem:[#allocation19_spill] sm:$0xff] %v4734_v2  ;;  %v3392_v2 = vadd.f32 %v4594_v50, %v4588_v46  ;;  %v912_v53 = vadd.f32 %v3389_v7, %v767_v20  ;;  %v3395_v46 = vadd.f32 %v4606_v56, %v4600_v52 }
 0x138   : > { %v3465_v60 = vpop.f32.mrf.mxu0  ;;  %v3618_v36 = vpop.f32.mrf.mxu1 }
 0x139   : > { %v3466_v54 = vadd.f32 %v3465_v60, %v3464_v8  ;;  %v917_v60 = vadd.f32 %v3392_v2, %v772_v39  ;;  %v3398_v2 = vadd.f32 %v4618_v62, %v4612_v58  ;;  %v3401_v58 = vadd.f32 %v4630_v4, %v4624_v0 }
 0x13a   : > { %v3467_v38 = vpop.f32.mrf.mxu0  ;;  %v1196_v37 = vpop.f32.mrf.mxu1 }
 0x13b   : > { %v1052_v48 = vadd.f32 %v3466_v54, %v907_v19  ;;  %v3318_v54 = vadd.f32 %v4608_v57, %v4604_v55  ;;  %v922_v55 = vadd.f32 %v3395_v46, %v777_v14  ;;  %v3321_v57 = vadd.f32 %v4620_v63, %v4616_v61 }
 0x13c   : > { %v3468_v35 = vpop.f32.mrf.mxu0  ;;  %v3621_v34 = vpop.f32.mrf.mxu1 }
 0x13d   : > { %v3469_v45 = vadd.f32 %v3468_v35, %v3467_v38  ;;  %v1197_v59 = vadd.f32 %v1196_v37, %v1052_v48 }
 0x13e   : > { %v3470_v1 = vpop.f32.mrf.mxu0  ;;  %v1206_v51 = vpop.f32.mrf.mxu1 }
 0x13f   : > { %v1057_v40 = vadd.f32 %v3469_v45, %v912_v53  ;;  %v1275_v42 = vmax.f32 %v1197_v59, 0.0  ;;  %v782_v53 = vadd.f32 %v3318_v54, %v4719_v13  ;;  %v787_v59 = vadd.f32 %v3321_v57, %v4719_v13 }
 0x140   : > { %v3471_v8 = vpop.f32.mrf.mxu0  ;;  %v3624_v56 = vpop.f32.mrf.mxu1  ;;  %v3404_v54 = vadd.f32 %v4642_v10, %v4636_v6  ;;  %v3407_v6 = vadd.f32 %v4654_v16, %v4648_v12 }
 0x141   : > { %v1202_v50 = vadd.f32 %v3618_v36, %v1057_v40  ;;  %v3472_v19 = vadd.f32 %v3471_v8, %v3470_v1  ;;  %3672 = vmatprep.mubr.f32.mxu1 %v1275_v42  ;;  %v927_v39 = vadd.f32 %v3398_v2, %v782_v53  ;;  %v932_v3 = vadd.f32 %v3401_v58, %v787_v59 }
 0x142   : > { %v3473_v49 = vpop.f32.mrf.mxu0  ;;  %v1216_v1 = vpop.f32.mrf.mxu1 }
 0x143   : > { %v1276_v48 = vmax.f32 %v1202_v50, 0.0  ;;  %v1062_v20 = vadd.f32 %v3472_v19, %v917_v60  ;;  %v792_v60 = vadd.f32 %v3324_v41, %v4719_v13 }
 0x144   : > { %v3474_v35 = vpop.f32.mrf.mxu0  ;;  %v3627_v4 = vpop.f32.mrf.mxu1 }
 0x145   : > { %v3475_v7 = vadd.f32 %v3474_v35, %v3473_v49  ;;  %v1207_v38 = vadd.f32 %v1206_v51, %v1062_v20  ;;  %3673 = vmatmul.mubr.f32.vlgmr.msra.gmra.mxu1 %v1276_v48  ;;  %v937_v19 = vadd.f32 %v3404_v54, %v792_v60  ;;  %v3330_v49 = vadd.f32 %v4656_v17, %v4652_v15 }
 0x146   : > { %v3476_v52 = vpop.f32.mrf.mxu0  ;;  %v797_v48 = vadd.f32 %v3327_v5, %v4719_v13  ;;  %v1226_v20 = vpop.f32.mrf.mxu1  ;;  %v3333_v17 = vadd.f32 %v4668_v23, %v4664_v21 }
 0x147   : > { %v1067_v36 = vadd.f32 %v3475_v7, %v922_v55  ;;  %v1277_v37 = vmax.f32 %v1207_v38, 0.0  ;;  %v802_v35 = vadd.f32 %v3330_v49, %v4719_v13  ;;  %v3410_v55 = vadd.f32 %v4666_v22, %v4660_v18  ;;  %v6095_v49 = vld [vmem:[#allocation9_spill] sm:$0xff] }
 0x148   : > { %v3477_v45 = vpop.f32.mrf.mxu0  ;;  %v942_v15 = vadd.f32 %v3407_v6, %v797_v48  ;;  %v3630_v16 = vpop.f32.mrf.mxu1  ;;  %v807_v41 = vadd.f32 %v3333_v17, %v4719_v13  ;;  %v3413_v18 = vadd.f32 %v4676_v26, %v4672_v24 }
 0x149   : > { %v3478_v62 = vadd.f32 %v3477_v45, %v3476_v52  ;;  %3675 = vmatprep.mubr.f32.mxu1 %v1277_v37  ;;  %v1212_v61 = vadd.f32 %v3621_v34, %v1067_v36  ;;  %v947_v36 = vadd.f32 %v3410_v55, %v802_v35  ;;  %v3336_v37 = vadd.f32 %v4678_v27, %v4674_v25 }
 0x14a   : > { %v3479_v63 = vpop.f32.mrf.mxu0  ;;  %v1236_v45 = vpop.f32.mrf.mxu1  ;;  %v952_v25 = vadd.f32 %v3413_v18, %v807_v41  ;;  %v3339_v27 = vadd.f32 %v4686_v31, %v4682_v29 }
 0x14b   : > { %v1072_v40 = vadd.f32 %v3478_v62, %v927_v39  ;;  %v1278_v42 = vmax.f32 %v1212_v61, 0.0  ;;  %v812_v62 = vadd.f32 %v3336_v37, %v4719_v13  ;;  %v3416_v61 = vadd.f32 %v4684_v30, %v4680_v28  ;;  %v6101_v37 = vld [vmem:[#allocation16_spill] sm:$0xff] }
 0x14c   : > { %v3480_v8 = vpop.f32.mrf.mxu0  ;;  %v3633_v26 = vpop.f32.mrf.mxu1  ;;  %v817_v5 = vadd.f32 %v3339_v27, %v4719_v13  ;;  %v3419_v28 = vadd.f32 %v4692_v43, %v4688_v32 }
 0x14d   : > { %v3481_v14 = vadd.f32 %v3480_v8, %v3479_v63  ;;  %v1217_v46 = vadd.f32 %v1216_v1, %v1072_v40  ;;  %3676 = vmatmul.mubr.f32.gmra.mxu1 %v1278_v42  ;;  %v957_v54 = vadd.f32 %v3416_v61, %v812_v62  ;;  %v3342_v8 = vadd.f32 %v4694_v44, %v4690_v33  ;;  %v6094_v44 = vld [vmem:[#allocation7_spill] sm:$0xff] }
 0x14e   : > { %v3482_v0 = vpop.f32.mrf.mxu0  ;;  %v962_v33 = vadd.f32 %v3419_v28, %v817_v5 }
 0x14f   : > { %v1077_v34 = vadd.f32 %v3481_v14, %v932_v3  ;;  %v1279_v50 = vmax.f32 %v1217_v46, 0.0  ;;  %v1246_v14 = vpop.f32.mrf.mxu1 }
 0x150   : > { %v3483_v51 = vpop.f32.mrf.mxu0 }
 0x151   : > { %v3484_v10 = vadd.f32 %v3483_v51, %v3482_v0  ;;  %3678 = vmatprep.mubr.f32.mxu1 %v1279_v50  ;;  %v1222_v9 = vadd.f32 %v3624_v56, %v1077_v34  ;;  %v6093_v34 = vld [vmem:[#allocation8_spill] sm:$0xff]  ;;  %v3345_v51 = vadd.f32 %v6095_v49, %v6094_v44  ;;  %v3636_v43 = vpop.f32.mrf.mxu1 }
 0x152   : > { %v3485_v11 = vpop.f32.mrf.mxu0  ;;  %v3422_v50 = vadd.f32 %v6093_v34, %v4696_v47  ;;  %v6098_v47 = vld [vmem:[#allocation10_spill] sm:$0xff]  ;;  %v1875_v34 = vld [vmem:[%s6065_s6] sm:$0xff] }
 0x153   : > { %v1082_v53 = vadd.f32 %v3484_v10, %v937_v19  ;;  %v1280_v2 = vmax.f32 %v1222_v9, 0.0  ;;  %v827_v55 = vadd.f32 %v3345_v51, %v4719_v13 }
 0x154   : > { %v3486_v57 = vpop.f32.mrf.mxu0 }
 0x155   : > { %v3487_v7 = vadd.f32 %v3486_v57, %v3485_v11  ;;  %v1227_v38 = vadd.f32 %v1226_v20, %v1082_v53  ;;  %3679 = vmatmul.mubr.f32.gmra.mxu1 %v1280_v2  ;;  %v6096_v20 = vld [vmem:[#allocation11_spill] sm:$0xff]  ;;  %v6097_v53 = vld [vmem:[#allocation13_spill] sm:$0xff]  ;;  %v6099_v57 = vld [vmem:[#allocation12_spill] sm:$0xff] }
 0x156   : > { %v3488_v12 = vpop.f32.mrf.mxu0  ;;  %v3348_v2 = vadd.f32 %v6097_v53, %v6096_v20 }
 0x157   : > { %v1087_v52 = vadd.f32 %v3487_v7, %v942_v15  ;;  %v1281_v56 = vmax.f32 %v1227_v38, 0.0  ;;  %v3425_v15 = vadd.f32 %v6099_v57, %v6098_v47 }
 0x158   : > { %v3489_v39 = vpop.f32.mrf.mxu0 }
 0x159   : > { %v3490_v22 = vadd.f32 %v3489_v39, %v3488_v12  ;;  %3681 = vmatprep.mubr.f32.mxu1 %v1281_v56  ;;  %v1232_v21 = vadd.f32 %v3627_v4, %v1087_v52  ;;  %v822_v4 = vadd.f32 %v3342_v8, %v4719_v13  ;;  %v1256_v12 = vpop.f32.mrf.mxu1  ;;  %v832_v56 = vadd.f32 %v3348_v2, %v4719_v13 }
 0x15a   : > { %v3491_v23 = vpop.f32.mrf.mxu0  ;;  %v972_v18 = vadd.f32 %v3425_v15, %v827_v55 }
 0x15b   : > { %v1092_v59 = vadd.f32 %v3490_v22, %v947_v36  ;;  %v1282_v58 = vmax.f32 %v1232_v21, 0.0  ;;  %v967_v11 = vadd.f32 %v3422_v50, %v822_v4  ;;  %v6100_v36 = vld [vmem:[#allocation14_spill] sm:$0xff]  ;;  %v6102_v22 = vld [vmem:[#allocation15_spill] sm:$0xff]  ;;  %v6103_v21 = vld [vmem:[#allocation17_spill] sm:$0xff]  ;;  %v3639_v62 = vpop.f32.mrf.mxu1 }
 0x15c   : > { %v3492_v63 = vpop.f32.mrf.mxu0  ;;  %v3428_v39 = vadd.f32 %v6101_v37, %v6100_v36  ;;  %v1876_v4 = vld [vmem:[%s6065_s6 + $0x8] sm:$0xff]  ;;  %v4818_v50 = vld [vmem:[%s6064_s5] ss:$0 sm:$0xff] }
 0x15d   : > { %v3493_v1 = vadd.f32 %v3492_v63, %v3491_v23  ;;  %v1237_v40 = vadd.f32 %v1236_v45, %v1092_v59  ;;  %3682 = vmatmul.mubr.f32.gmra.mxu1 %v1282_v58  ;;  %v3351_v23 = vadd.f32 %v6103_v21, %v6102_v22  ;;  %v1266_v8 = vpop.f32.mrf.mxu1  ;;  %3696 = vmatprep.subr.mxu0 %v1876_v4 }
 0x15e   : > { %v3494_v24 = vpop.f32.mrf.mxu0  ;;  %3697 = vmatpush3.msra.mxu0 %v1876_v4 }
 0x15f   : > { %v1097_v42 = vadd.f32 %v3493_v1, %v952_v25  ;;  %v1283_v60 = vmax.f32 %v1237_v40, 0.0  ;;  %v977_v25 = vadd.f32 %v3428_v39, %v832_v56  ;;  %v837_v1 = vadd.f32 %v3351_v23, %v4719_v13  ;;  %v6104_v40 = vld [vmem:[#allocation18_spill] sm:$0xff]  ;;  %3698 = vmatprep.subr.mxu0 %v1875_v34 }
 0x160   : > { %v3495_v3 = vpop.f32.mrf.mxu0  ;;  %3699 = vmatpush3.msra.mxu0 %v1875_v34 }
 0x161   : > { %v3496_v30 = vadd.f32 %v3495_v3, %v3494_v24  ;;  %3684 = vmatprep.mubr.f32.mxu1 %v1283_v60  ;;  %v1242_v29 = vadd.f32 %v3630_v16, %v1097_v42  ;;  %v6105_v24 = vld [vmem:[#allocation19_spill] sm:$0xff] }
 0x162   : > { %v3497_v31 = vpop.f32.mrf.mxu0 }
 0x163   : > { %v1102_v46 = vadd.f32 %v3496_v30, %v957_v54  ;;  %v1284_v0 = vmax.f32 %v1242_v29, 0.0 }
 0x164   : > { %v3498_v19 = vpop.f32.mrf.mxu0 }
 0x165   : > { %v3499_v48 = vadd.f32 %v3498_v19, %v3497_v31  ;;  %v1247_v6 = vadd.f32 %v1246_v14, %v1102_v46  ;;  %3685 = vmatmul.mubr.f32.gmra.mxu1 %v1284_v0 }
 0x166   : > { %v3500_v32 = vpop.f32.mrf.mxu0 }
 0x167   : > { %v1107_v10 = vadd.f32 %v3499_v48, %v962_v33  ;;  %v1285_v9 = vmax.f32 %v1247_v6, 0.0 }
 0x168   : > { %v3501_v35 = vpop.f32.mrf.mxu0 }
 0x169   : > { %v3502_v17 = vadd.f32 %v3501_v35, %v3500_v32  ;;  %3687 = vmatprep.mubr.f32.mxu1 %v1285_v9  ;;  %v1252_v7 = vadd.f32 %v3633_v26, %v1107_v10  ;;  %v3431_v26 = vadd.f32 %v6105_v24, %v6104_v40 }
 0x16a   : > { %v3503_v38 = vpop.f32.mrf.mxu0 }
 0x16b   : > { %v1112_v16 = vadd.f32 %v3502_v17, %v967_v11  ;;  %v1286_v52 = vmax.f32 %v1252_v7, 0.0  ;;  %v982_v30 = vadd.f32 %v3431_v26, %v837_v1 }
 0x16c   : > { %v3504_v41 = vpop.f32.mrf.mxu0 }
 0x16d   : > { %v3505_v45 = vadd.f32 %v3504_v41, %v3503_v38  ;;  %v1257_v59 = vadd.f32 %v1256_v12, %v1112_v16  ;;  %3688 = vmatmul.mubr.f32.gmra.mxu1 %v1286_v52 }
 0x16e   : > { %v3506_v58 = vpop.f32.mrf.mxu0 }
 0x16f   : > { %v1117_v61 = vadd.f32 %v3505_v45, %v972_v18  ;;  %v1287_v63 = vmax.f32 %v1257_v59, 0.0 }
 0x170   : > { %v3507_v27 = vpop.f32.mrf.mxu0 }
 0x171   : > { %v3508_v42 = vadd.f32 %v3507_v27, %v3506_v58  ;;  %3690 = vmatprep.mubr.f32.mxu1 %v1287_v63  ;;  %v1262_v60 = vadd.f32 %v3636_v43, %v1117_v61 }
 0x172   : > { %v3509_v54 = vpop.f32.mrf.mxu0 }
 0x173   : > { %v1122_v3 = vadd.f32 %v3508_v42, %v977_v25  ;;  %v1288_v5 = vmax.f32 %v1262_v60, 0.0 }
 0x174   : > { %v3510_v28 = vpop.f32.mrf.mxu0 }
 0x175   : > { %v3511_v29 = vadd.f32 %v3510_v28, %v3509_v54  ;;  %v1267_v31 = vadd.f32 %v1266_v8, %v1122_v3  ;;  %3691 = vmatmul.mubr.f32.gmra.mxu1 %v1288_v5 }
 0x177   : > { %v1127_v14 = vadd.f32 %v3511_v29, %v982_v30  ;;  %v1289_v46 = vmax.f32 %v1267_v31, 0.0 }
 0x179   : > { %3693 = vmatprep.mubr.f32.mxu1 %v1289_v46  ;;  %v1272_v0 = vadd.f32 %v3639_v62, %v1127_v14  ;;  %v1732_v14 = vpop.permute.xlu0 %1731 }
 0x17b   : > { %v1290_v13 = vmax.f32 %v1272_v0, 0.0 }
 0x17d   : > { %3694 = vmatmul.mubr.f32.gmra.mxu1 %v1290_v13 }
 0x205   : > { %v3674_v19 = vpop.f32.mrf.mxu1 }
 0x206   : > { %v4821_v33 = vadd.f32 %v3674_v19, %v4818_v50 }
 0x207   : > { %v1380_v44 = vpop.f32.mrf.mxu1 }
 0x208   : > { %v1460_v49 = vand.u32 2147483647, %v4821_v33  ;;  %v4825_v51 = vadd.f32 %v4818_v50, %v1380_v44 }
 0x20a   : > { %v1476_v48 = vsub.f32 0.0, %v1460_v49  ;;  %v1459_v6 = vand.u32 2147483647, %v4825_v51  ;;  %v1667_v44 = vmax.f32 %v4825_v51, 0.0 }
 0x20c   : > { %v1493_v32 = vmul.f32 1.442695, %v1476_v48  ;;  %v1475_v43 = vsub.f32 0.0, %v1459_v6  ;;  %v1668_v48 = vmax.f32 %v4821_v33, 0.0 }
 0x20d   : > { %v3677_v10 = vpop.f32.mrf.mxu1 }
 0x20e   : > { %3826 = vpow2.f32 %v1493_v32  ;;  %v1491_v9 = vmul.f32 1.442695, %v1475_v43  ;;  %v4829_v11 = vadd.f32 %v3677_v10, %v4818_v50 }
 0x20f   : > { %v1390_v20 = vpop.f32.mrf.mxu1 }
 0x210   : > { %3828 = vpow2.f32 %v1491_v9  ;;  %v1462_v53 = vand.u32 2147483647, %v4829_v11  ;;  %v4833_v2 = vadd.f32 %v4818_v50, %v1390_v20 }
 0x212   : > { %v1478_v35 = vsub.f32 0.0, %v1462_v53  ;;  %v1461_v55 = vand.u32 2147483647, %v4833_v2 }
 0x214   : > { %v1497_v47 = vmul.f32 1.442695, %v1478_v35  ;;  %v1477_v57 = vsub.f32 0.0, %v1461_v55 }
 0x215   : > { %v3680_v15 = vpop.f32.mrf.mxu1 }
 0x216   : > { %3830 = vpow2.f32 %v1497_v47  ;;  %v1495_v17 = vmul.f32 1.442695, %v1477_v57  ;;  %v4837_v7 = vadd.f32 %v3680_v15, %v4818_v50 }
 0x217   : > { %v1400_v38 = vpop.f32.mrf.mxu1 }
 0x218   : > { %3832 = vpow2.f32 %v1495_v17  ;;  %v1464_v12 = vand.u32 2147483647, %v4837_v7  ;;  %v4841_v16 = vadd.f32 %v4818_v50, %v1400_v38 }
 0x21a   : > { %v1480_v52 = vsub.f32 0.0, %v1464_v12  ;;  %v1463_v56 = vand.u32 2147483647, %v4841_v16 }
 0x21b   : > { %v3827_v36 = vpop.eup %3826 }
 0x21c   : > { %v1501_v37 = vmul.f32 1.442695, %v1480_v52  ;;  %v1479_v39 = vsub.f32 0.0, %v1463_v56  ;;  %v1532_v41 = vadd.f32 1.0, %v3827_v36  ;;  %v1535_v60 = vmul.f32 -0.5, %v3827_v36 }
 0x21d   : > { %v3829_v18 = vpop.eup %3828  ;;  %v3683_v22 = vpop.f32.mrf.mxu1  ;;  %v1538_v30 = vand.u32 2147483647, %v3827_v36 }
 0x21e   : > { %3834 = vpow2.f32 %v1501_v37  ;;  %v1499_v21 = vmul.f32 1.442695, %v1479_v39  ;;  %v4845_v23 = vadd.f32 %v3683_v22, %v4818_v50  ;;  %v1523_v45 = vadd.f32 1.0, %v3829_v18  ;;  %v1734_v37 = vpop.permute.xlu0 %1733 }
 0x21f   : > { %v1410_v59 = vpop.f32.mrf.mxu1  ;;  %3836 = vlog2.f32 %v1532_v41  ;;  %v1526_v42 = vmul.f32 -0.5, %v3829_v18  ;;  %v1529_v28 = vand.u32 2147483647, %v3829_v18  ;;  %v1536_v0 = vadd.f32 1.0, %v1535_v60 }
 0x220   : > { %3838 = vpow2.f32 %v1499_v21  ;;  %v1466_v58 = vand.u32 2147483647, %v4845_v23  ;;  %v4849_v62 = vadd.f32 %v4818_v50, %v1410_v59  ;;  %vm4873_vm2 = vcmp.lt.f32.partialorder %v1538_v30, 0.0004427343  ;;  %v1736_v59 = vpop.permute.xlu1 %1735 }
 0x221   : > { %3840 = vlog2.f32 %v1523_v45  ;;  %v1527_v46 = vadd.f32 1.0, %v1526_v42  ;;  %vm4868_vm1 = vcmp.lt.f32.partialorder %v1529_v28, 0.0004427343  ;;  %v1537_v47 = vmul.f32 %v3827_v36, %v1536_v0 }
 0x222   : > { %v1482_v61 = vsub.f32 0.0, %v1466_v58  ;;  %v1465_v63 = vand.u32 2147483647, %v4849_v62  ;;  %v1669_v42 = vmax.f32 %v4833_v2, 0.0 }
 0x223   : > { %v4852_v25 = vpop.eup %3830  ;;  %v1528_v53 = vmul.f32 %v3829_v18, %v1527_v46 }
 0x224   : > { %v1505_v27 = vmul.f32 1.442695, %v1482_v61  ;;  %v1481_v1 = vsub.f32 0.0, %v1465_v63  ;;  %v1550_v40 = vadd.f32 1.0, %v4852_v25  ;;  %v1553_v10 = vmul.f32 -0.5, %v4852_v25 }
 0x225   : > { %v4855_v24 = vpop.eup %3832  ;;  %v3686_v26 = vpop.f32.mrf.mxu1  ;;  %v1556_v12 = vand.u32 2147483647, %v4852_v25 }
 0x226   : > { %3842 = vpow2.f32 %v1505_v27  ;;  %v1503_v54 = vmul.f32 1.442695, %v1481_v1  ;;  %v4858_v8 = vadd.f32 %v3686_v26, %v4818_v50  ;;  %v1541_v3 = vadd.f32 1.0, %v4855_v24 }
 0x227   : > { %v1420_v5 = vpop.f32.mrf.mxu1  ;;  %3844 = vlog2.f32 %v1550_v40  ;;  %v1544_v57 = vmul.f32 -0.5, %v4855_v24  ;;  %v1547_v41 = vand.u32 2147483647, %v4855_v24  ;;  %v1554_v21 = vadd.f32 1.0, %v1553_v10  ;;  %v1738_v10 = vpop.permute.xlu1 %1737 }
 0x228   : > { %3846 = vpow2.f32 %v1503_v54  ;;  %v1468_v29 = vand.u32 2147483647, %v4858_v8  ;;  %v4863_v31 = vadd.f32 %v4818_v50, %v1420_v5  ;;  %vm4906_vm3 = vcmp.lt.f32.partialorder %v1556_v12, 0.0004427343 }
 0x229   : > { %3848 = vlog2.f32 %v1541_v3  ;;  %v1545_v58 = vadd.f32 1.0, %v1544_v57  ;;  %v1670_v54 = vmax.f32 %v4829_v11, 0.0  ;;  %vm4916_vm4 = vcmp.lt.f32.partialorder %v1547_v41, 0.0004427343 }
 0x22a   : > { %v1484_v13 = vsub.f32 0.0, %v1468_v29  ;;  %v1467_v4 = vand.u32 2147483647, %v4863_v31  ;;  %v1555_v19 = vmul.f32 %v4852_v25, %v1554_v21 }
 0x22b   : > { %v4866_v34 = vpop.eup %3834 }
 0x22c   : > { %v3837_v6 = vpop.eup %3836  ;;  %v1509_v32 = vmul.f32 1.442695, %v1484_v13  ;;  %v1483_v43 = vsub.f32 0.0, %v1467_v4  ;;  %v1568_v9 = vadd.f32 1.0, %v4866_v34  ;;  %v1574_v57 = vand.u32 2147483647, %v4866_v34 }
 0x22d   : > { %v4880_v20 = vpop.eup %3838  ;;  %v3689_v35 = vpop.f32.mrf.mxu1  ;;  %v1534_v55 = vmul.f32 0.6931472, %v3837_v6 }
 0x22e   : > { %v3841_v15 = vpop.eup %3840  ;;  %3850 = vpow2.f32 %v1509_v32  ;;  %v1507_v17 = vmul.f32 1.442695, %v1483_v43  ;;  %v4884_v38 = vadd.f32 %v3689_v35, %v4818_v50  ;;  %v1559_v61 = vadd.f32 1.0, %v4880_v20 }
 0x22f   : > { %v1525_v52 = vmul.f32 0.6931472, %v3841_v15  ;;  %v1430_v56 = vpop.f32.mrf.mxu1  ;;  %v1540_v39 = vsel %vm4873_vm2, %v1537_v47, %v1534_v55  ;;  %3852 = vlog2.f32 %v1568_v9  ;;  %v1562_v25 = vmul.f32 -0.5, %v4880_v20 }
 0x230   : > { %v1470_v36 = vand.u32 2147483647, %v4884_v38  ;;  %v4892_v18 = vadd.f32 %v4818_v50, %v1430_v56  ;;  %v4894_v22 = vadd.f32 %v1668_v48, %v1540_v39  ;;  %3854 = vpow2.f32 %v1507_v17 }
 0x231   : > { %v1531_v45 = vsel %vm4868_vm1, %v1528_v53, %v1525_v52  ;;  %3856 = vlog2.f32 %v1559_v61  ;;  %v1546_v48 = vmul.f32 %v4855_v24, %v1545_v58  ;;  %v1672_v39 = vmax.f32 %v4837_v7, 0.0 }
 0x232   : > { %v4899_v63 = vadd.f32 %v1667_v44, %v1531_v45  ;;  %v1486_v27 = vsub.f32 0.0, %v1470_v36  ;;  %v1469_v1 = vand.u32 2147483647, %v4892_v18  ;;  %v1780_v40 = vmul.f32 %v1734_v37, %v4894_v22 }
 0x233   : > { %v4903_v26 = vpop.eup %3842  ;;  %v1571_v44 = vmul.f32 -0.5, %v4866_v34  ;;  %v1563_v41 = vadd.f32 1.0, %v1562_v25  ;;  %vm4952_vm5 = vcmp.lt.f32.partialorder %v1574_v57, 0.0004427343  ;;  %vm2934_vm2 = vcmask 261120  }
 0x234   : > { %v3845_v3 = vpop.eup %3844  ;;  %v1779_v5 = vmul.f32 %v1732_v14, %v4899_v63  ;;  %v1513_v28 = vmul.f32 1.442695, %v1486_v27  ;;  %v1485_v30 = vsub.f32 0.0, %v1469_v1  ;;  %1813 = vrot.lane.b32.xlu1 %v1780_v40, %s3953_s25  ;;  %v1586_v29 = vadd.f32 1.0, %v4903_v26 }
 0x235   : > { %v4914_v46 = vpop.eup %3846  ;;  %v3692_v13 = vpop.f32.mrf.mxu1  ;;  %v1552_v4 = vmul.f32 0.6931472, %v3845_v3  ;;  %v1572_v47 = vadd.f32 1.0, %v1571_v44  ;;  %v1589_v36 = vmul.f32 -0.5, %v4903_v26  ;;  %v1564_v0 = vmul.f32 %v4880_v20, %v1563_v41 }
 0x236   : > { %v3849_v14 = vpop.eup %3848  ;;  %3858 = vpow2.f32 %v1513_v28  ;;  %v1511_v49 = vmul.f32 1.442695, %v1485_v30  ;;  %v4924_v6 = vadd.f32 %v3692_v13, %v4818_v50  ;;  %1811 = vrot.lane.b32.xlu0 %v1779_v5, %s3953_s25  ;;  %v1577_v15 = vadd.f32 1.0, %v4914_v46 }
 0x237   : > { %v1543_v32 = vmul.f32 0.6931472, %v3849_v14  ;;  %v1440_v43 = vpop.f32.mrf.mxu1  ;;  %v1558_v9 = vsel %vm4906_vm3, %v1555_v19, %v1552_v4  ;;  %3860 = vlog2.f32 %v1586_v29  ;;  %v1565_v28 = vand.u32 2147483647, %v4880_v20  ;;  %v1742_v29 = vpop.permute.xlu1 %1741 }
 0x238   : > { %3862 = vpow2.f32 %v1511_v49  ;;  %v1472_v53 = vand.u32 2147483647, %v4924_v6  ;;  %v4932_v35 = vadd.f32 %v4818_v50, %v1440_v43  ;;  %v4934_v24 = vadd.f32 %v1670_v54, %v1558_v9 }
 0x239   : > { %v1549_v55 = vsel %vm4916_vm4, %v1546_v48, %v1543_v32  ;;  %3864 = vlog2.f32 %v1577_v15  ;;  %v1671_v54 = vmax.f32 %v4841_v16, 0.0  ;;  %v1590_v13 = vadd.f32 1.0, %v1589_v36 }
 0x23a   : > { %v4940_v17 = vadd.f32 %v1669_v42, %v1549_v55  ;;  %v1488_v12 = vsub.f32 0.0, %v1472_v53  ;;  %v1471_v52 = vand.u32 2147483647, %v4932_v35  ;;  %v1782_v56 = vmul.f32 %v1738_v10, %v4934_v24  ;;  %v1740_v53 = vpop.permute.xlu0 %1739 }
 0x23b   : > { %v4944_v37 = vpop.eup %3850  ;;  %v1573_v42 = vmul.f32 %v4866_v34, %v1572_v47  ;;  %v1592_v48 = vand.u32 2147483647, %v4903_v26  ;;  %v1580_v32 = vmul.f32 -0.5, %v4914_v46  ;;  %vm1566_vm6 = vcmp.lt.f32.partialorder %v1565_v28, 0.0004427343 }
 0x23c   : > { %v3853_v21 = vpop.eup %3852  ;;  %v1781_v45 = vmul.f32 %v1736_v59, %v4940_v17  ;;  %v1517_v58 = vmul.f32 1.442695, %v1488_v12  ;;  %v1487_v61 = vsub.f32 0.0, %v1471_v52  ;;  %1817 = vrot.lane.b32.xlu1 %v1782_v56, %s3953_s25  ;;  %v1604_v27 = vadd.f32 1.0, %v4944_v37 }
 0x23d   : > { %v3695_v1 = vpop.f32.mrf.mxu1  ;;  %v1570_v40 = vmul.f32 0.6931472, %v3853_v21  ;;  %v4957_v3 = vpop.eup %3854  ;;  %v1591_v55 = vmul.f32 %v4903_v26, %v1590_v13  ;;  %v1674_v47 = vmax.f32 %v4845_v23, 0.0  ;;  %v1607_v56 = vmul.f32 -0.5, %v4944_v37 }
 0x23e   : > { %3866 = vpow2.f32 %v1517_v58  ;;  %v1515_v59 = vmul.f32 1.442695, %v1487_v61  ;;  %v4960_v5 = vadd.f32 %v3695_v1, %v4818_v50  ;;  %1815 = vrot.lane.b32.xlu0 %v1781_v45, %s3953_s25  ;;  %v3857_v4 = vpop.eup %3856  ;;  %v1595_v43 = vadd.f32 1.0, %v4957_v3  ;;  %v1746_v61 = vpop.permute.xlu1 %1745 }
 0x23f   : > { %v1450_v30 = vpop.f32.mrf.mxu1  ;;  %v1576_v34 = vsel %vm4952_vm5, %v1573_v42, %v1570_v40  ;;  %3868 = vlog2.f32 %v1604_v27  ;;  %v1561_v49 = vmul.f32 0.6931472, %v3857_v4  ;;  %vm1593_vm7 = vcmp.lt.f32.partialorder %v1592_v48, 0.0004427343  ;;  %v1744_v13 = vpop.permute.xlu0 %1743 }
 0x240   : > { %3870 = vpow2.f32 %v1515_v59  ;;  %v1474_v19 = vand.u32 2147483647, %v4960_v5  ;;  %v4969_v44 = vadd.f32 %v4818_v50, %v1450_v30  ;;  %v4971_v14 = vadd.f32 %v1672_v39, %v1576_v34 }
 0x241   : > { %v1567_v50 = vsel %vm1566_vm6, %v1564_v0, %v1561_v49  ;;  %3872 = vlog2.f32 %v1595_v43  ;;  %v1581_v36 = vadd.f32 1.0, %v1580_v32  ;;  %v1583_v58 = vand.u32 2147483647, %v4914_v46 }
 0x242   : > { %v1490_v10 = vsub.f32 0.0, %v1474_v19  ;;  %v1473_v20 = vand.u32 2147483647, %v4969_v44  ;;  %v1784_v9 = vmul.f32 %v1742_v29, %v4971_v14  ;;  %v4982_v52 = vadd.f32 %v1671_v54, %v1567_v50 }
 0x243   : > { %v4978_v25 = vpop.eup %3858  ;;  %v1608_v42 = vadd.f32 1.0, %v1607_v56  ;;  %v1582_v59 = vmul.f32 %v4914_v46, %v1581_v36  ;;  %v1610_v28 = vand.u32 2147483647, %v4944_v37  ;;  %v1598_v30 = vmul.f32 -0.5, %v4957_v3 }
 0x244   : > { %v3861_v57 = vpop.eup %3860  ;;  %v1521_v15 = vmul.f32 1.442695, %v1490_v10  ;;  %v1489_v12 = vsub.f32 0.0, %v1473_v20  ;;  %1821 = vrot.lane.b32.xlu1 %v1784_v9, %s3953_s25  ;;  %v1622_v21 = vadd.f32 1.0, %v4978_v25  ;;  %v1783_v45 = vmul.f32 %v1740_v53, %v4982_v52 }
 0x245   : > { %v4986_v39 = vpop.eup %3862  ;;  %v1588_v41 = vmul.f32 0.6931472, %v3861_v57  ;;  %vm1584_vm8 = vcmp.lt.f32.partialorder %v1583_v58, 0.0004427343  ;;  %v1673_v34 = vmax.f32 %v4849_v62, 0.0  ;;  %v1609_v46 = vmul.f32 %v4944_v37, %v1608_v42 }
 0x246   : > { %3874 = vpow2.f32 %v1521_v15  ;;  %v1519_v26 = vmul.f32 1.442695, %v1489_v12  ;;  %v3865_v1 = vpop.eup %3864  ;;  %1819 = vrot.lane.b32.xlu0 %v1783_v45, %s3953_s25  ;;  %v1613_v60 = vadd.f32 1.0, %v4986_v39  ;;  %v1676_v48 = vmax.f32 %v4858_v8, 0.0 }
 0x247   : > { %v1594_v27 = vsel %vm1593_vm7, %v1591_v55, %v1588_v41  ;;  %3876 = vlog2.f32 %v1622_v21  ;;  %v1579_v54 = vmul.f32 0.6931472, %v3865_v1  ;;  %vm1611_vm9 = vcmp.lt.f32.partialorder %v1610_v28, 0.0004427343 }
 0x248   : > { %3878 = vpow2.f32 %v1519_v26  ;;  %v4992_v40 = vadd.f32 %v1674_v47, %v1594_v27  ;;  %v1599_v20 = vadd.f32 1.0, %v1598_v30  ;;  %v1625_v9 = vmul.f32 -0.5, %v4978_v25  ;;  %v1750_v47 = vpop.permute.xlu1 %1749 }
 0x249   : > { %3880 = vlog2.f32 %v1613_v60  ;;  %v1585_v4 = vsel %vm1584_vm8, %v1582_v59, %v1579_v54  ;;  %v1601_v50 = vand.u32 2147483647, %v4957_v3  ;;  %v1616_v12 = vmul.f32 -0.5, %v4986_v39 }
 0x24a   : > { %v1786_v29 = vmul.f32 %v1746_v61, %v4992_v40  ;;  %v5002_v49 = vadd.f32 %v1673_v34, %v1585_v4  ;;  %v1600_v41 = vmul.f32 %v4957_v3, %v1599_v20  ;;  %v1626_v36 = vadd.f32 1.0, %v1625_v9  ;;  %v1748_v61 = vpop.permute.xlu0 %1747 }
 0x24b   : > { %v5000_v0 = vpop.eup %3866  ;;  %vm1602_vm10 = vcmp.lt.f32.partialorder %v1601_v50, 0.0004427343  ;;  %v1675_v26 = vmax.f32 %v4863_v31, 0.0  ;;  %v1628_v45 = vand.u32 2147483647, %v4978_v25  ;;  %v1617_v60 = vadd.f32 1.0, %v1616_v12 }
 0x24c   : > { %v3869_v19 = vpop.eup %3868  ;;  %1825 = vrot.lane.b32.xlu1 %v1786_v29, %s3953_s25  ;;  %v1640_v32 = vadd.f32 1.0, %v5000_v0  ;;  %v1785_v53 = vmul.f32 %v1744_v13, %v5002_v49  ;;  %v1643_v3 = vmul.f32 -0.5, %v5000_v0  ;;  %v1627_v30 = vmul.f32 %v4978_v25, %v1626_v36 }
 0x24d   : > { %v5008_v43 = vpop.eup %3870  ;;  %v1606_v10 = vmul.f32 0.6931472, %v3869_v19  ;;  %v1678_v29 = vmax.f32 %v4884_v38, 0.0  ;;  %v1619_v34 = vand.u32 2147483647, %v4986_v39  ;;  %v1618_v20 = vmul.f32 %v4986_v39, %v1617_v60 }
 0x24e   : > { %3882 = vlog2.f32 %v1640_v32  ;;  %v1631_v55 = vadd.f32 1.0, %v5008_v43  ;;  %v3873_v57 = vpop.eup %3872  ;;  %1823 = vrot.lane.b32.xlu0 %v1785_v53, %s3953_s25  ;;  %vm1629_vm11 = vcmp.lt.f32.partialorder %v1628_v45, 0.0004427343  ;;  %v1634_v4 = vmul.f32 -0.5, %v5008_v43 }
 0x24f   : > { %v1612_v37 = vsel %vm1611_vm9, %v1609_v46, %v1606_v10  ;;  %v1597_v56 = vmul.f32 0.6931472, %v3873_v57  ;;  %v1754_v46 = vpop.permute.xlu1 %1753  ;;  %v1644_v9 = vadd.f32 1.0, %v1643_v3  ;;  %vm1620_vm12 = vcmp.lt.f32.partialorder %v1619_v34, 0.0004427343 }
 0x250   : > { %v5015_v15 = vadd.f32 %v1676_v48, %v1612_v37  ;;  %3884 = vlog2.f32 %v1631_v55  ;;  %v1677_v53 = vmax.f32 %v4892_v18, 0.0  ;;  %v1646_v50 = vand.u32 2147483647, %v5000_v0 }
 0x251   : > { %v1603_v27 = vsel %vm1602_vm10, %v1600_v41, %v1597_v56  ;;  %v1635_v57 = vadd.f32 1.0, %v1634_v4  ;;  %v1637_v41 = vand.u32 2147483647, %v5008_v43  ;;  %v1645_v36 = vmul.f32 %v5000_v0, %v1644_v9 }
 0x252   : > { %v1788_v21 = vmul.f32 %v1750_v47, %v5015_v15  ;;  %v5024_v42 = vadd.f32 %v1675_v26, %v1603_v27  ;;  %v1752_v47 = vpop.permute.xlu0 %1751  ;;  %vm1647_vm13 = vcmp.lt.f32.partialorder %v1646_v50, 0.0004427343  ;;  %v1679_v0 = vmax.f32 %v4932_v35, 0.0 }
 0x253   : > { %v5022_v58 = vpop.eup %3874  ;;  %v1758_v27 = vpop.permute.xlu1 %1757  ;;  %v1636_v3 = vmul.f32 %v5008_v43, %v1635_v57  ;;  %vm1638_vm14 = vcmp.lt.f32.partialorder %v1637_v41, 0.0004427343  ;;  %v1682_v9 = vmax.f32 %v4960_v5, 0.0  ;;  %vm2951_vm3 = vcmask 392192  }
 0x254   : > { %v3877_v1 = vpop.eup %3876  ;;  %1829 = vrot.lane.b32.xlu1 %v1788_v21, %s3953_s25  ;;  %v1658_v54 = vadd.f32 1.0, %v5022_v58  ;;  %v1787_v13 = vmul.f32 %v1748_v61, %v5024_v42  ;;  %v1661_v21 = vmul.f32 -0.5, %v5022_v58  ;;  %v1680_v61 = vmax.f32 %v4924_v6, 0.0 }
 0x255   : > { %v5029_v59 = vpop.eup %3878  ;;  %v1624_v28 = vmul.f32 0.6931472, %v3877_v1 }
 0x256   : > { %3886 = vlog2.f32 %v1658_v54  ;;  %v3881_v19 = vpop.eup %3880  ;;  %v1649_v32 = vadd.f32 1.0, %v5029_v59  ;;  %1827 = vrot.lane.b32.xlu0 %v1787_v13, %s3953_s25  ;;  %v1662_v34 = vadd.f32 1.0, %v1661_v21 }
 0x257   : > { %v1630_v48 = vsel %vm1629_vm11, %v1627_v30, %v1624_v28  ;;  %v1615_v25 = vmul.f32 0.6931472, %v3881_v19  ;;  %v1652_v28 = vmul.f32 -0.5, %v5029_v59  ;;  %v1756_v30 = vpop.permute.xlu0 %1755  ;;  %v1664_v19 = vand.u32 2147483647, %v5022_v58  ;;  %v1762_v50 = vpop.permute.xlu1 %1761 }
 0x258   : > { %v5038_v10 = vadd.f32 %v1678_v29, %v1630_v48  ;;  %3888 = vlog2.f32 %v1649_v32 }
 0x259   : > { %v1621_v37 = vsel %vm1620_vm12, %v1618_v20, %v1615_v25  ;;  %v1653_v48 = vadd.f32 1.0, %v1652_v28  ;;  %v1663_v25 = vmul.f32 %v5022_v58, %v1662_v34  ;;  %v1655_v20 = vand.u32 2147483647, %v5029_v59 }
 0x25a   : > { %v1790_v55 = vmul.f32 %v1754_v46, %v5038_v10  ;;  %v5044_v56 = vadd.f32 %v1677_v53, %v1621_v37  ;;  %vm1665_vm15 = vcmp.lt.f32.partialorder %v1664_v19, 0.0004427343 }
 0x25b   : > { %v3883_v12 = vpop.eup %3882  ;;  %v1654_v57 = vmul.f32 %v5029_v59, %v1653_v48  ;;  %vm1656_vm1 = vcmp.lt.f32.partialorder %v1655_v20, 0.0004427343  ;;  %v1760_v41 = vpop.permute.xlu0 %1759 }
 0x25c   : > { %1833 = vrot.lane.b32.xlu1 %v1790_v55, %s3953_s25  ;;  %v1642_v39 = vmul.f32 0.6931472, %v3883_v12  ;;  %v1789_v45 = vmul.f32 %v1752_v47, %v5044_v56  ;;  %v1681_v12 = vmax.f32 %v4969_v44, 0.0 }
 0x25d   : > { %v3885_v26 = vpop.eup %3884 }
 0x25e   : > { %v1648_v1 = vsel %vm1647_vm13, %v1645_v36, %v1642_v39  ;;  %v1633_v60 = vmul.f32 0.6931472, %v3885_v26  ;;  %1831 = vrot.lane.b32.xlu0 %v1789_v45, %s3953_s25 }
 0x25f   : > { %v5054_v54 = vadd.f32 %v1680_v61, %v1648_v1 }
 0x260   : > { %v1639_v29 = vsel %vm1638_vm14, %v1636_v3, %v1633_v60 }
 0x261   : > { %v1792_v13 = vmul.f32 %v1758_v27, %v5054_v54  ;;  %v5059_v4 = vadd.f32 %v1679_v0, %v1639_v29 }
 0x263   : > { %v3887_v46 = vpop.eup %3886  ;;  %v1791_v43 = vmul.f32 %v1756_v30, %v5059_v4  ;;  %1837 = vrot.lane.b32.xlu1 %v1792_v13, %s3953_s25 }
 0x264   : > { %v1660_v32 = vmul.f32 0.6931472, %v3887_v46 }
 0x265   : > { %1835 = vrot.lane.b32.xlu0 %v1791_v43, %s3953_s25  ;;  %v3889_v53 = vpop.eup %3888 }
 0x266   : > { %v1666_v55 = vsel %vm1665_vm15, %v1663_v25, %v1660_v32  ;;  %v1651_v37 = vmul.f32 0.6931472, %v3889_v53  ;;  %v2199_v53 = vld [vmem:[%s6067_s8 + $0x350] sm:$0xff] }
 0x267   : > { %v5068_v47 = vadd.f32 %v1682_v9, %v1666_v55  ;;  %2242 = vmatprep.subr.mxu1 %v2199_v53  ;;  %v2163_v53 = vld [vmem:[%s6067_s8 + $0x230] sm:$0xff] }
 0x268   : > { %v1657_v39 = vsel %vm1656_vm1, %v1654_v57, %v1651_v37 }
 0x269   : > { %v1794_v58 = vmul.f32 %v1762_v50, %v5068_v47  ;;  %v5073_v36 = vadd.f32 %v1681_v12, %v1657_v39  ;;  %v2201_v50 = vld [vmem:[%s6067_s8 + $0x360] sm:$0xff]  ;;  %v2198_v12 = vld [vmem:[%s6067_s8 + $0x348] sm:$0xff] }
 0x26a   : > { %2403 = vmatprep.subr.mxu0 %v2201_v50  ;;  %2243 = vmatpush1.msra.mxu1 %v2198_v12  ;;  %v2165_v50 = vld [vmem:[%s6067_s8 + $0x240] sm:$0xff]  ;;  %v2158_v12 = vld [vmem:[%s6067_s8 + $0x208] sm:$0xff] }
 0x26b   : > { %1841 = vrot.lane.b32.xlu1 %v1794_v58, %s3953_s25  ;;  %v1793_v21 = vmul.f32 %v1760_v41, %v5073_v36  ;;  %v2200_v58 = vld [vmem:[%s6067_s8 + $0x358] sm:$0xff] }
 0x26c   : > { %v2192_v41 = vld [vmem:[%s6067_s8 + $0x318] sm:$0xff] }
 0x26d   : > { %1839 = vrot.lane.b32.xlu0 %v1793_v21, %s3953_s25  ;;  %v2194_v21 = vld [vmem:[%s6067_s8 + $0x328] sm:$0xff]  ;;  %2244 = vmatprep.subr.mxu1 %v2192_v41  ;;  %v2152_v41 = vld [vmem:[%s6067_s8 + $0x1d8] sm:$0xff] }
 0x2a6   : > { %v1814_v26 = vpop.permute.xlu1 %1813 }
 0x2a7   : > { %v1860_v45 = vadd.f32 %v1814_v26, %v4821_v33 }
 0x2a8   : > { %v1812_v61 = vpop.permute.xlu0 %1811 }
 0x2a9   : > { %v1859_v59 = vadd.f32 %v1812_v61, %v4825_v51  ;;  %2872 = vrot.lane.b32.xlu1 %v1860_v45, %s3954_s29  ;;  %v2191_v61 = vld [vmem:[%s6067_s8 + $0x310] sm:$0xff] }
 0x2aa   : > { %2245 = vmatpush1.msra.mxu1 %v2191_v61  ;;  %v2142_v61 = vld [vmem:[%s6067_s8 + $0x188] sm:$0xff] }
 0x2ab   : > { %2870 = vrot.lane.b32.xlu0 %v1859_v59, %s3954_s29  ;;  %3700 = vmatprep.mubr.msk.f32.mxu0 %vm646_vm0, %v1859_v59  ;;  %v2193_v59 = vld [vmem:[%s6067_s8 + $0x320] sm:$0xff] }
 0x2ac   : > { %3701 = vmatmul.mubr.msk.f32.vlgmr.msra.gmra.mxu0 %vm646_vm0, %v1860_v45 }
 0x2ad   : > { %2404 = vmatpush1.msra.mxu0 %v2200_v58  ;;  %v2150_v58 = vld [vmem:[%s6067_s8 + $0x1c8] sm:$0xff] }
 0x2ae   : > { %v1818_v27 = vpop.permute.xlu1 %1817  ;;  %2405 = vmatprep.subr.mxu0 %v2194_v21  ;;  %v2151_v21 = vld [vmem:[%s6067_s8 + $0x1d0] sm:$0xff] }
 0x2af   : > { %v1862_v1 = vadd.f32 %v1818_v27, %v4829_v11  ;;  %v2185_v27 = vld [vmem:[%s6067_s8 + $0x2e0] sm:$0xff]  ;;  %2406 = vmatpush1.msra.mxu0 %v2193_v59  ;;  %v2144_v59 = vld [vmem:[%s6067_s8 + $0x198] sm:$0xff] }
 0x2b0   : > { %v1816_v60 = vpop.permute.xlu0 %1815  ;;  %2246 = vmatprep.subr.mxu1 %v2185_v27  ;;  %v2136_v27 = vld [vmem:[%s6067_s8 + $0x158] sm:$0xff] }
 0x2b1   : > { %v1861_v3 = vadd.f32 %v1816_v60, %v4833_v2  ;;  %2876 = vrot.lane.b32.xlu1 %v1862_v1, %s3954_s29  ;;  %v2184_v60 = vld [vmem:[%s6067_s8 + $0x2d8] sm:$0xff] }
 0x2b2   : > { %2247 = vmatpush1.msra.mxu1 %v2184_v60  ;;  %v2135_v60 = vld [vmem:[%s6067_s8 + $0x150] sm:$0xff] }
 0x2b3   : > { %2874 = vrot.lane.b32.xlu0 %v1861_v3, %s3954_s29  ;;  %3703 = vmatprep.mubr.msk.f32.mxu0 %vm646_vm0, %v1861_v3  ;;  %v2186_v3 = vld [vmem:[%s6067_s8 + $0x2e8] sm:$0xff] }
 0x2b4   : > { %3704 = vmatmul.mubr.msk.f32.gmra.mxu0 %vm646_vm0, %v1862_v1  ;;  %v2187_v1 = vld [vmem:[%s6067_s8 + $0x2f0] sm:$0xff] }
 0x2b5   : > { %2407 = vmatprep.subr.mxu0 %v2187_v1  ;;  %v2138_v1 = vld [vmem:[%s6067_s8 + $0x168] sm:$0xff] }
 0x2b6   : > { %v1822_v0 = vpop.permute.xlu1 %1821  ;;  %2408 = vmatpush1.msra.mxu0 %v2186_v3  ;;  %v2137_v3 = vld [vmem:[%s6067_s8 + $0x160] sm:$0xff] }
 0x2b7   : > { %v1864_v28 = vadd.f32 %v1822_v0, %v4837_v7  ;;  %v2178_v0 = vld [vmem:[%s6067_s8 + $0x2a8] sm:$0xff] }
 0x2b8   : > { %v1820_v30 = vpop.permute.xlu0 %1819  ;;  %2248 = vmatprep.subr.mxu1 %v2178_v0  ;;  %v2129_v0 = vld [vmem:[%s6067_s8 + $0x120] sm:$0xff] }
 0x2b9   : > { %2880 = vrot.lane.b32.xlu1 %v1864_v28, %s3954_s29  ;;  %v1863_v29 = vadd.f32 %v1820_v30, %v4841_v16  ;;  %v2177_v30 = vld [vmem:[%s6067_s8 + $0x2a0] sm:$0xff] }
 0x2ba   : > { %2249 = vmatpush1.msra.mxu1 %v2177_v30  ;;  %v2128_v30 = vld [vmem:[%s6067_s8 + $0x118] sm:$0xff] }
 0x2bb   : > { %2878 = vrot.lane.b32.xlu0 %v1863_v29, %s3954_s29  ;;  %3706 = vmatprep.mubr.msk.f32.mxu0 %vm646_vm0, %v1863_v29  ;;  %v2179_v29 = vld [vmem:[%s6067_s8 + $0x2b0] sm:$0xff] }
 0x2bc   : > { %3707 = vmatmul.mubr.msk.f32.gmra.mxu0 %vm646_vm0, %v1864_v28  ;;  %v2180_v28 = vld [vmem:[%s6067_s8 + $0x2b8] sm:$0xff] }
 0x2bd   : > { %2409 = vmatprep.subr.mxu0 %v2180_v28  ;;  %v2131_v28 = vld [vmem:[%s6067_s8 + $0x130] sm:$0xff] }
 0x2be   : > { %v1826_v34 = vpop.permute.xlu1 %1825  ;;  %2410 = vmatpush1.msra.mxu0 %v2179_v29  ;;  %v2130_v29 = vld [vmem:[%s6067_s8 + $0x128] sm:$0xff] }
 0x2bf   : > { %v1866_v13 = vadd.f32 %v1826_v34, %v4845_v23  ;;  %v2171_v34 = vld [vmem:[%s6067_s8 + $0x270] sm:$0xff] }
 0x2c0   : > { %v1824_v19 = vpop.permute.xlu0 %1823  ;;  %2250 = vmatprep.subr.mxu1 %v2171_v34  ;;  %v2122_v34 = vld [vmem:[%s6067_s8 + $0xe8] sm:$0xff] }
 0x2c1   : > { %2884 = vrot.lane.b32.xlu1 %v1866_v13, %s3954_s29  ;;  %v1865_v46 = vadd.f32 %v1824_v19, %v4849_v62  ;;  %v2173_v19 = vld [vmem:[%s6067_s8 + $0x280] sm:$0xff] }
 0x2c2   : > { %2411 = vmatprep.subr.mxu0 %v2173_v19  ;;  %v2121_v19 = vld [vmem:[%s6067_s8 + $0xe0] sm:$0xff] }
 0x2c3   : > { %2882 = vrot.lane.b32.xlu0 %v1865_v46, %s3954_s29  ;;  %3709 = vmatprep.mubr.msk.f32.mxu0 %vm646_vm0, %v1865_v46 }
 0x2c4   : > { %3710 = vmatmul.mubr.msk.f32.gmra.mxu0 %vm646_vm0, %v1866_v13 }
 0x2c6   : > { %v1830_v43 = vpop.permute.xlu1 %1829 }
 0x2c7   : > { %v1868_v48 = vadd.f32 %v1830_v43, %v4858_v8  ;;  %v2170_v43 = vld [vmem:[%s6067_s8 + $0x268] sm:$0xff] }
 0x2c8   : > { %v1828_v32 = vpop.permute.xlu0 %1827  ;;  %2251 = vmatpush1.msra.mxu1 %v2170_v43  ;;  %v2115_v43 = vld [vmem:[%s6067_s8 + $0xb0] sm:$0xff] }
 0x2c9   : > { %2888 = vrot.lane.b32.xlu1 %v1868_v48, %s3954_s29  ;;  %v1867_v25 = vadd.f32 %v1828_v32, %v4863_v31  ;;  %v2164_v32 = vld [vmem:[%s6067_s8 + $0x238] sm:$0xff] }
 0x2ca   : > { %2252 = vmatprep.subr.mxu1 %v2164_v32  ;;  %v2114_v32 = vld [vmem:[%s6067_s8 + $0xa8] sm:$0xff] }
 0x2cb   : > { %2886 = vrot.lane.b32.xlu0 %v1867_v25, %s3954_s29  ;;  %3712 = vmatprep.mubr.msk.f32.mxu0 %vm646_vm0, %v1867_v25  ;;  %v2166_v25 = vld [vmem:[%s6067_s8 + $0x248] sm:$0xff] }
 0x2cc   : > { %3713 = vmatmul.mubr.msk.f32.gmra.mxu0 %vm646_vm0, %v1868_v48  ;;  %v2172_v48 = vld [vmem:[%s6067_s8 + $0x278] sm:$0xff]  ;;  %2253 = vmatpush1.msra.mxu1 %v2163_v53  ;;  %v2107_v53 = vld [vmem:[%s6067_s8 + $0x70] sm:$0xff] }
 0x2cd   : > { %2412 = vmatpush1.msra.mxu0 %v2172_v48  ;;  %v2117_v48 = vld [vmem:[%s6067_s8 + $0xc0] sm:$0xff] }
 0x2ce   : > { %v1834_v20 = vpop.permute.xlu1 %1833  ;;  %2413 = vmatprep.subr.mxu0 %v2166_v25  ;;  %v2116_v25 = vld [vmem:[%s6067_s8 + $0xb8] sm:$0xff] }
 0x2cf   : > { %v1870_v9 = vadd.f32 %v1834_v20, %v4884_v38  ;;  %2414 = vmatpush1.msra.mxu0 %v2165_v50  ;;  %v2109_v50 = vld [vmem:[%s6067_s8 + $0x80] sm:$0xff] }
 0x2d0   : > { %v1832_v55 = vpop.permute.xlu0 %1831 }
 0x2d1   : > { %2892 = vrot.lane.b32.xlu1 %v1870_v9, %s3954_s29  ;;  %v1869_v37 = vadd.f32 %v1832_v55, %v4892_v18  ;;  %v2157_v55 = vld [vmem:[%s6067_s8 + $0x200] sm:$0xff] }
 0x2d2   : > { %2254 = vmatprep.subr.mxu1 %v2157_v55  ;;  %v2101_v55 = vld [vmem:[%s6067_s8 + $0x40] sm:$0xff] }
 0x2d3   : > { %2890 = vrot.lane.b32.xlu0 %v1869_v37, %s3954_s29  ;;  %3715 = vmatprep.mubr.msk.f32.mxu0 %vm646_vm0, %v1869_v37  ;;  %v2159_v37 = vld [vmem:[%s6067_s8 + $0x210] sm:$0xff] }
 0x2d4   : > { %3716 = vmatmul.mubr.msk.f32.gmra.mxu0 %vm646_vm0, %v1870_v9  ;;  %2415 = vmatprep.subr.mxu0 %v2159_v37  ;;  %v2103_v37 = vld [vmem:[%s6067_s8 + $0x50] sm:$0xff] }
 0x2d5   : > { %v1838_v57 = vpop.permute.xlu1 %1837  ;;  %2416 = vmatpush1.msra.mxu0 %v2158_v12  ;;  %v2102_v12 = vld [vmem:[%s6067_s8 + $0x48] sm:$0xff] }
 0x2d6   : > { %v1872_v39 = vadd.f32 %v1838_v57, %v4924_v6  ;;  %v2156_v57 = vld [vmem:[%s6067_s8 + $0x1f8] sm:$0xff]  ;;  %2417 = vmatprep.subr.mxu0 %v2152_v41 }
 0x2d7   : > { %v1836_v26 = vpop.permute.xlu0 %1835  ;;  %2255 = vmatpush1.msra.mxu1 %v2156_v57  ;;  %2418 = vmatpush1.msra.mxu0 %v2151_v21  ;;  %v2100_v57 = vld [vmem:[%s6067_s8 + $0x38] sm:$0xff]  ;;  %v2095_v21 = vld [vmem:[%s6067_s8 + $0x10] sm:$0xff] }
 0x2d8   : > { %v1871_v45 = vadd.f32 %v1836_v26, %v4932_v35  ;;  %2896 = vrot.lane.b32.xlu1 %v1872_v39, %s3954_s29  ;;  %v2143_v26 = vld [vmem:[%s6067_s8 + $0x190] sm:$0xff]  ;;  %2256 = vmatprep.subr.mxu1 %v2150_v58  ;;  %v2094_v58 = vld [vmem:[%s6067_s8 + $0x8] sm:$0xff]  ;;  %v2096_v41 = vld [vmem:[%s6067_s8 + $0x18] sm:$0xff] }
 0x2da   : > { %2894 = vrot.lane.b32.xlu0 %v1871_v45, %s3954_s29  ;;  %3718 = vmatprep.mubr.msk.f32.mxu0 %vm646_vm0, %v1871_v45  ;;  %v2145_v45 = vld [vmem:[%s6067_s8 + $0x1a0] sm:$0xff] }
 0x2db   : > { %3719 = vmatmul.mubr.msk.f32.gmra.mxu0 %vm646_vm0, %v1872_v39  ;;  %v2149_v39 = vld [vmem:[%s6067_s8 + $0x1c0] sm:$0xff]  ;;  %2419 = vmatprep.subr.mxu0 %v2145_v45  ;;  %v3955_v45 = vmov 0.0  }
 0x2dc   : > { %2257 = vmatpush1.msra.mxu1 %v2149_v39  ;;  %2420 = vmatpush1.msra.mxu0 %v2144_v59  ;;  %v2093_v39 = vld [vmem:[%s6067_s8] sm:$0xff]  ;;  %v2919_v59 = vsel %vm646_vm0, %v4821_v33, %v4894_v22  ;;  %v2921_v22 = vsel %vm646_vm0, %v4829_v11, %v4934_v24  ;;  %v2923_v11 = vsel %vm646_vm0, %v4837_v7, %v4971_v14 }
 0x2dd   : > { %v1842_v13 = vpop.permute.xlu1 %1841  ;;  %2258 = vmatprep.subr.mxu1 %v2143_v26  ;;  %2421 = vmatprep.subr.mxu0 %v2138_v1  ;;  %v2203_v26 = vld [vmem:[%s6067_s8 + $0x370] sm:$0xff]  ;;  %v2925_v7 = vsel %vm646_vm0, %v4845_v23, %v4992_v40  ;;  %v2927_v23 = vsel %vm646_vm0, %v4858_v8, %v5015_v15  ;;  %v2929_v8 = vsel %vm646_vm0, %v4884_v38, %v5038_v10 }
 0x2de   : > { %v1874_v46 = vadd.f32 %v1842_v13, %v4960_v5  ;;  %2259 = vmatpush1.msra.mxu1 %v2142_v61  ;;  %2422 = vmatpush1.msra.mxu0 %v2137_v3  ;;  %v2124_v13 = vld [vmem:[%s6067_s8 + $0xf8] sm:$0xff]  ;;  %v2918_v3 = vsel %vm646_vm0, %v4825_v51, %v4899_v63  ;;  %v2931_v38 = vsel %vm646_vm0, %v4924_v6, %v5054_v54 }
 0x2df   : > { %v1840_v20 = vpop.permute.xlu0 %1839  ;;  %2260 = vmatprep.subr.mxu1 %v2136_v27  ;;  %2423 = vmatprep.subr.mxu0 %v2131_v28  ;;  %v5327_v61 = vld [vmem:[%s6067_s8 + $0x378] sm:$0xff]  ;;  %v2933_v6 = vsel %vm646_vm0, %v4960_v5, %v5068_v47  ;;  %v5433_v5 = vld [vmem:[%s6066_s7] ss:$0 sm:$0xff] }
 0x2e0   : > { %2900 = vrot.lane.b32.xlu1 %v1874_v46, %s3954_s29  ;;  %v1873_v9 = vadd.f32 %v1840_v20, %v4969_v44  ;;  %2261 = vmatpush1.msra.mxu1 %v2135_v60  ;;  %v2108_v20 = vld [vmem:[%s6067_s8 + $0x78] sm:$0xff] }
 0x2e1   : > { %2262 = vmatprep.subr.mxu1 %v2129_v0  ;;  %2424 = vmatpush1.msra.mxu0 %v2130_v29  ;;  %v2920_v29 = vsel %vm646_vm0, %v4833_v2, %v4940_v17  ;;  %v2922_v2 = vsel %vm646_vm0, %v4841_v16, %v4982_v52  ;;  %v2924_v16 = vsel %vm646_vm0, %v4849_v62, %v5002_v49 }
 0x2e2   : > { %2898 = vrot.lane.b32.xlu0 %v1873_v9, %s3954_s29  ;;  %3721 = vmatprep.mubr.msk.f32.mxu0 %vm646_vm0, %v1873_v9  ;;  %v2110_v9 = vld [vmem:[%s6067_s8 + $0x88] sm:$0xff]  ;;  %v2926_v62 = vsel %vm646_vm0, %v4863_v31, %v5024_v42  ;;  %v2928_v31 = vsel %vm646_vm0, %v4892_v18, %v5044_v56  ;;  %v2930_v18 = vsel %vm646_vm0, %v4932_v35, %v5059_v4  ;;  %s5754_s29 = scalar_lea.vmem %s6070_s11, %s6116_s14  ;;  %s3894_s14 = sshll.u32 %s3956_s26, 4  ;;  %s3895_s14 = int_to_ptr.vmem [resolvable:$false] %s3894_s14 }
 0x2e3   : > { %3722 = vmatmul.mubr.msk.f32.gmra.mxu0 %vm646_vm0, %v1874_v46  ;;  %2263 = vmatpush1.msra.mxu1 %v2128_v30  ;;  %v2123_v46 = vld [vmem:[%s6067_s8 + $0xf0] sm:$0xff]  ;;  %v2932_v35 = vsel %vm646_vm0, %v4969_v44, %v5073_v36  ;;  %v2202_v44 = vld [vmem:[%s6067_s8 + $0x368] sm:$0xff]  ;;  %v2196_v36 = vld [vmem:[%s6067_s8 + $0x338] sm:$0xff]  ;;  %s3896_s16 = scalar_lea.vmem %s3895_s14, 4096  ;;  %p3897_p0 = scmp.lt.s32.totalorder %s5769_s24, %s3895_s14 }
 0x2e4   : > { %2264 = vmatprep.subr.mxu1 %v2122_v34  ;;  %2425 = vmatprep.subr.mxu0 %v2124_v13 }
 0x2e5   : > { %2265 = vmatpush1.msra.mxu1 %v2121_v19  ;;  %2426 = vmatpush1.msra.mxu0 %v2123_v46 }
 0x2e6   : > { %2266 = vmatprep.subr.mxu1 %v2115_v43  ;;  %2427 = vmatprep.subr.mxu0 %v2117_v48 }
 0x2e7   : > { %2267 = vmatpush1.msra.mxu1 %v2114_v32  ;;  %2428 = vmatpush1.msra.mxu0 %v2116_v25 }
 0x2e8   : > { %2268 = vmatprep.subr.mxu1 %v2108_v20  ;;  %2429 = vmatprep.subr.mxu0 %v2110_v9 }
 0x2e9   : > { %2269 = vmatpush1.msra.mxu1 %v2107_v53  ;;  %2430 = vmatpush1.msra.mxu0 %v2109_v50 }
 0x2ea   : > { %2270 = vmatprep.subr.mxu1 %v2101_v55  ;;  %2431 = vmatprep.subr.mxu0 %v2103_v37 }
 0x2eb   : > { %2271 = vmatpush1.msra.mxu1 %v2100_v57  ;;  %2432 = vmatpush1.msra.mxu0 %v2102_v12 }
 0x2ec   : > { %2272 = vmatprep.subr.mxu1 %v2094_v58  ;;  %2433 = vmatprep.subr.mxu0 %v2096_v41 }
 0x2ed   : > { %2273 = vmatpush1.msra.mxu1 %v2093_v39  ;;  %2306 = vmatprep.mubr.f32.mxu1 %v3955_v45 }
 0x2ee   : > { %2434 = vmatpush1.msra.mxu0 %v2095_v21  ;;  %2467 = vmatprep.mubr.f32.mxu0 %v3955_v45 }
 0x2ef   : > { %2564 = vmatprep.subr.mxu1 %v2203_v26  ;;  %3724 = vmatprep.subr.mxu0 %v5327_v61 }
 0x31b   : > { %v2873_v27 = vpop.permute.xlu1 %2872 }
 0x31c   : > { %v2936_v1 = vsel %vm2934_vm2, %v2919_v59, %v2873_v27 }
 0x31d   : > { %v2953_v60 = vsel %vm2951_vm3, %v2936_v1, 0.0  ;;  %v2871_v0 = vpop.permute.xlu0 %2870 }
 0x31e   : > { %2969 = vst [vmem:[%s5340_s19 + $0x8] sm:$0xff] %v2953_v60  ;;  %v2935_v28 = vsel %vm2934_vm2, %v2918_v3, %v2871_v0 }
 0x31f   : > { %v2952_v33 = vsel %vm2951_vm3, %v2935_v28, 0.0 }
 0x320   : > { %2968 = vst [vmem:[%s5340_s19] sm:$0xff] %v2952_v33 }
 0x323   : > { %v2877_v30 = vpop.permute.xlu1 %2876 }
 0x324   : > { %v2938_v51 = vsel %vm2934_vm2, %v2921_v22, %v2877_v30 }
 0x325   : > { %v2955_v63 = vsel %vm2951_vm3, %v2938_v51, 0.0  ;;  %v2875_v34 = vpop.permute.xlu0 %2874  ;;  %v2195_v51 = vld [vmem:[%s6067_s8 + $0x330] sm:$0xff] }
 0x326   : > { %2971 = vst [vmem:[%s5340_s19 + $0x18] sm:$0xff] %v2955_v63  ;;  %v2937_v13 = vsel %vm2934_vm2, %v2920_v29, %v2875_v34 }
 0x327   : > { %v2954_v19 = vsel %vm2951_vm3, %v2937_v13, 0.0  ;;  %v2189_v13 = vld [vmem:[%s6067_s8 + $0x300] sm:$0xff] }
 0x328   : > { %2970 = vst [vmem:[%s5340_s19 + $0x10] sm:$0xff] %v2954_v19  ;;  %v2197_v19 = vld [vmem:[%s6067_s8 + $0x340] sm:$0xff] }
 0x32b   : > { %v2881_v24 = vpop.permute.xlu1 %2880 }
 0x32c   : > { %v2940_v46 = vsel %vm2934_vm2, %v2923_v11, %v2881_v24  ;;  %v2188_v24 = vld [vmem:[%s6067_s8 + $0x2f8] sm:$0xff] }
 0x32d   : > { %v2957_v43 = vsel %vm2951_vm3, %v2940_v46, 0.0  ;;  %v2879_v17 = vpop.permute.xlu0 %2878 }
 0x32e   : > { %2973 = vst [vmem:[%s5340_s19 + $0x28] sm:$0xff] %v2957_v43  ;;  %v2939_v48 = vsel %vm2934_vm2, %v2922_v2, %v2879_v17  ;;  %v2182_v43 = vld [vmem:[%s6067_s8 + $0x2c8] sm:$0xff]  ;;  %v2181_v17 = vld [vmem:[%s6067_s8 + $0x2c0] sm:$0xff] }
 0x32f   : > { %v2956_v32 = vsel %vm2951_vm3, %v2939_v48, 0.0  ;;  %v2190_v2 = vld [vmem:[%s6067_s8 + $0x308] sm:$0xff] }
 0x330   : > { %2972 = vst [vmem:[%s5340_s19 + $0x20] sm:$0xff] %v2956_v32 }
 0x333   : > { %v2885_v14 = vpop.permute.xlu1 %2884 }
 0x334   : > { %v2942_v25 = vsel %vm2934_vm2, %v2925_v7, %v2885_v14  ;;  %v2175_v7 = vld [vmem:[%s6067_s8 + $0x290] sm:$0xff] }
 0x335   : > { %v2959_v20 = vsel %vm2951_vm3, %v2942_v25, 0.0  ;;  %v2883_v52 = vpop.permute.xlu0 %2882  ;;  %v2183_v14 = vld [vmem:[%s6067_s8 + $0x2d0] sm:$0xff]  ;;  %v2174_v25 = vld [vmem:[%s6067_s8 + $0x288] sm:$0xff] }
 0x336   : > { %2975 = vst [vmem:[%s5340_s19 + $0x38] sm:$0xff] %v2959_v20  ;;  %v2941_v9 = vsel %vm2934_vm2, %v2924_v16, %v2883_v52  ;;  %v2168_v16 = vld [vmem:[%s6067_s8 + $0x258] sm:$0xff] }
 0x337   : > { %v2958_v53 = vsel %vm2951_vm3, %v2941_v9, 0.0  ;;  %v2176_v52 = vld [vmem:[%s6067_s8 + $0x298] sm:$0xff] }
 0x338   : > { %2974 = vst [vmem:[%s5340_s19 + $0x30] sm:$0xff] %v2958_v53  ;;  %v2167_v53 = vld [vmem:[%s6067_s8 + $0x250] sm:$0xff] }
 0x33b   : > { %v2889_v40 = vpop.permute.xlu1 %2888 }
 0x33c   : > { %v2944_v50 = vsel %vm2934_vm2, %v2927_v23, %v2889_v40 }
 0x33d   : > { %v2961_v55 = vsel %vm2951_vm3, %v2944_v50, 0.0  ;;  %v2887_v49 = vpop.permute.xlu0 %2886  ;;  %v2161_v50 = vld [vmem:[%s6067_s8 + $0x220] sm:$0xff] }
 0x33e   : > { %2977 = vst [vmem:[%s5340_s19 + $0x48] sm:$0xff] %v2961_v55  ;;  %v2943_v37 = vsel %vm2934_vm2, %v2926_v62, %v2887_v49  ;;  %v2169_v55 = vld [vmem:[%s6067_s8 + $0x260] sm:$0xff]  ;;  %v2160_v62 = vld [vmem:[%s6067_s8 + $0x218] sm:$0xff] }
 0x33f   : > { %v2960_v57 = vsel %vm2951_vm3, %v2943_v37, 0.0 }
 0x340   : > { %2976 = vst [vmem:[%s5340_s19 + $0x40] sm:$0xff] %v2960_v57 }
 0x343   : > { %v2893_v15 = vpop.permute.xlu1 %2892 }
 0x344   : > { %v2946_v12 = vsel %vm2934_vm2, %v2929_v8, %v2893_v15  ;;  %v2154_v8 = vld [vmem:[%s6067_s8 + $0x1e8] sm:$0xff] }
 0x345   : > { %v2963_v58 = vsel %vm2951_vm3, %v2946_v12, 0.0  ;;  %v2891_v42 = vpop.permute.xlu0 %2890  ;;  %v2162_v15 = vld [vmem:[%s6067_s8 + $0x228] sm:$0xff] }
 0x346   : > { %2979 = vst [vmem:[%s5340_s19 + $0x58] sm:$0xff] %v2963_v58  ;;  %v2945_v41 = vsel %vm2934_vm2, %v2928_v31, %v2891_v42  ;;  %v2153_v58 = vld [vmem:[%s6067_s8 + $0x1e0] sm:$0xff] }
 0x347   : > { %v2962_v39 = vsel %vm2951_vm3, %v2945_v41, 0.0  ;;  %v2147_v41 = vld [vmem:[%s6067_s8 + $0x1b0] sm:$0xff] }
 0x348   : > { %2978 = vst [vmem:[%s5340_s19 + $0x50] sm:$0xff] %v2962_v39  ;;  %v2155_v39 = vld [vmem:[%s6067_s8 + $0x1f0] sm:$0xff] }
 0x34a   : > { %v2897_v10 = vpop.permute.xlu1 %2896 }
 0x34b   : > { %v2948_v21 = vsel %vm2934_vm2, %v2931_v38, %v2897_v10  ;;  %v2146_v38 = vld [vmem:[%s6067_s8 + $0x1a8] sm:$0xff] }
 0x34c   : > { %v2965_v26 = vsel %vm2951_vm3, %v2948_v21, 0.0  ;;  %v2895_v56 = vpop.permute.xlu0 %2894 }
 0x34d   : > { %2981 = vst [vmem:[%s5340_s19 + $0x68] sm:$0xff] %v2965_v26  ;;  %v2947_v59 = vsel %vm2934_vm2, %v2930_v18, %v2895_v56  ;;  %v2140_v18 = vld [vmem:[%s6067_s8 + $0x178] sm:$0xff] }
 0x34e   : > { %v2964_v27 = vsel %vm2951_vm3, %v2947_v59, 0.0  ;;  %v2148_v56 = vld [vmem:[%s6067_s8 + $0x1b8] sm:$0xff] }
 0x34f   : > { %2980 = vst [vmem:[%s5340_s19 + $0x60] sm:$0xff] %v2964_v27  ;;  %v2139_v27 = vld [vmem:[%s6067_s8 + $0x170] sm:$0xff] }
 0x352   : > { %v2901_v54 = vpop.permute.xlu1 %2900 }
 0x353   : > { %v2950_v1 = vsel %vm2934_vm2, %v2933_v6, %v2901_v54 }
 0x354   : > { %v2967_v60 = vsel %vm2951_vm3, %v2950_v1, 0.0  ;;  %v2899_v4 = vpop.permute.xlu0 %2898  ;;  %v2133_v1 = vld [vmem:[%s6067_s8 + $0x140] sm:$0xff] }
 0x355   : > { %2983 = vst [vmem:[%s5340_s19 + $0x78] sm:$0xff] %v2967_v60  ;;  %v2949_v3 = vsel %vm2934_vm2, %v2932_v35, %v2899_v4  ;;  %v2141_v60 = vld [vmem:[%s6067_s8 + $0x180] sm:$0xff]  ;;  %v2132_v4 = vld [vmem:[%s6067_s8 + $0x138] sm:$0xff] }
 0x356   : > { %v2966_v0 = vsel %vm2951_vm3, %v2949_v3, 0.0 }
 0x357   : > { %2982 = vst [vmem:[%s5340_s19 + $0x70] sm:$0xff] %v2966_v0  ;;  %s3890_s19 = scalar_lea.vmem %s5769_s24, 2048 }
 0x358   : > { %p3891_p11 = scmp.ne.s32.totalorder %s5769_s24, %s3890_s19  ;;  %p3898_p1 = scmp.lt.s32.totalorder %s3896_s16, %s3890_s19 }
 0x35a   : > { %p3892_p12 = pnand %p3891_p11, %p4057_p5  ;;  %p3899_p2 = por %p3898_p1, %p3897_p0 }
 0x35c   : > { %p3893_p13 = pneg %p3892_p12 }
 0x35e   : > { %p3900_p3 = pnand %p3899_p2, %p3893_p13 }
 0x36c   : > { %v3702_v28 = vpop.f32.mrf.mxu0 }
 0x36d   : > { %v2004_v22 = vadd.f32 %v3702_v28, %v5433_v5 }
 0x36e   : > { %v1998_v47 = vpop.f32.mrf.mxu0 }
 0x36f   : > { %v1999_v33 = vadd.f32 %v5433_v5, %v1998_v47  ;;  %v5451_v29 = vmax.f32 %v2004_v22, 0.0  ;;  %v2126_v47 = vld [vmem:[%s6067_s8 + $0x108] sm:$0xff]  ;;  %v2125_v22 = vld [vmem:[%s6067_s8 + $0x100] sm:$0xff] }
 0x371   : > { %v5437_v30 = vmax.f32 %v1999_v33, 0.0  ;;  %v2134_v33 = vld [vmem:[%s6067_s8 + $0x148] sm:$0xff] }
 0x373   : > { %2307 = vmatmul.mubr.f32.vlgmr.msra.gmra.mxu1 %v5437_v30  ;;  %2468 = vmatmul.mubr.f32.vlgmr.msra.gmra.mxu0 %v5437_v30 }
 0x374   : > { %v3705_v63 = vpop.f32.mrf.mxu0  ;;  %2565 = vmatpush1.msra.mxu1 %v2202_v44  ;;  %2312 = vmatprep.mubr.f32.mxu1 %v3955_v45 }
 0x375   : > { %2473 = vmatprep.mubr.f32.mxu0 %v3955_v45  ;;  %2566 = vmatprep.subr.mxu1 %v2196_v36 }
 0x376   : > { %v2008_v34 = vpop.f32.mrf.mxu0  ;;  %2567 = vmatpush1.msra.mxu1 %v2195_v51  ;;  %3725 = vmatpush3.msra.mxu0 %v5327_v61  ;;  %v2014_v61 = vadd.f32 %v3705_v63, %v5433_v5  ;;  %v2119_v63 = vld [vmem:[%s6067_s8 + $0xd0] sm:$0xff] }
 0x377   : > { %v2009_v11 = vadd.f32 %v5433_v5, %v2008_v34  ;;  %2313 = vmatmul.mubr.f32.gmra.mxu1 %v5451_v29  ;;  %2474 = vmatmul.mubr.f32.gmra.mxu0 %v5451_v29  ;;  %v2127_v34 = vld [vmem:[%s6067_s8 + $0x110] sm:$0xff] }
 0x378   : > { %2318 = vmatprep.mubr.f32.mxu1 %v3955_v45  ;;  %2479 = vmatprep.mubr.f32.mxu0 %v3955_v45  ;;  %v5485_v48 = vmax.f32 %v2014_v61, 0.0  ;;  %v2112_v61 = vld [vmem:[%s6067_s8 + $0x98] sm:$0xff] }
 0x379   : > { %v5470_v46 = vmax.f32 %v2009_v11, 0.0  ;;  %2568 = vmatprep.subr.mxu1 %v2189_v13  ;;  %3726 = vmatprep.subr.mxu0 %v2197_v19 }
 0x37a   : > { %2569 = vmatpush1.msra.mxu1 %v2188_v24  ;;  %3727 = vmatpush3.msra.mxu0 %v2197_v19  ;;  %v2118_v19 = vld [vmem:[%s6067_s8 + $0xc8] sm:$0xff] }
 0x37b   : > { %2319 = vmatmul.mubr.f32.gmra.mxu1 %v5470_v46  ;;  %2480 = vmatmul.mubr.f32.gmra.mxu0 %v5470_v46 }
 0x37c   : > { %2324 = vmatprep.mubr.f32.mxu1 %v3955_v45  ;;  %2485 = vmatprep.mubr.f32.mxu0 %v3955_v45  ;;  %v3708_v32 = vpop.f32.mrf.mxu0 }
 0x37d   : > { %2570 = vmatprep.subr.mxu1 %v2182_v43  ;;  %3728 = vmatprep.subr.mxu0 %v2190_v2  ;;  %v2024_v23 = vadd.f32 %v3708_v32, %v5433_v5  ;;  %v2120_v43 = vld [vmem:[%s6067_s8 + $0xd8] sm:$0xff] }
 0x37e   : > { %2571 = vmatpush1.msra.mxu1 %v2181_v17  ;;  %3729 = vmatpush3.msra.mxu0 %v2190_v2  ;;  %v2018_v20 = vpop.f32.mrf.mxu0  ;;  %v2111_v17 = vld [vmem:[%s6067_s8 + $0x90] sm:$0xff] }
 0x37f   : > { %2325 = vmatmul.mubr.f32.gmra.mxu1 %v5485_v48  ;;  %2486 = vmatmul.mubr.f32.gmra.mxu0 %v5485_v48  ;;  %v2019_v9 = vadd.f32 %v5433_v5, %v2018_v20  ;;  %v5526_v37 = vmax.f32 %v2024_v23, 0.0  ;;  %v2104_v20 = vld [vmem:[%s6067_s8 + $0x58] sm:$0xff]  ;;  %v2106_v23 = vld [vmem:[%s6067_s8 + $0x68] sm:$0xff] }
 0x380   : > { %2330 = vmatprep.mubr.f32.mxu1 %v3955_v45  ;;  %2491 = vmatprep.mubr.f32.mxu0 %v3955_v45 }
 0x381   : > { %2572 = vmatprep.subr.mxu1 %v2175_v7  ;;  %3730 = vmatprep.subr.mxu0 %v2183_v14  ;;  %v5511_v40 = vmax.f32 %v2019_v9, 0.0 }
 0x382   : > { %2573 = vmatpush1.msra.mxu1 %v2174_v25  ;;  %3731 = vmatpush3.msra.mxu0 %v2183_v14  ;;  %v2105_v14 = vld [vmem:[%s6067_s8 + $0x60] sm:$0xff] }
 0x383   : > { %2574 = vmatprep.subr.mxu1 %v2168_v16  ;;  %3732 = vmatprep.subr.mxu0 %v2176_v52  ;;  %v2113_v25 = vld [vmem:[%s6067_s8 + $0xa0] sm:$0xff] }
 0x384   : > { %2575 = vmatpush1.msra.mxu1 %v2167_v53  ;;  %3733 = vmatpush3.msra.mxu0 %v2176_v52  ;;  %v3711_v49 = vpop.f32.mrf.mxu0  ;;  %v2098_v53 = vld [vmem:[%s6067_s8 + $0x28] sm:$0xff] }
 0x385   : > { %2331 = vmatmul.mubr.f32.gmra.mxu1 %v5511_v40  ;;  %2492 = vmatmul.mubr.f32.gmra.mxu0 %v5511_v40  ;;  %v2034_v31 = vadd.f32 %v3711_v49, %v5433_v5  ;;  %v2099_v49 = vld [vmem:[%s6067_s8 + $0x30] sm:$0xff] }
 0x386   : > { %2336 = vmatprep.mubr.f32.mxu1 %v3955_v45  ;;  %2497 = vmatprep.mubr.f32.mxu0 %v3955_v45  ;;  %v2028_v57 = vpop.f32.mrf.mxu0 }
 0x387   : > { %2576 = vmatprep.subr.mxu1 %v2161_v50  ;;  %3734 = vmatprep.subr.mxu0 %v2169_v55  ;;  %v2029_v12 = vadd.f32 %v5433_v5, %v2028_v57  ;;  %v5558_v21 = vmax.f32 %v2034_v31, 0.0 }
 0x388   : > { %2577 = vmatpush1.msra.mxu1 %v2160_v62  ;;  %3735 = vmatpush3.msra.mxu0 %v2169_v55  ;;  %v2097_v55 = vld [vmem:[%s6067_s8 + $0x20] sm:$0xff] }
 0x389   : > { %2337 = vmatmul.mubr.f32.gmra.mxu1 %v5526_v37  ;;  %2498 = vmatmul.mubr.f32.gmra.mxu0 %v5526_v37  ;;  %v5543_v42 = vmax.f32 %v2029_v12, 0.0 }
 0x38a   : > { %2342 = vmatprep.mubr.f32.mxu1 %v3955_v45  ;;  %2503 = vmatprep.mubr.f32.mxu0 %v3955_v45 }
 0x38b   : > { %2578 = vmatprep.subr.mxu1 %v2154_v8  ;;  %3736 = vmatprep.subr.mxu0 %v2162_v15 }
 0x38c   : > { %2579 = vmatpush1.msra.mxu1 %v2153_v58  ;;  %3737 = vmatpush3.msra.mxu0 %v2162_v15  ;;  %v3714_v10 = vpop.f32.mrf.mxu0 }
 0x38d   : > { %2343 = vmatmul.mubr.f32.gmra.mxu1 %v5543_v42  ;;  %2504 = vmatmul.mubr.f32.gmra.mxu0 %v5543_v42  ;;  %v2044_v6 = vadd.f32 %v3714_v10, %v5433_v5 }
 0x38e   : > { %2348 = vmatprep.mubr.f32.mxu1 %v3955_v45  ;;  %2509 = vmatprep.mubr.f32.mxu0 %v3955_v45  ;;  %v2038_v26 = vpop.f32.mrf.mxu0 }
 0x38f   : > { %2580 = vmatprep.subr.mxu1 %v2147_v41  ;;  %3738 = vmatprep.subr.mxu0 %v2155_v39  ;;  %v2039_v59 = vadd.f32 %v5433_v5, %v2038_v26  ;;  %v5590_v3 = vmax.f32 %v2044_v6, 0.0 }
 0x390   : > { %2581 = vmatpush1.msra.mxu1 %v2146_v38  ;;  %3739 = vmatpush3.msra.mxu0 %v2155_v39 }
 0x391   : > { %2349 = vmatmul.mubr.f32.gmra.mxu1 %v5558_v21  ;;  %2510 = vmatmul.mubr.f32.gmra.mxu0 %v5558_v21  ;;  %v5575_v54 = vmax.f32 %v2039_v59, 0.0 }
 0x392   : > { %2354 = vmatprep.mubr.f32.mxu1 %v3955_v45  ;;  %2515 = vmatprep.mubr.f32.mxu0 %v3955_v45 }
 0x393   : > { %2582 = vmatprep.subr.mxu1 %v2140_v18  ;;  %3740 = vmatprep.subr.mxu0 %v2148_v56 }
 0x394   : > { %2583 = vmatpush1.msra.mxu1 %v2139_v27  ;;  %3741 = vmatpush3.msra.mxu0 %v2148_v56  ;;  %v3717_v35 = vpop.f32.mrf.mxu0 }
 0x395   : > { %2355 = vmatmul.mubr.f32.gmra.mxu1 %v5575_v54  ;;  %2516 = vmatmul.mubr.f32.gmra.mxu0 %v5575_v54  ;;  %v2054_v36 = vadd.f32 %v3717_v35, %v5433_v5 }
 0x396   : > { %2360 = vmatprep.mubr.f32.mxu1 %v3955_v45  ;;  %2521 = vmatprep.mubr.f32.mxu0 %v3955_v45  ;;  %v2048_v0 = vpop.f32.mrf.mxu0 }
 0x397   : > { %2584 = vmatprep.subr.mxu1 %v2133_v1  ;;  %3742 = vmatprep.subr.mxu0 %v2141_v60  ;;  %v2049_v28 = vadd.f32 %v5433_v5, %v2048_v0  ;;  %v5623_v24 = vmax.f32 %v2054_v36, 0.0 }
 0x398   : > { %2585 = vmatpush1.msra.mxu1 %v2132_v4  ;;  %3743 = vmatpush3.msra.mxu0 %v2141_v60 }
 0x399   : > { %2361 = vmatmul.mubr.f32.gmra.mxu1 %v5590_v3  ;;  %2522 = vmatmul.mubr.f32.gmra.mxu0 %v5590_v3  ;;  %v5604_v44 = vmax.f32 %v2049_v28, 0.0 }
 0x39a   : > { %2366 = vmatprep.mubr.f32.mxu1 %v3955_v45  ;;  %2527 = vmatprep.mubr.f32.mxu0 %v3955_v45 }
 0x39b   : > { %v3720_v51 = vpop.f32.mrf.mxu0  ;;  %2586 = vmatprep.subr.mxu1 %v2126_v47  ;;  %3744 = vmatprep.subr.mxu0 %v2134_v33 }
 0x39c   : > { %2587 = vmatpush1.msra.mxu1 %v2125_v22  ;;  %3745 = vmatpush3.msra.mxu0 %v2134_v33  ;;  %v2064_v32 = vadd.f32 %v3720_v51, %v5433_v5 }
 0x39d   : > { %2367 = vmatmul.mubr.f32.gmra.mxu1 %v5604_v44  ;;  %2528 = vmatmul.mubr.f32.gmra.mxu0 %v5604_v44  ;;  %v2058_v13 = vpop.f32.mrf.mxu0 }
 0x39e   : > { %v2059_v11 = vadd.f32 %v5433_v5, %v2058_v13  ;;  %2372 = vmatprep.mubr.f32.mxu1 %v3955_v45  ;;  %2533 = vmatprep.mubr.f32.mxu0 %v3955_v45  ;;  %v5654_v52 = vmax.f32 %v2064_v32, 0.0 }
 0x39f   : > { %2588 = vmatprep.subr.mxu1 %v2119_v63  ;;  %3746 = vmatprep.subr.mxu0 %v2127_v34 }
 0x3a0   : > { %2589 = vmatpush1.msra.mxu1 %v2118_v19  ;;  %3747 = vmatpush3.msra.mxu0 %v2127_v34  ;;  %v5631_v2 = vmax.f32 %v2059_v11, 0.0 }
 0x3a1   : > { %2373 = vmatmul.mubr.f32.gmra.mxu1 %v5623_v24  ;;  %2534 = vmatmul.mubr.f32.gmra.mxu0 %v5623_v24 }
 0x3a2   : > { %2378 = vmatprep.mubr.f32.mxu1 %v3955_v45  ;;  %2539 = vmatprep.mubr.f32.mxu0 %v3955_v45 }
 0x3a3   : > { %2590 = vmatprep.subr.mxu1 %v2112_v61  ;;  %3748 = vmatprep.subr.mxu0 %v2120_v43  ;;  %v3723_v7 = vpop.f32.mrf.mxu0 }
 0x3a4   : > { %2591 = vmatpush1.msra.mxu1 %v2111_v17  ;;  %3749 = vmatpush3.msra.mxu0 %v2120_v43  ;;  %v2074_v62 = vadd.f32 %v3723_v7, %v5433_v5 }
 0x3a5   : > { %2379 = vmatmul.mubr.f32.gmra.mxu1 %v5631_v2  ;;  %2540 = vmatmul.mubr.f32.gmra.mxu0 %v5631_v2  ;;  %v2068_v16 = vpop.f32.mrf.mxu0 }
 0x3a6   : > { %2384 = vmatprep.mubr.f32.mxu1 %v3955_v45  ;;  %2545 = vmatprep.mubr.f32.mxu0 %v3955_v45  ;;  %v2069_v9 = vadd.f32 %v5433_v5, %v2068_v16  ;;  %v2092_v57 = vmax.f32 %v2074_v62, 0.0  ;;  %v2207_v5 = vlaneseq }
 0x3a7   : > { %2592 = vmatprep.subr.mxu1 %v2105_v14  ;;  %3750 = vmatprep.subr.mxu0 %v2113_v25 }
 0x3a8   : > { %2593 = vmatpush1.msra.mxu1 %v2104_v20  ;;  %3751 = vmatpush3.msra.mxu0 %v2113_v25  ;;  %v5663_v50 = vmax.f32 %v2069_v9, 0.0 }
 0x3a9   : > { %2385 = vmatmul.mubr.f32.gmra.mxu1 %v5654_v52  ;;  %2546 = vmatmul.mubr.f32.gmra.mxu0 %v5654_v52 }
 0x3aa   : > { %2390 = vmatprep.mubr.f32.mxu1 %v3955_v45  ;;  %2551 = vmatprep.mubr.f32.mxu0 %v3955_v45 }
 0x3ab   : > { %2594 = vmatprep.subr.mxu1 %v2098_v53  ;;  %3752 = vmatprep.subr.mxu0 %v2106_v23 }
 0x3ac   : > { %2595 = vmatpush1.msra.mxu1 %v2097_v55  ;;  %3753 = vmatpush3.msra.mxu0 %v2106_v23 }
 0x3ad   : > { %2391 = vmatmul.mubr.f32.gmra.mxu1 %v5663_v50  ;;  %2552 = vmatmul.mubr.f32.gmra.mxu0 %v5663_v50 }
 0x3ae   : > { %2396 = vmatprep.mubr.f32.mxu1 %v3955_v45  ;;  %2557 = vmatprep.mubr.f32.mxu0 %v3955_v45 }
 0x3af   : > { %3754 = vmatprep.subr.mxu0 %v2099_v49 }
 0x3b0   : > { %3755 = vmatpush3.msra.mxu0 %v2099_v49 }
 0x3b1   : > { %2397 = vmatmul.mubr.f32.gmra.mxu1 %v2092_v57  ;;  %2558 = vmatmul.mubr.f32.gmra.mxu0 %v2092_v57 }
 0x3b2   : > { %3756 = vmatprep.mubr.f32.mxu0 %v5437_v30  ;;  %2628 = vmatprep.mubr.f32.mxu1 %v3955_v45 }
 0x3b5   : > { %2629 = vmatmul.mubr.f32.vlgmr.msra.gmra.mxu1 %v5437_v30  ;;  %3757 = vmatmul.mubr.f32.vlgmr.msra.gmra.mxu0 %v5451_v29  ;;  %v5726_v30 = vshrl.u32 %v2207_v5, 7 }
 0x3b6   : > { %3759 = vmatprep.mubr.f32.mxu0 %v5470_v46  ;;  %2634 = vmatprep.mubr.f32.mxu1 %v3955_v45 }
 0x3b9   : > { %2635 = vmatmul.mubr.f32.gmra.mxu1 %v5451_v29  ;;  %3760 = vmatmul.mubr.f32.gmra.mxu0 %v5485_v48  ;;  %v2209_v29 = vsub.s32 0, %v5726_v30 }
 0x3ba   : > { %3762 = vmatprep.mubr.f32.mxu0 %v5511_v40  ;;  %2640 = vmatprep.mubr.f32.mxu1 %v3955_v45 }
 0x3bd   : > { %2641 = vmatmul.mubr.f32.gmra.mxu1 %v5470_v46  ;;  %3763 = vmatmul.mubr.f32.gmra.mxu0 %v5526_v37  ;;  %v2217_v46 = vsub.s32 2, %v5726_v30 }
 0x3be   : > { %3765 = vmatprep.mubr.f32.mxu0 %v5543_v42  ;;  %2646 = vmatprep.mubr.f32.mxu1 %v3955_v45 }
 0x3c1   : > { %2647 = vmatmul.mubr.f32.gmra.mxu1 %v5485_v48  ;;  %3766 = vmatmul.mubr.f32.gmra.mxu0 %v5558_v21  ;;  %v5733_v48 = vld [vmem:[%s6068_s9] sm:$0x7f] }
 0x3c2   : > { %3768 = vmatprep.mubr.f32.mxu0 %v5575_v54  ;;  %2652 = vmatprep.mubr.f32.mxu1 %v3955_v45  ;;  %v5741_v8 = vrot.slane %v5733_v48, %v2217_v46 }
 0x3c5   : > { %2653 = vmatmul.mubr.f32.gmra.mxu1 %v5511_v40  ;;  %3769 = vmatmul.mubr.f32.gmra.mxu0 %v5590_v3  ;;  %v2213_v40 = vsub.s32 1, %v5726_v30 }
 0x3c6   : > { %3771 = vmatprep.mubr.f32.mxu0 %v5604_v44  ;;  %2658 = vmatprep.mubr.f32.mxu1 %v3955_v45 }
 0x3c7   : > { %v5744_v15 = vrot.slane %v5733_v48, %v2213_v40 }
 0x3c9   : > { %2659 = vmatmul.mubr.f32.gmra.mxu1 %v5526_v37  ;;  %3772 = vmatmul.mubr.f32.gmra.mxu0 %v5623_v24  ;;  %v2221_v37 = vsub.s32 3, %v5726_v30 }
 0x3ca   : > { %3774 = vmatprep.mubr.f32.mxu0 %v5631_v2  ;;  %2664 = vmatprep.mubr.f32.mxu1 %v3955_v45 }
 0x3cb   : > { %v5747_v12 = vrot.slane %v5733_v48, %v2221_v37 }
 0x3cd   : > { %2665 = vmatmul.mubr.f32.gmra.mxu1 %v5543_v42  ;;  %3775 = vmatmul.mubr.f32.gmra.mxu0 %v5654_v52 }
 0x3ce   : > { %3777 = vmatprep.mubr.f32.mxu0 %v5663_v50  ;;  %2670 = vmatprep.mubr.f32.mxu1 %v3955_v45 }
 0x3d1   : > { %2671 = vmatmul.mubr.f32.gmra.mxu1 %v5558_v21  ;;  %3778 = vmatmul.mubr.f32.gmra.mxu0 %v2092_v57 }
 0x3d2   : > { %2676 = vmatprep.mubr.f32.mxu1 %v3955_v45 }
 0x3d5   : > { %2677 = vmatmul.mubr.f32.gmra.mxu1 %v5575_v54 }
 0x3d6   : > { %2682 = vmatprep.mubr.f32.mxu1 %v3955_v45 }
 0x3d9   : > { %2683 = vmatmul.mubr.f32.gmra.mxu1 %v5590_v3 }
 0x3da   : > { %2688 = vmatprep.mubr.f32.mxu1 %v3955_v45 }
 0x3dd   : > { %2689 = vmatmul.mubr.f32.gmra.mxu1 %v5604_v44 }
 0x3de   : > { %2694 = vmatprep.mubr.f32.mxu1 %v3955_v45 }
 0x3e1   : > { %2695 = vmatmul.mubr.f32.gmra.mxu1 %v5623_v24 }
 0x3e2   : > { %2700 = vmatprep.mubr.f32.mxu1 %v3955_v45 }
 0x3e5   : > { %2701 = vmatmul.mubr.f32.gmra.mxu1 %v5631_v2 }
 0x3e6   : > { %2706 = vmatprep.mubr.f32.mxu1 %v3955_v45 }
 0x3e9   : > { %2707 = vmatmul.mubr.f32.gmra.mxu1 %v5654_v52 }
 0x3ea   : > { %2712 = vmatprep.mubr.f32.mxu1 %v3955_v45 }
 0x3ed   : > { %2713 = vmatmul.mubr.f32.gmra.mxu1 %v5663_v50 }
 0x3ee   : > { %2718 = vmatprep.mubr.f32.mxu1 %v3955_v45  ;;  %v5738_v45 = vrot.slane %v5733_v48, %v2209_v29 }
 0x3f1   : > { %2719 = vmatmul.mubr.f32.gmra.mxu1 %v2092_v57 }
 0x433   : > { %v2308_v58 = vpop.f32.mrf.mxu1  ;;  %v2469_v31 = vpop.f32.mrf.mxu0 }
 0x434   : > { %v2309_v42 = vadd.f32 %v2308_v58, %v5738_v45  ;;  %v2470_v41 = vadd.f32 %v2469_v31, %v5741_v8 }
 0x435   : > { %v2310_v39 = vpop.f32.mrf.mxu1  ;;  %v2471_v38 = vpop.f32.mrf.mxu0 }
 0x436   : > { %2984 = vst [vmem:[%s5754_s29] sm:$0xff] %v2309_v42  ;;  %2986 = vst [vmem:[%s5754_s29 + $0x10] sm:$0xff] %v2470_v41  ;;  %v2311_v10 = vadd.f32 %v2310_v39, %v5744_v15  ;;  %v2472_v21 = vadd.f32 %v2471_v38, %v5747_v12 }
 0x437   : > { %v2314_v26 = vpop.f32.mrf.mxu1  ;;  %v2475_v18 = vpop.f32.mrf.mxu0 }
 0x438   : > { %2985 = vst [vmem:[%s5754_s29 + $0x8] sm:$0xff] %v2311_v10  ;;  %2987 = vst [vmem:[%s5754_s29 + $0x18] sm:$0xff] %v2472_v21  ;;  %v2315_v56 = vadd.f32 %v2314_v26, %v5738_v45  ;;  %v2476_v59 = vadd.f32 %v2475_v18, %v5741_v8 }
 0x439   : > { %v2316_v27 = vpop.f32.mrf.mxu1  ;;  %v2477_v6 = vpop.f32.mrf.mxu0 }
 0x43a   : > { %3903 = shalt.err (!%p3900_p3)
}
 0x43b   : > { %s3904_s13 = scalar_lea.hbm %s5767_s12, 2048  ;;  %s3908_s25 = scalar_lea.hbm %s6069_s10, 4096 }
 0x43c   : > { %p3905_p4 = scmp.ne.s32.totalorder %s5767_s12, %s3904_s13  ;;  %p3909_p9 = scmp.lt.s32.totalorder %s5767_s12, %s6069_s10 }
 0x43d   : > { %p3910_p10 = scmp.lt.s32.totalorder %s3908_s25, %s3904_s13 }
 0x43e   : > { %p3906_p7 = pnand %p3905_p4, %p4057_p5 }
 0x43f   : > { %p3911_p11 = por %p3910_p10, %p3909_p9 }
 0x440   : > { %p3907_p8 = pneg %p3906_p7 }
 0x442   : > { %p3912_p12 = pnand %p3911_p11, %p3907_p8 }
 0x444   : > { %3915 = shalt.err (!%p3912_p12)
}
 0x445   : > { %s3957_s19 = smov 128   ;;  %s3958_s14 = smov 8   ;;  %2991 = vst [vmem:[%s5754_s29 + $0x38] sm:$0xff] %v2315_v56  ;;  %2993 = vst [vmem:[%s5754_s29 + $0x48] sm:$0xff] %v2476_v59  ;;  %v2317_v54 = vadd.f32 %v2316_v27, %v5744_v15  ;;  %v2478_v1 = vadd.f32 %v2477_v6, %v5747_v12  ;;  %v2320_v60 = vpop.f32.mrf.mxu1  ;;  %v2481_v35 = vpop.f32.mrf.mxu0 }
 0x446   : > { %3781 = dma.vmem_to_hbm [thread:$0]  (%p4057_p5), %s5769_s24, 2048, %s5767_s12, %s5777_s21, %s3957_s19, %s3957_s19, %s3958_s14   ;;  %v2321_v4 = vadd.f32 %v2320_v60, %v5738_v45  ;;  %v2482_v3 = vadd.f32 %v2481_v35, %v5741_v8 }
 0x447   : > { %2992 = vst [vmem:[%s5754_s29 + $0x40] sm:$0xff] %v2317_v54  ;;  %2994 = vst [vmem:[%s5754_s29 + $0x50] sm:$0xff] %v2478_v1  ;;  %v2322_v0 = vpop.f32.mrf.mxu1  ;;  %v2483_v28 = vpop.f32.mrf.mxu0 }
 0x448   : > { %2998 = vst [vmem:[%s5754_s29 + $0x70] sm:$0xff] %v2321_v4  ;;  %3000 = vst [vmem:[%s5754_s29 + $0x80] sm:$0xff] %v2482_v3  ;;  %v2323_v47 = vadd.f32 %v2322_v0, %v5744_v15  ;;  %v2484_v33 = vadd.f32 %v2483_v28, %v5747_v12 }
 0x449   : > { %v2326_v22 = vpop.f32.mrf.mxu1  ;;  %v2487_v44 = vpop.f32.mrf.mxu0 }
 0x44a   : > { %2999 = vst [vmem:[%s5754_s29 + $0x78] sm:$0xff] %v2323_v47  ;;  %3001 = vst [vmem:[%s5754_s29 + $0x88] sm:$0xff] %v2484_v33  ;;  %v2327_v36 = vadd.f32 %v2326_v22, %v5738_v45  ;;  %v2488_v51 = vadd.f32 %v2487_v44, %v5741_v8 }
 0x44b   : > { %v2328_v63 = vpop.f32.mrf.mxu1  ;;  %v2489_v34 = vpop.f32.mrf.mxu0 }
 0x44c   : > { %3005 = vst [vmem:[%s5754_s29 + $0xa8] sm:$0xff] %v2327_v36  ;;  %3007 = vst [vmem:[%s5754_s29 + $0xb8] sm:$0xff] %v2488_v51  ;;  %v2329_v13 = vadd.f32 %v2328_v63, %v5744_v15  ;;  %v2490_v19 = vadd.f32 %v2489_v34, %v5747_v12 }
 0x44d   : > { %v2332_v11 = vpop.f32.mrf.mxu1  ;;  %v2493_v24 = vpop.f32.mrf.mxu0 }
 0x44e   : > { %3006 = vst [vmem:[%s5754_s29 + $0xb0] sm:$0xff] %v2329_v13  ;;  %3008 = vst [vmem:[%s5754_s29 + $0xc0] sm:$0xff] %v2490_v19  ;;  %v2333_v61 = vadd.f32 %v2332_v11, %v5738_v45  ;;  %v2494_v43 = vadd.f32 %v2493_v24, %v5741_v8 }
 0x44f   : > { %v2334_v2 = vpop.f32.mrf.mxu1  ;;  %v2495_v17 = vpop.f32.mrf.mxu0 }
 0x450   : > { %3012 = vst [vmem:[%s5754_s29 + $0xe0] sm:$0xff] %v2333_v61  ;;  %3014 = vst [vmem:[%s5754_s29 + $0xf0] sm:$0xff] %v2494_v43  ;;  %v2335_v32 = vadd.f32 %v2334_v2, %v5744_v15  ;;  %v2496_v7 = vadd.f32 %v2495_v17, %v5747_v12 }
 0x451   : > { %v2338_v14 = vpop.f32.mrf.mxu1  ;;  %v2499_v25 = vpop.f32.mrf.mxu0 }
 0x452   : > { %3013 = vst [vmem:[%s5754_s29 + $0xe8] sm:$0xff] %v2335_v32  ;;  %3015 = vst [vmem:[%s5754_s29 + $0xf8] sm:$0xff] %v2496_v7  ;;  %v2339_v20 = vadd.f32 %v2338_v14, %v5738_v45  ;;  %v2500_v16 = vadd.f32 %v2499_v25, %v5741_v8 }
 0x453   : > { %v2340_v52 = vpop.f32.mrf.mxu1  ;;  %v2501_v9 = vpop.f32.mrf.mxu0 }
 0x454   : > { %3019 = vst [vmem:[%s5754_s29 + $0x118] sm:$0xff] %v2339_v20  ;;  %3021 = vst [vmem:[%s5754_s29 + $0x128] sm:$0xff] %v2500_v16  ;;  %v2341_v53 = vadd.f32 %v2340_v52, %v5744_v15  ;;  %v2502_v23 = vadd.f32 %v2501_v9, %v5747_v12 }
 0x455   : > { %v2344_v50 = vpop.f32.mrf.mxu1  ;;  %v2505_v55 = vpop.f32.mrf.mxu0 }
 0x456   : > { %3020 = vst [vmem:[%s5754_s29 + $0x120] sm:$0xff] %v2341_v53  ;;  %3022 = vst [vmem:[%s5754_s29 + $0x130] sm:$0xff] %v2502_v23  ;;  %v2345_v62 = vadd.f32 %v2344_v50, %v5738_v45  ;;  %v2506_v49 = vadd.f32 %v2505_v55, %v5741_v8 }
 0x457   : > { %v2346_v57 = vpop.f32.mrf.mxu1  ;;  %v2507_v5 = vpop.f32.mrf.mxu0 }
 0x458   : > { %3026 = vst [vmem:[%s5754_s29 + $0x150] sm:$0xff] %v2345_v62  ;;  %3028 = vst [vmem:[%s5754_s29 + $0x160] sm:$0xff] %v2506_v49  ;;  %v2347_v29 = vadd.f32 %v2346_v57, %v5744_v15  ;;  %v2508_v46 = vadd.f32 %v2507_v5, %v5747_v12 }
 0x459   : > { %v2350_v40 = vpop.f32.mrf.mxu1  ;;  %v2511_v37 = vpop.f32.mrf.mxu0 }
 0x45a   : > { %3027 = vst [vmem:[%s5754_s29 + $0x158] sm:$0xff] %v2347_v29  ;;  %3029 = vst [vmem:[%s5754_s29 + $0x168] sm:$0xff] %v2508_v46  ;;  %v2351_v58 = vadd.f32 %v2350_v40, %v5738_v45  ;;  %v2512_v31 = vadd.f32 %v2511_v37, %v5741_v8 }
 0x45b   : > { %v2352_v42 = vpop.f32.mrf.mxu1  ;;  %v2513_v41 = vpop.f32.mrf.mxu0 }
 0x45c   : > { %3033 = vst [vmem:[%s5754_s29 + $0x188] sm:$0xff] %v2351_v58  ;;  %3035 = vst [vmem:[%s5754_s29 + $0x198] sm:$0xff] %v2512_v31  ;;  %v2353_v39 = vadd.f32 %v2352_v42, %v5744_v15  ;;  %v2514_v38 = vadd.f32 %v2513_v41, %v5747_v12  ;;  %v2225_v58 = vsub.s32 4, %v5726_v30  ;;  %v2233_v31 = vsub.s32 6, %v5726_v30 }
 0x45d   : > { %v2356_v10 = vpop.f32.mrf.mxu1  ;;  %v2517_v21 = vpop.f32.mrf.mxu0 }
 0x45e   : > { %3034 = vst [vmem:[%s5754_s29 + $0x190] sm:$0xff] %v2353_v39  ;;  %3036 = vst [vmem:[%s5754_s29 + $0x1a0] sm:$0xff] %v2514_v38  ;;  %v2357_v26 = vadd.f32 %v2356_v10, %v5738_v45  ;;  %v2518_v18 = vadd.f32 %v2517_v21, %v5741_v8  ;;  %v2229_v10 = vsub.s32 5, %v5726_v30 }
 0x45f   : > { %v2358_v56 = vpop.f32.mrf.mxu1  ;;  %v2519_v59 = vpop.f32.mrf.mxu0 }
 0x460   : > { %3040 = vst [vmem:[%s5754_s29 + $0x1c0] sm:$0xff] %v2357_v26  ;;  %3042 = vst [vmem:[%s5754_s29 + $0x1d0] sm:$0xff] %v2518_v18  ;;  %v2359_v27 = vadd.f32 %v2358_v56, %v5744_v15  ;;  %v2520_v6 = vadd.f32 %v2519_v59, %v5747_v12  ;;  %v5916_v59 = vrot.slane %v5733_v48, %v2225_v58 }
 0x461   : > { %v2362_v54 = vpop.f32.mrf.mxu1  ;;  %v2523_v1 = vpop.f32.mrf.mxu0 }
 0x462   : > { %3041 = vst [vmem:[%s5754_s29 + $0x1c8] sm:$0xff] %v2359_v27  ;;  %3043 = vst [vmem:[%s5754_s29 + $0x1d8] sm:$0xff] %v2520_v6  ;;  %v2363_v60 = vadd.f32 %v2362_v54, %v5738_v45  ;;  %v2524_v35 = vadd.f32 %v2523_v1, %v5741_v8  ;;  %v5919_v27 = vrot.slane %v5733_v48, %v2233_v31 }
 0x463   : > { %v2364_v4 = vpop.f32.mrf.mxu1  ;;  %v2525_v3 = vpop.f32.mrf.mxu0 }
 0x464   : > { %3047 = vst [vmem:[%s5754_s29 + $0x1f8] sm:$0xff] %v2363_v60  ;;  %3049 = vst [vmem:[%s5754_s29 + $0x208] sm:$0xff] %v2524_v35  ;;  %v2365_v0 = vadd.f32 %v2364_v4, %v5744_v15  ;;  %v2526_v28 = vadd.f32 %v2525_v3, %v5747_v12 }
 0x465   : > { %v2368_v47 = vpop.f32.mrf.mxu1  ;;  %v2529_v33 = vpop.f32.mrf.mxu0 }
 0x466   : > { %3048 = vst [vmem:[%s5754_s29 + $0x200] sm:$0xff] %v2365_v0  ;;  %3050 = vst [vmem:[%s5754_s29 + $0x210] sm:$0xff] %v2526_v28  ;;  %v2369_v22 = vadd.f32 %v2368_v47, %v5738_v45  ;;  %v2530_v44 = vadd.f32 %v2529_v33, %v5741_v8 }
 0x467   : > { %v2370_v36 = vpop.f32.mrf.mxu1  ;;  %v2531_v51 = vpop.f32.mrf.mxu0 }
 0x468   : > { %3054 = vst [vmem:[%s5754_s29 + $0x230] sm:$0xff] %v2369_v22  ;;  %3056 = vst [vmem:[%s5754_s29 + $0x240] sm:$0xff] %v2530_v44  ;;  %v2371_v63 = vadd.f32 %v2370_v36, %v5744_v15  ;;  %v2532_v34 = vadd.f32 %v2531_v51, %v5747_v12 }
 0x469   : > { %v2374_v13 = vpop.f32.mrf.mxu1  ;;  %v2535_v19 = vpop.f32.mrf.mxu0 }
 0x46a   : > { %3055 = vst [vmem:[%s5754_s29 + $0x238] sm:$0xff] %v2371_v63  ;;  %3057 = vst [vmem:[%s5754_s29 + $0x248] sm:$0xff] %v2532_v34  ;;  %v2375_v11 = vadd.f32 %v2374_v13, %v5738_v45  ;;  %v2536_v24 = vadd.f32 %v2535_v19, %v5741_v8 }
 0x46b   : > { %v2376_v61 = vpop.f32.mrf.mxu1  ;;  %v2537_v43 = vpop.f32.mrf.mxu0 }
 0x46c   : > { %3061 = vst [vmem:[%s5754_s29 + $0x268] sm:$0xff] %v2375_v11  ;;  %3063 = vst [vmem:[%s5754_s29 + $0x278] sm:$0xff] %v2536_v24  ;;  %v2377_v2 = vadd.f32 %v2376_v61, %v5744_v15  ;;  %v2538_v17 = vadd.f32 %v2537_v43, %v5747_v12 }
 0x46d   : > { %v2380_v32 = vpop.f32.mrf.mxu1  ;;  %v2541_v7 = vpop.f32.mrf.mxu0 }
 0x46e   : > { %3062 = vst [vmem:[%s5754_s29 + $0x270] sm:$0xff] %v2377_v2  ;;  %3064 = vst [vmem:[%s5754_s29 + $0x280] sm:$0xff] %v2538_v17  ;;  %v2381_v14 = vadd.f32 %v2380_v32, %v5738_v45  ;;  %v2542_v25 = vadd.f32 %v2541_v7, %v5741_v8 }
 0x46f   : > { %v2382_v20 = vpop.f32.mrf.mxu1  ;;  %v2543_v16 = vpop.f32.mrf.mxu0 }
 0x470   : > { %3068 = vst [vmem:[%s5754_s29 + $0x2a0] sm:$0xff] %v2381_v14  ;;  %3070 = vst [vmem:[%s5754_s29 + $0x2b0] sm:$0xff] %v2542_v25  ;;  %v2383_v52 = vadd.f32 %v2382_v20, %v5744_v15  ;;  %v2544_v9 = vadd.f32 %v2543_v16, %v5747_v12 }
 0x471   : > { %v2386_v53 = vpop.f32.mrf.mxu1  ;;  %v2547_v23 = vpop.f32.mrf.mxu0 }
 0x472   : > { %3069 = vst [vmem:[%s5754_s29 + $0x2a8] sm:$0xff] %v2383_v52  ;;  %3071 = vst [vmem:[%s5754_s29 + $0x2b8] sm:$0xff] %v2544_v9  ;;  %v2387_v50 = vadd.f32 %v2386_v53, %v5738_v45  ;;  %v2548_v55 = vadd.f32 %v2547_v23, %v5741_v8 }
 0x473   : > { %v2388_v62 = vpop.f32.mrf.mxu1  ;;  %v2549_v49 = vpop.f32.mrf.mxu0 }
 0x474   : > { %3075 = vst [vmem:[%s5754_s29 + $0x2d8] sm:$0xff] %v2387_v50  ;;  %3077 = vst [vmem:[%s5754_s29 + $0x2e8] sm:$0xff] %v2548_v55  ;;  %v2389_v57 = vadd.f32 %v2388_v62, %v5744_v15  ;;  %v2550_v5 = vadd.f32 %v2549_v49, %v5747_v12 }
 0x475   : > { %v2392_v29 = vpop.f32.mrf.mxu1  ;;  %v2553_v46 = vpop.f32.mrf.mxu0 }
 0x476   : > { %3076 = vst [vmem:[%s5754_s29 + $0x2e0] sm:$0xff] %v2389_v57  ;;  %3078 = vst [vmem:[%s5754_s29 + $0x2f0] sm:$0xff] %v2550_v5  ;;  %v2393_v40 = vadd.f32 %v2392_v29, %v5738_v45  ;;  %v2554_v37 = vadd.f32 %v2553_v46, %v5741_v8 }
 0x477   : > { %v2394_v42 = vpop.f32.mrf.mxu1  ;;  %v2555_v41 = vpop.f32.mrf.mxu0 }
 0x478   : > { %3082 = vst [vmem:[%s5754_s29 + $0x310] sm:$0xff] %v2393_v40  ;;  %3084 = vst [vmem:[%s5754_s29 + $0x320] sm:$0xff] %v2554_v37  ;;  %v2395_v39 = vadd.f32 %v2394_v42, %v5744_v15  ;;  %v2556_v38 = vadd.f32 %v2555_v41, %v5747_v12 }
 0x479   : > { %v2398_v21 = vpop.f32.mrf.mxu1  ;;  %v2559_v26 = vpop.f32.mrf.mxu0 }
 0x47a   : > { %3083 = vst [vmem:[%s5754_s29 + $0x318] sm:$0xff] %v2395_v39  ;;  %3085 = vst [vmem:[%s5754_s29 + $0x328] sm:$0xff] %v2556_v38  ;;  %v2399_v18 = vadd.f32 %v2398_v21, %v5738_v45  ;;  %v2560_v56 = vadd.f32 %v2559_v26, %v5741_v8  ;;  %v5926_v45 = vrot.slane %v5733_v48, %v2229_v10 }
 0x47b   : > { %v2400_v6 = vpop.f32.mrf.mxu1  ;;  %v2561_v30 = vpop.f32.mrf.mxu0 }
 0x47c   : > { %3089 = vst [vmem:[%s5754_s29 + $0x348] sm:$0xff] %v2399_v18  ;;  %3091 = vst [vmem:[%s5754_s29 + $0x358] sm:$0xff] %v2560_v56  ;;  %v2401_v54 = vadd.f32 %v2400_v6, %v5744_v15  ;;  %v2562_v1 = vadd.f32 %v2561_v30, %v5747_v12 }
 0x47d   : > { %v2630_v8 = vpop.f32.mrf.mxu1  ;;  %v3758_v60 = vpop.f32.mrf.mxu0 }
 0x47e   : > { %3090 = vst [vmem:[%s5754_s29 + $0x350] sm:$0xff] %v2401_v54  ;;  %3092 = vst [vmem:[%s5754_s29 + $0x360] sm:$0xff] %v2562_v1  ;;  %v2631_v35 = vadd.f32 %v2630_v8, %v5916_v59  ;;  %v2797_v4 = vadd.f32 %v3758_v60, %v5919_v27 }
 0x47f   : > { %v2632_v3 = vpop.f32.mrf.mxu1  ;;  %v2791_v0 = vpop.f32.mrf.mxu0 }
 0x480   : > { %2988 = vst [vmem:[%s5754_s29 + $0x20] sm:$0xff] %v2631_v35  ;;  %2997 = vst.msk [vmem:[%s5754_s29 + $0x68] sm:$0xff] %vm646_vm0, %v2797_v4  ;;  %v2633_v15 = vadd.f32 %v2632_v3, %v5926_v45  ;;  %v2792_v48 = vadd.f32 %v2791_v0, %v5919_v27 }
 0x481   : > { %v2636_v12 = vpop.f32.mrf.mxu1  ;;  %v3761_v28 = vpop.f32.mrf.mxu0 }
 0x482   : > { %2989 = vst [vmem:[%s5754_s29 + $0x28] sm:$0xff] %v2633_v15  ;;  %2990 = vst.msk [vmem:[%s5754_s29 + $0x30] sm:$0xff] %vm646_vm0, %v2792_v48  ;;  %v2637_v47 = vadd.f32 %v2636_v12, %v5916_v59  ;;  %v2807_v33 = vadd.f32 %v3761_v28, %v5919_v27 }
 0x483   : > { %v2638_v22 = vpop.f32.mrf.mxu1  ;;  %v2801_v44 = vpop.f32.mrf.mxu0 }
 0x484   : > { %2995 = vst [vmem:[%s5754_s29 + $0x58] sm:$0xff] %v2637_v47  ;;  %3011 = vst.msk [vmem:[%s5754_s29 + $0xd8] sm:$0xff] %vm646_vm0, %v2807_v33  ;;  %v2639_v36 = vadd.f32 %v2638_v22, %v5926_v45  ;;  %v2802_v51 = vadd.f32 %v2801_v44, %v5919_v27 }
 0x485   : > { %v2642_v63 = vpop.f32.mrf.mxu1  ;;  %v3764_v34 = vpop.f32.mrf.mxu0 }
 0x486   : > { %2996 = vst [vmem:[%s5754_s29 + $0x60] sm:$0xff] %v2639_v36  ;;  %3004 = vst.msk [vmem:[%s5754_s29 + $0xa0] sm:$0xff] %vm646_vm0, %v2802_v51  ;;  %v2643_v13 = vadd.f32 %v2642_v63, %v5916_v59  ;;  %v2817_v19 = vadd.f32 %v3764_v34, %v5919_v27 }
 0x487   : > { %v2644_v11 = vpop.f32.mrf.mxu1  ;;  %v2811_v24 = vpop.f32.mrf.mxu0 }
 0x488   : > { %3002 = vst [vmem:[%s5754_s29 + $0x90] sm:$0xff] %v2643_v13  ;;  %3025 = vst.msk [vmem:[%s5754_s29 + $0x148] sm:$0xff] %vm646_vm0, %v2817_v19  ;;  %v2645_v61 = vadd.f32 %v2644_v11, %v5926_v45  ;;  %v2812_v43 = vadd.f32 %v2811_v24, %v5919_v27 }
 0x489   : > { %v2648_v2 = vpop.f32.mrf.mxu1  ;;  %v3767_v17 = vpop.f32.mrf.mxu0 }
 0x48a   : > { %3003 = vst [vmem:[%s5754_s29 + $0x98] sm:$0xff] %v2645_v61  ;;  %3018 = vst.msk [vmem:[%s5754_s29 + $0x110] sm:$0xff] %vm646_vm0, %v2812_v43  ;;  %v2649_v32 = vadd.f32 %v2648_v2, %v5916_v59  ;;  %v2827_v7 = vadd.f32 %v3767_v17, %v5919_v27 }
 0x48b   : > { %v2650_v14 = vpop.f32.mrf.mxu1  ;;  %v2821_v25 = vpop.f32.mrf.mxu0 }
 0x48c   : > { %3009 = vst [vmem:[%s5754_s29 + $0xc8] sm:$0xff] %v2649_v32  ;;  %3039 = vst.msk [vmem:[%s5754_s29 + $0x1b8] sm:$0xff] %vm646_vm0, %v2827_v7  ;;  %v2651_v20 = vadd.f32 %v2650_v14, %v5926_v45  ;;  %v2822_v16 = vadd.f32 %v2821_v25, %v5919_v27 }
 0x48d   : > { %v2654_v52 = vpop.f32.mrf.mxu1  ;;  %v3770_v9 = vpop.f32.mrf.mxu0 }
 0x48e   : > { %3010 = vst [vmem:[%s5754_s29 + $0xd0] sm:$0xff] %v2651_v20  ;;  %3032 = vst.msk [vmem:[%s5754_s29 + $0x180] sm:$0xff] %vm646_vm0, %v2822_v16  ;;  %v2655_v53 = vadd.f32 %v2654_v52, %v5916_v59  ;;  %v2837_v23 = vadd.f32 %v3770_v9, %v5919_v27 }
 0x48f   : > { %v2656_v50 = vpop.f32.mrf.mxu1  ;;  %v2831_v55 = vpop.f32.mrf.mxu0 }
 0x490   : > { %3016 = vst [vmem:[%s5754_s29 + $0x100] sm:$0xff] %v2655_v53  ;;  %3053 = vst.msk [vmem:[%s5754_s29 + $0x228] sm:$0xff] %vm646_vm0, %v2837_v23  ;;  %v2657_v62 = vadd.f32 %v2656_v50, %v5926_v45  ;;  %v2832_v49 = vadd.f32 %v2831_v55, %v5919_v27 }
 0x491   : > { %v2660_v57 = vpop.f32.mrf.mxu1  ;;  %v3773_v5 = vpop.f32.mrf.mxu0 }
 0x492   : > { %3017 = vst [vmem:[%s5754_s29 + $0x108] sm:$0xff] %v2657_v62  ;;  %3046 = vst.msk [vmem:[%s5754_s29 + $0x1f0] sm:$0xff] %vm646_vm0, %v2832_v49  ;;  %v2661_v29 = vadd.f32 %v2660_v57, %v5916_v59  ;;  %v2847_v46 = vadd.f32 %v3773_v5, %v5919_v27 }
 0x493   : > { %v2662_v40 = vpop.f32.mrf.mxu1  ;;  %v2841_v37 = vpop.f32.mrf.mxu0 }
 0x494   : > { %3023 = vst [vmem:[%s5754_s29 + $0x138] sm:$0xff] %v2661_v29  ;;  %3067 = vst.msk [vmem:[%s5754_s29 + $0x298] sm:$0xff] %vm646_vm0, %v2847_v46  ;;  %v2663_v58 = vadd.f32 %v2662_v40, %v5926_v45  ;;  %v2842_v31 = vadd.f32 %v2841_v37, %v5919_v27 }
 0x495   : > { %v2666_v42 = vpop.f32.mrf.mxu1  ;;  %v3776_v41 = vpop.f32.mrf.mxu0 }
 0x496   : > { %3024 = vst [vmem:[%s5754_s29 + $0x140] sm:$0xff] %v2663_v58  ;;  %3060 = vst.msk [vmem:[%s5754_s29 + $0x260] sm:$0xff] %vm646_vm0, %v2842_v31  ;;  %v2667_v39 = vadd.f32 %v2666_v42, %v5916_v59  ;;  %v2857_v38 = vadd.f32 %v3776_v41, %v5919_v27 }
 0x497   : > { %v2668_v10 = vpop.f32.mrf.mxu1  ;;  %v2851_v21 = vpop.f32.mrf.mxu0 }
 0x498   : > { %3030 = vst [vmem:[%s5754_s29 + $0x170] sm:$0xff] %v2667_v39  ;;  %3081 = vst.msk [vmem:[%s5754_s29 + $0x308] sm:$0xff] %vm646_vm0, %v2857_v38  ;;  %v2669_v26 = vadd.f32 %v2668_v10, %v5926_v45  ;;  %v2852_v18 = vadd.f32 %v2851_v21, %v5919_v27 }
 0x499   : > { %v2672_v56 = vpop.f32.mrf.mxu1  ;;  %v3779_v6 = vpop.f32.mrf.mxu0 }
 0x49a   : > { %3031 = vst [vmem:[%s5754_s29 + $0x178] sm:$0xff] %v2669_v26  ;;  %3074 = vst.msk [vmem:[%s5754_s29 + $0x2d0] sm:$0xff] %vm646_vm0, %v2852_v18  ;;  %v2673_v30 = vadd.f32 %v2672_v56, %v5916_v59  ;;  %v2867_v54 = vadd.f32 %v3779_v6, %v5919_v27 }
 0x49b   : > { %v2674_v1 = vpop.f32.mrf.mxu1  ;;  %v2861_v8 = vpop.f32.mrf.mxu0 }
 0x49c   : > { %3037 = vst [vmem:[%s5754_s29 + $0x1a8] sm:$0xff] %v2673_v30  ;;  %3095 = vst.msk [vmem:[%s5754_s29 + $0x378] sm:$0xff] %vm646_vm0, %v2867_v54  ;;  %v2675_v60 = vadd.f32 %v2674_v1, %v5926_v45  ;;  %v2862_v35 = vadd.f32 %v2861_v8, %v5919_v27 }
 0x49d   : > { %v2678_v4 = vpop.f32.mrf.mxu1 }
 0x49e   : > { %3038 = vst [vmem:[%s5754_s29 + $0x1b0] sm:$0xff] %v2675_v60  ;;  %3088 = vst.msk [vmem:[%s5754_s29 + $0x340] sm:$0xff] %vm646_vm0, %v2862_v35  ;;  %v2679_v3 = vadd.f32 %v2678_v4, %v5916_v59 }
 0x49f   : > { %v2680_v0 = vpop.f32.mrf.mxu1 }
 0x4a0   : > { %3044 = vst [vmem:[%s5754_s29 + $0x1e0] sm:$0xff] %v2679_v3  ;;  %v2681_v15 = vadd.f32 %v2680_v0, %v5926_v45 }
 0x4a1   : > { %v2684_v48 = vpop.f32.mrf.mxu1 }
 0x4a2   : > { %3045 = vst [vmem:[%s5754_s29 + $0x1e8] sm:$0xff] %v2681_v15  ;;  %v2685_v12 = vadd.f32 %v2684_v48, %v5916_v59 }
 0x4a3   : > { %v2686_v28 = vpop.f32.mrf.mxu1 }
 0x4a4   : > { %3051 = vst [vmem:[%s5754_s29 + $0x218] sm:$0xff] %v2685_v12  ;;  %v2687_v27 = vadd.f32 %v2686_v28, %v5926_v45 }
 0x4a5   : > { %v2690_v47 = vpop.f32.mrf.mxu1 }
 0x4a6   : > { %3052 = vst [vmem:[%s5754_s29 + $0x220] sm:$0xff] %v2687_v27  ;;  %v2691_v33 = vadd.f32 %v2690_v47, %v5916_v59 }
 0x4a7   : > { %v2692_v22 = vpop.f32.mrf.mxu1 }
 0x4a8   : > { %3058 = vst [vmem:[%s5754_s29 + $0x250] sm:$0xff] %v2691_v33  ;;  %v2693_v44 = vadd.f32 %v2692_v22, %v5926_v45 }
 0x4a9   : > { %v2696_v36 = vpop.f32.mrf.mxu1 }
 0x4aa   : > { %3059 = vst [vmem:[%s5754_s29 + $0x258] sm:$0xff] %v2693_v44  ;;  %v2697_v51 = vadd.f32 %v2696_v36, %v5916_v59 }
 0x4ab   : > { %v2698_v63 = vpop.f32.mrf.mxu1 }
 0x4ac   : > { %3065 = vst [vmem:[%s5754_s29 + $0x288] sm:$0xff] %v2697_v51  ;;  %v2699_v34 = vadd.f32 %v2698_v63, %v5926_v45 }
 0x4ad   : > { %v2702_v13 = vpop.f32.mrf.mxu1 }
 0x4ae   : > { %3066 = vst [vmem:[%s5754_s29 + $0x290] sm:$0xff] %v2699_v34  ;;  %v2703_v19 = vadd.f32 %v2702_v13, %v5916_v59 }
 0x4af   : > { %v2704_v11 = vpop.f32.mrf.mxu1 }
 0x4b0   : > { %3072 = vst [vmem:[%s5754_s29 + $0x2c0] sm:$0xff] %v2703_v19  ;;  %v2705_v24 = vadd.f32 %v2704_v11, %v5926_v45 }
 0x4b1   : > { %v2708_v61 = vpop.f32.mrf.mxu1 }
 0x4b2   : > { %3073 = vst [vmem:[%s5754_s29 + $0x2c8] sm:$0xff] %v2705_v24  ;;  %v2709_v43 = vadd.f32 %v2708_v61, %v5916_v59 }
 0x4b3   : > { %v2710_v2 = vpop.f32.mrf.mxu1 }
 0x4b4   : > { %3079 = vst [vmem:[%s5754_s29 + $0x2f8] sm:$0xff] %v2709_v43  ;;  %v2711_v17 = vadd.f32 %v2710_v2, %v5926_v45 }
 0x4b5   : > { %v2714_v32 = vpop.f32.mrf.mxu1 }
 0x4b6   : > { %3080 = vst [vmem:[%s5754_s29 + $0x300] sm:$0xff] %v2711_v17  ;;  %v2715_v7 = vadd.f32 %v2714_v32, %v5916_v59 }
 0x4b7   : > { %v2716_v14 = vpop.f32.mrf.mxu1 }
 0x4b8   : > { %3086 = vst [vmem:[%s5754_s29 + $0x330] sm:$0xff] %v2715_v7  ;;  %v2717_v25 = vadd.f32 %v2716_v14, %v5926_v45 }
 0x4b9   : > { %v2720_v20 = vpop.f32.mrf.mxu1 }
 0x4ba   : > { %3087 = vst [vmem:[%s5754_s29 + $0x338] sm:$0xff] %v2717_v25  ;;  %v2721_v16 = vadd.f32 %v2720_v20, %v5916_v59 }
 0x4bb   : > { %v2722_v52 = vpop.f32.mrf.mxu1 }
 0x4bc   : > { %3093 = vst [vmem:[%s5754_s29 + $0x368] sm:$0xff] %v2721_v16  ;;  %v2723_v9 = vadd.f32 %v2722_v52, %v5926_v45 }
 0x4be   : > { %3094 = vst [vmem:[%s5754_s29 + $0x370] sm:$0xff] %v2723_v9 }
 0x4bf PF: > { %p3787_p5 = scmp.ge.s32.totalorder %s3950_s20, 2  ;;  %s3135_s27 = sand.u32 1, %s3938_s17  }
 0x4c0   : > { %s3136_s24 = scalar_lea.sflag [#allocation3], %s3135_s27 }
 0x4c1   : > { %p3784_p13 = pnand %p3787_p5, %p4061_p6 }
 0x4c3   : > { %p3785_p0 = pneg %p3784_p13 }
 0x4c5   : > { %3933 = dma.done.wait (%p3785_p0), %s3136_s24, 2048  }
 0x4c6   : > { %3935 = vsyncadd (%p3785_p0), %s3136_s24, 4294965248  ;;  %s6117_s12 = sld [smem:[#allocation5_spill]]  ;;  %p22_p1 = scmp.ge.s32.totalorder %s4044_s23, 4  }
 0x4c7   : > { %s6118_s19 = sld [smem:[#allocation6_spill]]  ;;  %s6119_s17 = smov %s3942_s18 }
 0x4c8   : > { %s6121_s20 = smov %s4044_s23  ;;  %24 = sbr.rel (!%p22_p1) target bundleno = 3 (0x3), region = 110 }
 0x4cc   : > { %s6120_s18 = smov %s6117_s12 }
 0x4cd   :  { %3150 = vsyncpa [#allocation3], 1 }
 0x4ce   :  { %3152 = vsyncpa [#allocation3 + $0x1], 1 }

</bundles_post_ra>
